<compile_context>
chip_gen: v7x
topology: tpu7x:2x2x1
jax: 0.10.0
libtpu: 0.0.40
codegen_flags: <defaults>
</compile_context>

<pallas_src>
import functools
import numpy as np
import jax
import jax.numpy as jnp
from jax import lax
from jax.experimental import pallas as pl
from jax.experimental.pallas import tpu as pltpu


def attention_block_kernel(x_ref, gamma_ref, beta_ref, m_ref, mt_ref,
                           wqkv_ref, bqkv_ref, w3_ref, b3_ref, o_ref,
                           *, eps, cpg, d, inv_sqrt_c):
    """One batch tile in NCHW-native layout.

    x_ref/o_ref: (tb, C, HW) bf16.  wqkv_ref: (C, 3D) bf16, w3_ref: (D, C) bf16.
    Biases / affine params: (1, 3D) / (1, C) f32.  m_ref/mt_ref: one-hot group maps.
    """
    x = x_ref[...].astype(jnp.float32)                        # (tb, C, HW)
    tb, c, hw = x.shape
    denom = float(hw * cpg)
    hi = lax.Precision.HIGHEST

    # ---- GroupNorm (channel-first; stats per (batch, group) over group-channels x HW) ----
    # Group membership via one-hot (C, G) matmuls (avoids lane-splitting reshapes);
    # tiny matmuls, so full-precision accumulation is free.
    mmat = m_ref[...]                                          # (C, G)
    mtmat = mt_ref[...]                                        # (G, C)
    sum_c = jnp.sum(x, axis=2)                                 # (tb, C)
    mean_g = jnp.dot(sum_c, mmat, precision=hi,
                     preferred_element_type=jnp.float32) / denom          # (tb, G)
    mean_c = jnp.dot(mean_g, mtmat, precision=hi,
                     preferred_element_type=jnp.float32)                   # (tb, C)
    centered = x - mean_c[:, :, None]                          # (tb, C, HW)
    sqsum_c = jnp.sum(centered * centered, axis=2)             # (tb, C)  centered 2nd pass
    var_g = jnp.dot(sqsum_c, mmat, precision=hi,
                    preferred_element_type=jnp.float32) / denom            # (tb, G)
    var_c = jnp.dot(var_g, mtmat, precision=hi,
                    preferred_element_type=jnp.float32)                     # (tb, C)
    var_c = jnp.maximum(var_c, 0.0)
    scale_c = gamma_ref[...] * lax.rsqrt(var_c + eps)          # (tb, C)
    hh = centered * scale_c[:, :, None] + beta_ref[...][:, :, None]        # (tb, C, HW)

    # ---- on-chip relayout (C, HW) -> (HW, C) (XLU; replaces two HBM transpose passes) ----
    h_t = jnp.transpose(hh, (0, 2, 1)).reshape(tb * hw, c).astype(jnp.bfloat16)

    # ---- fused QKV projection (bf16 MXU operands, f32 accumulation) ----
    qkv = jnp.dot(h_t, wqkv_ref[...],
                  preferred_element_type=jnp.float32) + bqkv_ref[...]       # (tb*HW, 3D)
    # fold attention scale into q instead of scaling the (HW, HW) score tile
    q = (qkv[:, 0:d] * inv_sqrt_c).reshape(tb, hw, d).astype(jnp.bfloat16)
    k = qkv[:, d:2 * d].reshape(tb, hw, d).astype(jnp.bfloat16)
    v = qkv[:, 2 * d:3 * d].reshape(tb, hw, d).astype(jnp.bfloat16)

    # ---- attention over spatial positions ----
    scores = jnp.einsum('bqd,bkd->bqk', q, k,
                        preferred_element_type=jnp.float32)     # (tb, HW, HW) f32
    s_max = jnp.max(scores, axis=-1, keepdims=True)
    p = jnp.exp(scores - s_max)                                 # unnormalized probs
    row_sum = jnp.sum(p, axis=-1, keepdims=True)                # (tb, HW, 1)
    att = jnp.einsum('bqk,bkd->bqd', p.astype(jnp.bfloat16), v,
                     preferred_element_type=jnp.float32)        # (tb, HW, D) f32
    # normalize on the (HW, D) result with an EUP reciprocal (cheap), not on (HW, HW)
    att = att * pl.reciprocal(row_sum, approx=True)

    # ---- output NIN projection, relayout back to channel-first, residual in f32 ----
    out = jnp.dot(att.reshape(tb * hw, d).astype(jnp.bfloat16), w3_ref[...],
                  preferred_element_type=jnp.float32) + b3_ref[...]         # (tb*HW, C)
    out_cf = jnp.transpose(out.reshape(tb, hw, c), (0, 2, 1))               # (tb, C, HW)
    o_ref[...] = (x + out_cf).astype(o_ref.dtype)


# ----------------------------- wrapper-side policy ------------------------------------

def _tpu_vmem_capacity_bytes():
    try:
        cap = getattr(pltpu.get_tpu_info(), "vmem_capacity_bytes", None)
        if cap:
            return int(cap)
    except Exception:
        pass
    return 64 << 20  # conservative fallback (v7x per-TensorCore)


def _num_tensorcores_per_chip():
    try:
        kind = jax.devices()[0].device_kind.lower()
    except Exception:
        return 1
    # chips whose TensorCores are sharded from one grid via "parallel" axes
    return 2 if any(v in kind for v in ("v7", "v5p", "v4")) else 1


def _vmem_estimate_bytes(tb, hw, c, d, io_bytes):
    """Rough peak live VMEM per grid step (double-buffered I/O + big intermediates)."""
    act = tb * hw * c
    qd = tb * hw * d
    sc = tb * hw * hw
    return int(
        2 * 2 * act * io_bytes        # double-buffered x and o tiles
        + 4 * act * 4                 # x_f32 + GroupNorm temps (centered, hh, ...)
        + 2 * act * 2 + 2 * act * 4   # bf16 relayout copy + projected output / transpose
        + qd * (3 * 4 + 3 * 2 + 4)    # qkv f32, q/k/v bf16, att f32
        + sc * 10                     # scores f32 + p f32 + p bf16
    )


def _pick_batch_tile(B, hw, c, d, io_bytes, vmem_cap, num_tc):
    budget = vmem_cap // 2            # leave headroom for Mosaic scratch / pipelining
    divisors = [t for t in range(1, min(B, 8) + 1) if B % t == 0]
    fitting = [t for t in divisors
               if _vmem_estimate_bytes(t, hw, c, d, io_bytes) <= budget]
    if not fitting:
        fitting = [1]
    tb = max(fitting)
    # Only trade per-step overhead for extra grid steps when >=2 TCs can shard them.
    if num_tc >= 2 and B >= num_tc and B // tb < num_tc:
        smaller = [t for t in fitting if B // t >= num_tc]
        if smaller:
            tb = max(smaller)
    return tb


def attention_block(x_nchw, params, *, n_groups, batch_block=None,
                    io_dtype=jnp.bfloat16):
    B, C, H, W = x_nchw.shape
    HW = H * W
    D = params["Wq"].shape[1]
    assert C % n_groups == 0
    cpg = C // n_groups
    io_bytes = jnp.dtype(io_dtype).itemsize

    vmem_cap = _tpu_vmem_capacity_bytes()
    num_tc = _num_tensorcores_per_chip()
    tb = _pick_batch_tile(B, HW, C, D, io_bytes, vmem_cap, num_tc) \
        if batch_block is None else batch_block
    assert B % tb == 0

    # NCHW -> (B, C, HW): pure metadata reshape, no HBM transpose pass.
    x = x_nchw.reshape(B, C, HW).astype(io_dtype)

    # one-hot channel->group membership matrix and its transpose
    M_np = (np.arange(C)[:, None] // cpg == np.arange(n_groups)[None, :]).astype(np.float32)
    M = jnp.asarray(M_np)
    MT = jnp.asarray(M_np.T)

    gamma = params["gamma"].reshape(1, C).astype(jnp.float32)
    beta = params["beta"].reshape(1, C).astype(jnp.float32)
    # fused QKV weights in bf16 (MXU native rate); biases stay f32 (added to f32 acc)
    wqkv = jnp.concatenate(
        [params["Wq"], params["Wk"], params["Wv"]], axis=1).astype(jnp.bfloat16)   # (C, 3D)
    bqkv = jnp.concatenate(
        [params["bq"], params["bk"], params["bv"]]).reshape(1, 3 * D).astype(jnp.float32)
    w3 = params["W3"].astype(jnp.bfloat16)                                          # (D, C)
    b3 = params["b3"].reshape(1, C).astype(jnp.float32)

    est = _vmem_estimate_bytes(tb, HW, C, D, io_bytes)
    vmem_limit = int(min(vmem_cap - (4 << 20), max(2 * est + (16 << 20), 32 << 20)))
    vmem_limit = max(vmem_limit, est + (4 << 20))

    kernel = functools.partial(
        attention_block_kernel, eps=1e-6, cpg=cpg, d=D,
        inv_sqrt_c=float(C) ** (-0.5))

    def fixed2(shape):
        return pl.BlockSpec(shape, lambda b: (0, 0))

    in_specs = [
        pl.BlockSpec((tb, C, HW), lambda b: (b, 0, 0)),     # x (batch tile, NCHW-native)
        fixed2((1, C)), fixed2((1, C)),                     # gamma, beta
        fixed2((C, n_groups)), fixed2((n_groups, C)),       # M, M^T
        fixed2((C, 3 * D)), fixed2((1, 3 * D)),             # Wqkv, bqkv
        fixed2((D, C)), fixed2((1, C)),                     # W3, b3
    ]
    out_specs = pl.BlockSpec((tb, C, HW), lambda b: (b, 0, 0))   # HW-last: lane-dense stores

    out = pl.pallas_call(
        kernel,
        out_shape=jax.ShapeDtypeStruct((B, C, HW), io_dtype),
        grid=(B // tb,),
        in_specs=in_specs,
        out_specs=out_specs,
        compiler_params=pltpu.CompilerParams(
            dimension_semantics=("parallel",),     # batch tiles are independent
            vmem_limit_bytes=vmem_limit,
        ),
    )(x, gamma, beta, M, MT, wqkv, bqkv, w3, b3)

    # pure reshape back to NCHW (no transpose pass)
    return out.reshape(B, C, H, W)


# ----------------------------- reference / init / demo --------------------------------

def nin_init(key, in_dim, num_units, init_scale):
    """JAX port of default_init (fan_avg, uniform) used by NIN."""
    scale = 1e-10 if init_scale == 0 else init_scale
    fan_in, fan_out = num_units, in_dim   # in_axis=1, out_axis=0 on (in_dim, num_units)
    variance = scale / ((fan_in + fan_out) / 2.0)
    limit = float(np.sqrt(3.0 * variance))
    W = jax.random.uniform(key, (in_dim, num_units), jnp.float32, -limit, limit)
    b = jnp.zeros((num_units,), jnp.float32)
    return W, b


def _reference(x_nchw, params, *, n_groups, io_dtype=jnp.bfloat16):
    """Pure-JAX f32 mirror of the PyTorch forward (from the bf16-quantized input)."""
    B, C, H, W = x_nchw.shape
    x = x_nchw.astype(io_dtype).astype(jnp.float32)
    cpg = C // n_groups
    xg = x.reshape(B, n_groups, cpg, H, W)
    mean = xg.mean(axis=(2, 3, 4), keepdims=True)
    var = ((xg - mean) ** 2).mean(axis=(2, 3, 4), keepdims=True)
    h = ((xg - mean) / jnp.sqrt(var + 1e-6)).reshape(B, C, H, W)
    h = h * params["gamma"][None, :, None, None] + params["beta"][None, :, None, None]
    hl = h.reshape(B, C, H * W).transpose(0, 2, 1)          # (B, HW, C)
    q = hl @ params["Wq"] + params["bq"]
    k = hl @ params["Wk"] + params["bk"]
    v = hl @ params["Wv"] + params["bv"]
    w = jnp.einsum('bqd,bkd->bqk', q, k) * (float(C) ** -0.5)
    w = jax.nn.softmax(w, axis=-1)
    att = jnp.einsum('bqk,bkd->bqd', w, v)
    out = (att @ params["W3"] + params["b3"]).transpose(0, 2, 1).reshape(B, C, H, W)
    return x + out


if __name__ == "__main__":
    # AttentionBlock(n_channels=32, n_heads=1, d_k=None, n_groups=32)
    B, C, H, W = 2, 32, 16, 16
    n_groups = 32
    n_heads, d_k = 1, C
    D = n_heads * d_k

    key = jax.random.PRNGKey(0)
    kx, k0, k1, k2, k3 = jax.random.split(key, 5)

    x = jax.random.normal(kx, (B, C, H, W), jnp.float32)

    Wq, bq = nin_init(k0, C, D, 0.1)   # NIN_0
    Wk, bk = nin_init(k1, C, D, 0.1)   # NIN_1
    Wv, bv = nin_init(k2, C, D, 0.1)   # NIN_2
    W3, b3 = nin_init(k3, D, C, 0.0)   # NIN_3 (init_scale=0 -> ~zero weights)

    params = dict(
        gamma=jnp.ones((C,), jnp.float32),   # GroupNorm affine defaults
        beta=jnp.zeros((C,), jnp.float32),
        Wq=Wq, bq=bq, Wk=Wk, bk=bk, Wv=Wv, bv=bv, W3=W3, b3=b3,
    )

    out = attention_block(x, params, n_groups=n_groups)
    jax.block_until_ready(out)
    assert out.shape == (B, C, H, W)

    ref = _reference(x, params, n_groups=n_groups)
    err = float(jnp.max(jnp.abs(out.astype(jnp.float32) - ref)))
    assert err < 5e-2, f"max abs diff vs reference too large: {err}"
    print("KERNEL_OK")
</pallas_src>

<mosaic_0001>
module attributes {stable_mosaic.version = 11 : i64} {
  func.func @attention_block_kernel(%arg0: i32, %arg1: memref<2x32x256xbf16, #tpu.memory_space<vmem>>, %arg2: memref<1x32xf32, #tpu.memory_space<vmem>>, %arg3: memref<1x32xf32, #tpu.memory_space<vmem>>, %arg4: memref<32x32xf32, #tpu.memory_space<vmem>>, %arg5: memref<32x32xf32, #tpu.memory_space<vmem>>, %arg6: memref<32x96xbf16, #tpu.memory_space<vmem>>, %arg7: memref<1x96xf32, #tpu.memory_space<vmem>>, %arg8: memref<32x32xbf16, #tpu.memory_space<vmem>>, %arg9: memref<1x32xf32, #tpu.memory_space<vmem>>, %arg10: memref<2x32x256xbf16, #tpu.memory_space<vmem>>) attributes {dimension_semantics = [#tpu.dimension_semantics<parallel>], iteration_bounds = array<i64: 1>, scalar_prefetch = 0 : i64, scratch_operands = 0 : i64, tpu.core_type = #tpu.core_type<tc>, window_params = [{transform_indices = @transform_0, window_bounds = array<i64: 2, 32, 256>}, {pipeline_mode = #tpu.pipeline_mode<synchronous>, transform_indices = @transform_1, window_bounds = array<i64: 1, 32>}, {pipeline_mode = #tpu.pipeline_mode<synchronous>, transform_indices = @transform_2, window_bounds = array<i64: 1, 32>}, {pipeline_mode = #tpu.pipeline_mode<synchronous>, transform_indices = @transform_3, window_bounds = array<i64: 32, 32>}, {pipeline_mode = #tpu.pipeline_mode<synchronous>, transform_indices = @transform_4, window_bounds = array<i64: 32, 32>}, {pipeline_mode = #tpu.pipeline_mode<synchronous>, transform_indices = @transform_5, window_bounds = array<i64: 32, 96>}, {pipeline_mode = #tpu.pipeline_mode<synchronous>, transform_indices = @transform_6, window_bounds = array<i64: 1, 96>}, {pipeline_mode = #tpu.pipeline_mode<synchronous>, transform_indices = @transform_7, window_bounds = array<i64: 32, 32>}, {pipeline_mode = #tpu.pipeline_mode<synchronous>, transform_indices = @transform_8, window_bounds = array<i64: 1, 32>}, {transform_indices = @transform_9, window_bounds = array<i64: 2, 32, 256>}]} {
    %c0 = arith.constant 0 : index
    %c0_0 = arith.constant 0 : index
    %c0_1 = arith.constant 0 : index
    %0 = vector.load %arg1[%c0, %c0_0, %c0_1] : memref<2x32x256xbf16, #tpu.memory_space<vmem>>, vector<2x32x256xbf16>
    %1 = arith.extf %0 : vector<2x32x256xbf16> to vector<2x32x256xf32>
    %c0_2 = arith.constant 0 : index
    %c0_3 = arith.constant 0 : index
    %2 = vector.load %arg4[%c0_2, %c0_3] : memref<32x32xf32, #tpu.memory_space<vmem>>, vector<32x32xf32>
    %c0_4 = arith.constant 0 : index
    %c0_5 = arith.constant 0 : index
    %3 = vector.load %arg5[%c0_4, %c0_5] : memref<32x32xf32, #tpu.memory_space<vmem>>, vector<32x32xf32>
    %cst = arith.constant dense<0.000000e+00> : vector<2x32xf32>
    %4 = vector.multi_reduction <add>, %1, %cst [2] : vector<2x32x256xf32> to vector<2x32xf32>
    %cst_6 = arith.constant dense<0.000000e+00> : vector<2x32xf32>
    %5 = tpu.matmul %4, %2, %cst_6 {dimension_numbers = #tpu.dot_dimension_numbers<[1], [0], [0], [1], [0, 0, 1, 1], [], []>, precision = #tpu.contract_precision<fp32>} : vector<2x32xf32>, vector<32x32xf32>, vector<2x32xf32> -> vector<2x32xf32>
    %cst_7 = arith.constant 2.560000e+02 : f32
    %6 = vector.broadcast %cst_7 : f32 to vector<2x32xf32>
    %7 = arith.divf %5, %6 : vector<2x32xf32>
    %cst_8 = arith.constant dense<0.000000e+00> : vector<2x32xf32>
    %8 = tpu.matmul %7, %3, %cst_8 {dimension_numbers = #tpu.dot_dimension_numbers<[1], [0], [0], [1], [0, 0, 1, 1], [], []>, precision = #tpu.contract_precision<fp32>} : vector<2x32xf32>, vector<32x32xf32>, vector<2x32xf32> -> vector<2x32xf32>
    %9 = vector.shape_cast %8 : vector<2x32xf32> to vector<2x32x1xf32>
    %10 = vector.broadcast %9 : vector<2x32x1xf32> to vector<2x32x256xf32>
    %11 = arith.subf %1, %10 : vector<2x32x256xf32>
    %12 = arith.mulf %11, %11 : vector<2x32x256xf32>
    %cst_9 = arith.constant dense<0.000000e+00> : vector<2x32xf32>
    %13 = vector.multi_reduction <add>, %12, %cst_9 [2] : vector<2x32x256xf32> to vector<2x32xf32>
    %cst_10 = arith.constant dense<0.000000e+00> : vector<2x32xf32>
    %14 = tpu.matmul %13, %2, %cst_10 {dimension_numbers = #tpu.dot_dimension_numbers<[1], [0], [0], [1], [0, 0, 1, 1], [], []>, precision = #tpu.contract_precision<fp32>} : vector<2x32xf32>, vector<32x32xf32>, vector<2x32xf32> -> vector<2x32xf32>
    %cst_11 = arith.constant 2.560000e+02 : f32
    %15 = vector.broadcast %cst_11 : f32 to vector<2x32xf32>
    %16 = arith.divf %14, %15 : vector<2x32xf32>
    %cst_12 = arith.constant dense<0.000000e+00> : vector<2x32xf32>
    %17 = tpu.matmul %16, %3, %cst_12 {dimension_numbers = #tpu.dot_dimension_numbers<[1], [0], [0], [1], [0, 0, 1, 1], [], []>, precision = #tpu.contract_precision<fp32>} : vector<2x32xf32>, vector<32x32xf32>, vector<2x32xf32> -> vector<2x32xf32>
    %cst_13 = arith.constant 0.000000e+00 : f32
    %18 = vector.broadcast %cst_13 : f32 to vector<2x32xf32>
    %19 = arith.maximumf %17, %18 : vector<2x32xf32>
    %c0_14 = arith.constant 0 : index
    %c0_15 = arith.constant 0 : index
    %20 = vector.load %arg2[%c0_14, %c0_15] : memref<1x32xf32, #tpu.memory_space<vmem>>, vector<1x32xf32>
    %cst_16 = arith.constant 9.99999997E-7 : f32
    %21 = vector.broadcast %cst_16 : f32 to vector<2x32xf32>
    %22 = arith.addf %19, %21 : vector<2x32xf32>
    %23 = math.rsqrt %22 : vector<2x32xf32>
    %24 = vector.broadcast %20 : vector<1x32xf32> to vector<2x32xf32>
    %25 = arith.mulf %24, %23 : vector<2x32xf32>
    %26 = vector.shape_cast %25 : vector<2x32xf32> to vector<2x32x1xf32>
    %27 = vector.broadcast %26 : vector<2x32x1xf32> to vector<2x32x256xf32>
    %28 = arith.mulf %11, %27 : vector<2x32x256xf32>
    %c0_17 = arith.constant 0 : index
    %c0_18 = arith.constant 0 : index
    %29 = vector.load %arg3[%c0_17, %c0_18] : memref<1x32xf32, #tpu.memory_space<vmem>>, vector<1x32xf32>
    %30 = vector.shape_cast %29 : vector<1x32xf32> to vector<1x32x1xf32>
    %31 = vector.broadcast %30 : vector<1x32x1xf32> to vector<2x32x256xf32>
    %32 = arith.addf %28, %31 : vector<2x32x256xf32>
    %33 = tpu.transpose %32, [0, 2, 1] : vector<2x32x256xf32> -> vector<2x256x32xf32>
    %34 = vector.shape_cast %33 : vector<2x256x32xf32> to vector<512x32xf32>
    %35 = arith.truncf %34 : vector<512x32xf32> to vector<512x32xbf16>
    %c0_19 = arith.constant 0 : index
    %c0_20 = arith.constant 0 : index
    %36 = vector.load %arg6[%c0_19, %c0_20] : memref<32x96xbf16, #tpu.memory_space<vmem>>, vector<32x96xbf16>
    %cst_21 = arith.constant dense<0.000000e+00> : vector<512x96xf32>
    %37 = tpu.matmul %35, %36, %cst_21 {dimension_numbers = #tpu.dot_dimension_numbers<[1], [0], [0], [1], [0, 0, 1, 1], [], []>} : vector<512x32xbf16>, vector<32x96xbf16>, vector<512x96xf32> -> vector<512x96xf32>
    %c0_22 = arith.constant 0 : index
    %c0_23 = arith.constant 0 : index
    %38 = vector.load %arg7[%c0_22, %c0_23] : memref<1x96xf32, #tpu.memory_space<vmem>>, vector<1x96xf32>
    %39 = vector.broadcast %38 : vector<1x96xf32> to vector<512x96xf32>
    %40 = arith.addf %37, %39 : vector<512x96xf32>
    %41 = vector.extract_strided_slice %40 {offsets = [0, 0], sizes = [512, 32], strides = [1, 1]} : vector<512x96xf32> to vector<512x32xf32>
    %cst_24 = arith.constant 0.176776692 : f32
    %42 = vector.broadcast %cst_24 : f32 to vector<512x32xf32>
    %43 = arith.mulf %41, %42 : vector<512x32xf32>
    %44 = vector.shape_cast %43 : vector<512x32xf32> to vector<2x256x32xf32>
    %45 = arith.truncf %44 : vector<2x256x32xf32> to vector<2x256x32xbf16>
    %46 = vector.extract_strided_slice %40 {offsets = [0, 32], sizes = [512, 32], strides = [1, 1]} : vector<512x96xf32> to vector<512x32xf32>
    %47 = vector.shape_cast %46 : vector<512x32xf32> to vector<2x256x32xf32>
    %48 = arith.truncf %47 : vector<2x256x32xf32> to vector<2x256x32xbf16>
    %49 = vector.extract_strided_slice %40 {offsets = [0, 64], sizes = [512, 32], strides = [1, 1]} : vector<512x96xf32> to vector<512x32xf32>
    %50 = vector.shape_cast %49 : vector<512x32xf32> to vector<2x256x32xf32>
    %51 = arith.truncf %50 : vector<2x256x32xf32> to vector<2x256x32xbf16>
    "tpu.trace_start"() <{level = 10 : i32, message = "bqd,bkd->bqk"}> : () -> ()
    %cst_25 = arith.constant dense<0.000000e+00> : vector<2x256x256xf32>
    %52 = tpu.matmul %45, %48, %cst_25 {dimension_numbers = #tpu.dot_dimension_numbers<[2], [2], [1], [1], [0, 0, 0, 1, 1, 1], [0], [0]>} : vector<2x256x32xbf16>, vector<2x256x32xbf16>, vector<2x256x256xf32> -> vector<2x256x256xf32>
    "tpu.trace_stop"() : () -> ()
    %cst_26 = arith.constant dense<0xFF800000> : vector<2x256xf32>
    %53 = vector.multi_reduction <maximumf>, %52, %cst_26 [2] : vector<2x256x256xf32> to vector<2x256xf32>
    %54 = vector.shape_cast %53 : vector<2x256xf32> to vector<2x256x1xf32>
    %55 = vector.broadcast %54 : vector<2x256x1xf32> to vector<2x256x256xf32>
    %56 = arith.subf %52, %55 : vector<2x256x256xf32>
    %57 = math.exp %56 : vector<2x256x256xf32>
    %cst_27 = arith.constant dense<0.000000e+00> : vector<2x256xf32>
    %58 = vector.multi_reduction <add>, %57, %cst_27 [2] : vector<2x256x256xf32> to vector<2x256xf32>
    %59 = vector.shape_cast %58 : vector<2x256xf32> to vector<2x256x1xf32>
    %60 = arith.truncf %57 : vector<2x256x256xf32> to vector<2x256x256xbf16>
    "tpu.trace_start"() <{level = 10 : i32, message = "bqk,bkd->bqd"}> : () -> ()
    %cst_28 = arith.constant dense<0.000000e+00> : vector<2x256x32xf32>
    %61 = tpu.matmul %60, %51, %cst_28 {dimension_numbers = #tpu.dot_dimension_numbers<[2], [1], [1], [2], [0, 0, 0, 1, 1, 2], [0], [0]>} : vector<2x256x256xbf16>, vector<2x256x32xbf16>, vector<2x256x32xf32> -> vector<2x256x32xf32>
    "tpu.trace_stop"() : () -> ()
    %62 = tpu.reciprocal %59 {approx = true} : vector<2x256x1xf32> -> vector<2x256x1xf32>
    %63 = vector.broadcast %62 : vector<2x256x1xf32> to vector<2x256x32xf32>
    %64 = arith.mulf %61, %63 : vector<2x256x32xf32>
    %65 = vector.shape_cast %64 : vector<2x256x32xf32> to vector<512x32xf32>
    %66 = arith.truncf %65 : vector<512x32xf32> to vector<512x32xbf16>
    %c0_29 = arith.constant 0 : index
    %c0_30 = arith.constant 0 : index
    %67 = vector.load %arg8[%c0_29, %c0_30] : memref<32x32xbf16, #tpu.memory_space<vmem>>, vector<32x32xbf16>
    %cst_31 = arith.constant dense<0.000000e+00> : vector<512x32xf32>
    %68 = tpu.matmul %66, %67, %cst_31 {dimension_numbers = #tpu.dot_dimension_numbers<[1], [0], [0], [1], [0, 0, 1, 1], [], []>} : vector<512x32xbf16>, vector<32x32xbf16>, vector<512x32xf32> -> vector<512x32xf32>
    %c0_32 = arith.constant 0 : index
    %c0_33 = arith.constant 0 : index
    %69 = vector.load %arg9[%c0_32, %c0_33] : memref<1x32xf32, #tpu.memory_space<vmem>>, vector<1x32xf32>
    %70 = vector.broadcast %69 : vector<1x32xf32> to vector<512x32xf32>
    %71 = arith.addf %68, %70 : vector<512x32xf32>
    %72 = vector.shape_cast %71 : vector<512x32xf32> to vector<2x256x32xf32>
    %73 = tpu.transpose %72, [0, 2, 1] : vector<2x256x32xf32> -> vector<2x32x256xf32>
    %74 = arith.addf %1, %73 : vector<2x32x256xf32>
    %75 = arith.truncf %74 : vector<2x32x256xf32> to vector<2x32x256xbf16>
    %c0_34 = arith.constant 0 : index
    %c0_35 = arith.constant 0 : index
    %c0_36 = arith.constant 0 : index
    %76 = vector.load %arg10[%c0_34, %c0_35, %c0_36] : memref<2x32x256xbf16, #tpu.memory_space<vmem>>, vector<2x32x256xbf16>
    tpu.vector_store %arg10[%c0_34, %c0_35, %c0_36], %75 {strides = array<i32>} : memref<2x32x256xbf16, #tpu.memory_space<vmem>>, vector<2x32x256xbf16>,
    return
  }
  func.func @transform_0(%arg0: i32) -> (i32, i32, i32) {
    %c0_i32 = arith.constant 0 : i32
    %c0_i32_0 = arith.constant 0 : i32
    %c0_i32_1 = arith.constant 0 : i32
    return %arg0, %c0_i32, %c0_i32_0 : i32, i32, i32
  }
  func.func @transform_1(%arg0: i32) -> (i32, i32) {
    %c0_i32 = arith.constant 0 : i32
    %c0_i32_0 = arith.constant 0 : i32
    %c0_i32_1 = arith.constant 0 : i32
    return %c0_i32, %c0_i32_0 : i32, i32
  }
  func.func @transform_2(%arg0: i32) -> (i32, i32) {
    %c0_i32 = arith.constant 0 : i32
    %c0_i32_0 = arith.constant 0 : i32
    %c0_i32_1 = arith.constant 0 : i32
    return %c0_i32, %c0_i32_0 : i32, i32
  }
  func.func @transform_3(%arg0: i32) -> (i32, i32) {
    %c0_i32 = arith.constant 0 : i32
    %c0_i32_0 = arith.constant 0 : i32
    %c0_i32_1 = arith.constant 0 : i32
    return %c0_i32, %c0_i32_0 : i32, i32
  }
  func.func @transform_4(%arg0: i32) -> (i32, i32) {
    %c0_i32 = arith.constant 0 : i32
    %c0_i32_0 = arith.constant 0 : i32
    %c0_i32_1 = arith.constant 0 : i32
    return %c0_i32, %c0_i32_0 : i32, i32
  }
  func.func @transform_5(%arg0: i32) -> (i32, i32) {
    %c0_i32 = arith.constant 0 : i32
    %c0_i32_0 = arith.constant 0 : i32
    %c0_i32_1 = arith.constant 0 : i32
    return %c0_i32, %c0_i32_0 : i32, i32
  }
  func.func @transform_6(%arg0: i32) -> (i32, i32) {
    %c0_i32 = arith.constant 0 : i32
    %c0_i32_0 = arith.constant 0 : i32
    %c0_i32_1 = arith.constant 0 : i32
    return %c0_i32, %c0_i32_0 : i32, i32
  }
  func.func @transform_7(%arg0: i32) -> (i32, i32) {
    %c0_i32 = arith.constant 0 : i32
    %c0_i32_0 = arith.constant 0 : i32
    %c0_i32_1 = arith.constant 0 : i32
    return %c0_i32, %c0_i32_0 : i32, i32
  }
  func.func @transform_8(%arg0: i32) -> (i32, i32) {
    %c0_i32 = arith.constant 0 : i32
    %c0_i32_0 = arith.constant 0 : i32
    %c0_i32_1 = arith.constant 0 : i32
    return %c0_i32, %c0_i32_0 : i32, i32
  }
  func.func @transform_9(%arg0: i32) -> (i32, i32, i32) {
    %c0_i32 = arith.constant 0 : i32
    %c0_i32_0 = arith.constant 0 : i32
    %c0_i32_1 = arith.constant 0 : i32
    return %arg0, %c0_i32, %c0_i32_0 : i32, i32, i32
  }
}

</mosaic_0001>

<bundles_post_ra>
// kernel: tpu_custom_call.1
= control target key start
LH: loop header
LB: loop body
LE: loop exit
PB: predicated region body
PF: predicated region fallthrough
CT: control target
= control target key end

     0   :  { %14 = vsyncpa [#allocation3], 0  ;;  %s9943_s0 = inlined_call_operand.hbm [shape: bf16[2,32,256], index: 0, kind: input, shape index: {}]   ;;  %s9944_s1 = inlined_call_operand.vmem [shape: f32[1,32], index: 1, kind: input, shape index: {}]   ;;  %s9945_s2 = inlined_call_operand.vmem [shape: f32[1,32], index: 2, kind: input, shape index: {}]   ;;  %s9946_s3 = inlined_call_operand.hbm [shape: f32[32,32], index: 3, kind: input, shape index: {}]   ;;  %s9947_s4 = inlined_call_operand.hbm [shape: f32[32,32], index: 4, kind: input, shape index: {}]   ;;  %s9948_s5 = inlined_call_operand.vmem [shape: bf16[32,96], index: 5, kind: input, shape index: {}]   ;;  %s9949_s6 = inlined_call_operand.vmem [shape: f32[1,96], index: 6, kind: input, shape index: {}]   ;;  %s9950_s7 = inlined_call_operand.hbm [shape: bf16[32,32], index: 7, kind: input, shape index: {}]   ;;  %s9951_s8 = inlined_call_operand.vmem [shape: f32[1,32], index: 8, kind: input, shape index: {}]   ;;  %s9952_s9 = inlined_call_operand.hbm [shape: bf16[2,32,256], index: 9, kind: output, shape index: {}]  }
   0x1   :  { %15 = vsyncpa [#allocation6], 0 }
   0x2   :  { %16 = vsyncpa [#allocation9], 0 }
   0x3   :  { %17 = vsyncpa [#allocation4], 0  ;;  %s7557_s30 = smov [#allocation5]   ;;  %s7558_s11 = smov [#allocation2]  }
   0x4   :  { %s39_s10 = sshll.u32 %s7557_s30, 4  ;;  %s23_s12 = sshll.u32 %s7558_s11, 4  ;;  %s40_s10 = int_to_ptr.vmem [resolvable:$true] %s39_s10  ;;  %s7620_s12 = int_to_ptr.vmem [resolvable:$true] %s23_s12 }
   0x5   :  { %s7439_s15 = scalar_lea.hbm %s9946_s3, 512 }
   0x6   :  { %p7440_p0 = scmp.ne.s32.totalorder %s9946_s3, %s7439_s15  ;;  %p7443_p1 = scmp.lt.u32.totalorder %s7439_s15, %s9946_s3 }
   0x8   :  { %p7445_p2 = pnand %p7443_p1, %p7440_p0 }
   0xa   :  { %7448 = shalt.err (!%p7445_p2)
}
   0xb   :  { %s7449_s20 = scalar_lea.vmem %s40_s10, 512  ;;  %p7454_p4 = scmp.lt.s32.totalorder %s40_s10, %s40_s10 }
   0xc   :  { %p7450_p3 = scmp.ne.s32.totalorder %s40_s10, %s7449_s20  ;;  %p7455_p5 = scmp.lt.s32.totalorder %s7449_s20, %s7449_s20 }
   0xe   :  { %p7456_p6 = por %p7455_p5, %p7454_p4 }
  0x10   :  { %p7457_p7 = pnand %p7456_p6, %p7450_p3 }
  0x12   :  { %7460 = shalt.err (!%p7457_p7)
}
  0x13   :  { %s7559_s21 = smov 128   ;;  %s7560_s22 = smov 8  }
  0x14   :  { %45 = dma.hbm_to_vmem [thread:$0]  %s9946_s3, 512, %s40_s10, [#allocation6], %s7559_s21, %s7559_s21, %s7560_s22  }
  0x15   :  { %s7461_s27 = scalar_lea.hbm %s9943_s0, 1024 }
  0x16   :  { %p7462_p8 = scmp.ne.s32.totalorder %s9943_s0, %s7461_s27  ;;  %p7465_p9 = scmp.lt.u32.totalorder %s7461_s27, %s9943_s0 }
  0x18   :  { %p7467_p10 = pnand %p7465_p9, %p7462_p8 }
  0x1a   :  { %7470 = shalt.err (!%p7467_p10)
}
  0x1b   :  { %s7471_s13 = scalar_lea.vmem %s7620_s12, 1024  ;;  %p7476_p12 = scmp.lt.s32.totalorder %s7620_s12, %s7620_s12 }
  0x1c   :  { %p7472_p11 = scmp.ne.s32.totalorder %s7620_s12, %s7471_s13  ;;  %p7477_p13 = scmp.lt.s32.totalorder %s7471_s13, %s7471_s13 }
  0x1e   :  { %p7478_p0 = por %p7477_p13, %p7476_p12 }
  0x20   :  { %p7479_p1 = pnand %p7478_p0, %p7472_p11 }
  0x22   :  { %7482 = shalt.err (!%p7479_p1)
}
  0x23   :  { %29 = dma.hbm_to_vmem [thread:$0]  %s9943_s0, 1024, %s7620_s12, [#allocation3], %s7559_s21, %s7559_s21, %s7560_s22  }
  0x24   :  { %s7561_s14 = smov [#allocation7]   ;;  %s7562_s16 = smov [#allocation8]  }
  0x25   :  { %s51_s15 = sshll.u32 %s7561_s14, 4  ;;  %s67_s17 = sshll.u32 %s7562_s16, 4  ;;  %s52_s15 = int_to_ptr.vmem [resolvable:$true] %s51_s15  ;;  %s7657_s17 = int_to_ptr.vmem [resolvable:$true] %s67_s17 }
  0x26   :  { %s7483_s20 = scalar_lea.hbm %s9947_s4, 512 }
  0x27   :  { %p7484_p2 = scmp.ne.s32.totalorder %s9947_s4, %s7483_s20  ;;  %p7487_p3 = scmp.lt.u32.totalorder %s7483_s20, %s9947_s4 }
  0x29   :  { %p7489_p4 = pnand %p7487_p3, %p7484_p2 }
  0x2b   :  { %7492 = shalt.err (!%p7489_p4)
}
  0x2c   :  { %s7493_s0 = scalar_lea.vmem %s52_s15, 512  ;;  %p7498_p6 = scmp.lt.s32.totalorder %s52_s15, %s52_s15 }
  0x2d   :  { %p7494_p5 = scmp.ne.s32.totalorder %s52_s15, %s7493_s0  ;;  %p7499_p7 = scmp.lt.s32.totalorder %s7493_s0, %s7493_s0 }
  0x2f   :  { %p7500_p8 = por %p7499_p7, %p7498_p6 }
  0x31   :  { %p7501_p9 = pnand %p7500_p8, %p7494_p5 }
  0x33   :  { %7504 = shalt.err (!%p7501_p9)
}
  0x34   :  { %57 = dma.hbm_to_vmem [thread:$0]  %s9947_s4, 512, %s52_s15, [#allocation6], %s7559_s21, %s7559_s21, %s7560_s22  }
  0x35   :  { %s7505_s30 = scalar_lea.hbm %s9950_s7, 256 }
  0x36   :  { %p7506_p10 = scmp.ne.s32.totalorder %s9950_s7, %s7505_s30  ;;  %p7509_p11 = scmp.lt.u32.totalorder %s7505_s30, %s9950_s7 }
  0x38   :  { %p7511_p12 = pnand %p7509_p11, %p7506_p10 }
  0x3a   :  { %7514 = shalt.err (!%p7511_p12)
}
  0x3b   :  { %s7515_s14 = scalar_lea.vmem %s7657_s17, 256  ;;  %p7520_p0 = scmp.lt.s32.totalorder %s7657_s17, %s7657_s17 }
  0x3c   :  { %p7516_p13 = scmp.ne.s32.totalorder %s7657_s17, %s7515_s14  ;;  %p7521_p1 = scmp.lt.s32.totalorder %s7515_s14, %s7515_s14 }
  0x3e   :  { %p7522_p2 = por %p7521_p1, %p7520_p0 }
  0x40   :  { %p7523_p3 = pnand %p7522_p2, %p7516_p13 }
  0x42   :  { %7526 = shalt.err (!%p7523_p3)
}
  0x43   :  { %s7563_s4 = smov 64   ;;  %s7564_s15 = smov 4  }
  0x44   :  { %73 = dma.hbm_to_vmem [thread:$0]  %s9950_s7, 256, %s7657_s17, [#allocation9], %s7563_s4, %s7563_s4, %s7564_s15  }
  0x45   :  { %7549 = dma.done.wait [#allocation3], 1024  }
  0x46   :  { %7550 = vsyncadd [#allocation3], 4294966272 }
  0x47   :  { %7551 = dma.done.wait [#allocation6], 1024  }
  0x48   :  { %7552 = vsyncadd [#allocation6], 4294966272 }
  0x49   :  { %7553 = dma.done.wait [#allocation9], 256  }
  0x4a   :  { %7554 = vsyncadd [#allocation9], 4294967040  ;;  %v93_v0 = vld [vmem:[#allocation2 + $0x20] sm:$0xff]  ;;  %v94_v2 = vld [vmem:[#allocation2 + $0x28] sm:$0xff]  ;;  %v9955_v38 = vmov 0.0|0.0   ;;  %vm7566_vm0 = vmmov 0  }
  0x4b   :  { %v89_v1 = vld [vmem:[#allocation2] sm:$0xff]  ;;  %v7693_v3 = vunpack.c.l.bf16 %v93_v0  ;;  %v7695_v4 = vunpack.c.h.bf16 %v93_v0  ;;  %v90_v7 = vld [vmem:[#allocation2 + $0x8] sm:$0xff]  ;;  %v95_v8 = vld [vmem:[#allocation2 + $0x30] sm:$0xff]  ;;  %v7701_v9 = vunpack.c.l.bf16 %v94_v2  ;;  %v7703_v10 = vunpack.c.h.bf16 %v94_v2  ;;  %6832 = vmatprep.subr.bf16.mxu0 %v9955_v38  ;;  %6868 = vmatprep.subr.bf16.mxu1 %v9955_v38 }
  0x4c   :  { %v7697_v5 = vunpack.c.l.bf16 %v89_v1  ;;  %v7699_v6 = vunpack.c.h.bf16 %v89_v1  ;;  %v7705_v11 = vunpack.c.l.bf16 %v90_v7  ;;  %v7707_v12 = vunpack.c.h.bf16 %v90_v7  ;;  %v91_v13 = vld [vmem:[#allocation2 + $0x10] sm:$0xff]  ;;  %v96_v22 = vld [vmem:[#allocation2 + $0x38] sm:$0xff]  ;;  %v113_v32 = vld [vmem:[#allocation5] sm:$0xff] }
  0x4d   :  { %10068 = vst [vmem:[#allocation15_spill] sm:$0xff] %v7693_v3  ;;  %10069 = vst [vmem:[#allocation16_spill] sm:$0xff] %v7695_v4  ;;  %v133_v14 = vadd.f32 %v7695_v4, %v7693_v3  ;;  %v7713_v16 = vunpack.c.l.bf16 %v95_v8  ;;  %v7715_v17 = vunpack.c.h.bf16 %v95_v8  ;;  %v136_v18 = vadd.f32 %v7703_v10, %v7701_v9  ;;  %v92_v23 = vld [vmem:[#allocation2 + $0x18] sm:$0xff]  ;;  %v114_v33 = vld [vmem:[#allocation5 + $0x8] sm:$0xff] }
  0x4e   :  { %10070 = vst [vmem:[#allocation17_spill] sm:$0xff] %v7697_v5  ;;  %10071 = vst [vmem:[#allocation18_spill] sm:$0xff] %v7699_v6  ;;  %v121_v15 = vadd.f32 %v7699_v6, %v7697_v5  ;;  %v124_v19 = vadd.f32 %v7707_v12, %v7705_v11  ;;  %v7721_v20 = vunpack.c.l.bf16 %v91_v13  ;;  %v7723_v21 = vunpack.c.h.bf16 %v91_v13  ;;  %v115_v36 = vld [vmem:[#allocation5 + $0x10] sm:$0xff]  ;;  %v116_v37 = vld [vmem:[#allocation5 + $0x18] sm:$0xff] }
  0x4f   :  { %10072 = vst [vmem:[#allocation19_spill] sm:$0xff] %v7701_v9  ;;  %10073 = vst [vmem:[#allocation20_spill] sm:$0xff] %v7703_v10  ;;  %134 = vadd.xlane.f32.xlu1 %v133_v14  ;;  %v139_v24 = vadd.f32 %v7715_v17, %v7713_v16  ;;  %v7727_v25 = vunpack.c.l.bf16 %v96_v22  ;;  %v7731_v27 = vunpack.c.h.bf16 %v96_v22  ;;  %v7733_v28 = vunpack.c.l.bf16 %v92_v23 }
  0x50   :  { %10074 = vst [vmem:[#allocation21_spill] sm:$0xff] %v7705_v11  ;;  %10075 = vst [vmem:[#allocation22_spill] sm:$0xff] %v7707_v12  ;;  %122 = vadd.xlane.f32.xlu0 %v121_v15  ;;  %v127_v26 = vadd.f32 %v7723_v21, %v7721_v20  ;;  %v7735_v29 = vunpack.c.h.bf16 %v92_v23  ;;  %v205_v34 = vand.u32 4294901760, %v113_v32  ;;  %v208_v35 = vand.u32 4294901760, %v114_v33 }
  0x51   :  { %10076 = vst [vmem:[#allocation23_spill] sm:$0xff] %v7713_v16  ;;  %10077 = vst [vmem:[#allocation24_spill] sm:$0xff] %v7715_v17  ;;  %v142_v30 = vadd.f32 %v7731_v27, %v7727_v25  ;;  %v211_v40 = vand.u32 4294901760, %v115_v36  ;;  %v214_v41 = vand.u32 4294901760, %v116_v37  ;;  %v9957_v42 = vmov 0.0  }
  0x52   :  { %10078 = vst [vmem:[#allocation25_spill] sm:$0xff] %v7721_v20  ;;  %10079 = vst [vmem:[#allocation26_spill] sm:$0xff] %v7723_v21  ;;  %v130_v31 = vadd.f32 %v7735_v29, %v7733_v28  ;;  %v7742_v39 = vpack.c.bf16 %v208_v35, %v205_v34  ;;  %6440 = vmatprep.mubr.msk.f32.mxu0 %vm7566_vm0, %v9957_v42  ;;  %v285_v43 = vsub.f32 %v113_v32, %v205_v34  ;;  %v153_v2 = vlaneseq }
  0x53   :  { %10080 = vst [vmem:[#allocation27_spill] sm:$0xff] %v7727_v25  ;;  %137 = vadd.xlane.f32.xlu1 %v136_v18  ;;  %10081 = vst [vmem:[#allocation28_spill] sm:$0xff] %v7731_v27  ;;  %v292_v44 = vsub.f32 %v114_v33, %v208_v35  ;;  %6506 = vmatprep.mubr.msk.f32.mxu1 %vm7566_vm0, %v9957_v42  ;;  %v7750_v45 = vpack.c.bf16 %v214_v41, %v211_v40  ;;  %vm164_vm1 = vcmask 130112   ;;  %vm171_vm2 = vcmask 195712  }
  0x54   :  { %125 = vadd.xlane.f32.xlu0 %v124_v19  ;;  %10082 = vst [vmem:[#allocation29_spill] sm:$0xff] %v7733_v28  ;;  %10083 = vst [vmem:[#allocation30_spill] sm:$0xff] %v7735_v29  ;;  %6834 = vmatpush3.bf16.msra.mxu0 %v7742_v39  ;;  %v286_v46 = vand.u32 4294901760, %v285_v43  ;;  %v299_v49 = vsub.f32 %v115_v36, %v211_v40  ;;  %v306_v50 = vsub.f32 %v116_v37, %v214_v41  ;;  %vm178_vm3 = vcmask 261312  }
  0x55   :  { %6835 = vmatprep.subr.bf16.mxu0 %v9955_v38  ;;  %v293_v47 = vand.u32 4294901760, %v292_v44  ;;  %v7759_v62 = vpack.c.bf16 %v292_v44, %v285_v43  ;;  %v154_v7 = vand.u32 127, %v153_v2  ;;  %v7767_v18 = vshrl.u32 %v153_v2, 7 }
  0x56   :  { %v287_v48 = vsub.f32 %v285_v43, %v286_v46  ;;  %v300_v53 = vand.u32 4294901760, %v299_v49  ;;  %v307_v54 = vand.u32 4294901760, %v306_v50  ;;  %v7761_v63 = vpack.c.bf16 %v306_v50, %v299_v49 }
  0x57   :  { %140 = vadd.xlane.f32.xlu1 %v139_v24  ;;  %v294_v51 = vsub.f32 %v292_v44, %v293_v47  ;;  %v7763_v0 = vpack.c.bf16 %v293_v47, %v286_v46  ;;  %v159_v14 = vadd.s32 4294967288, %v154_v7  ;;  %v166_v15 = vadd.s32 4294967280, %v154_v7 }
  0x58   :  { %128 = vadd.xlane.f32.xlu0 %v127_v26  ;;  %6837 = vmatpush3.bf16.msra.mxu0 %v7750_v45  ;;  %v288_v52 = vand.u32 4294901760, %v287_v48  ;;  %v301_v56 = vsub.f32 %v299_v49, %v300_v53  ;;  %v308_v57 = vsub.f32 %v306_v50, %v307_v54  ;;  %v7765_v1 = vpack.c.bf16 %v307_v54, %v300_v53 }
  0x59   :  { %6838 = vmatprep.subr.bf16.mxu0 %v9955_v38  ;;  %v295_v55 = vand.u32 4294901760, %v294_v51  ;;  %v7770_v23 = vsub.s32 %v159_v14, %v7767_v18  ;;  %v173_v24 = vadd.s32 4294967272, %v154_v7  ;;  %v7773_v26 = vsub.s32 %v166_v15, %v7767_v18 }
  0x5a   :  { %v302_v59 = vand.u32 4294901760, %v301_v56  ;;  %v309_v60 = vand.u32 4294901760, %v308_v57  ;;  %vm199_vm4 = vcmask 1041409   ;;  %vm201_vm5 = vcmask 261120  }
  0x5b   :  { %143 = vadd.xlane.f32.xlu1 %v142_v30  ;;  %v7755_v58 = vpack.c.bf16 %v295_v55, %v288_v52  ;;  %v7776_v30 = vsub.s32 %v154_v7, %v7767_v18  ;;  %v7781_v35 = vsub.s32 %v173_v24, %v7767_v18  ;;  %v117_v7 = vld [vmem:[#allocation7] sm:$0xff]  ;;  %v119_v24 = vld [vmem:[#allocation7 + $0x10] sm:$0xff] }
  0x5c   :  { %131 = vadd.xlane.f32.xlu0 %v130_v31  ;;  %v7757_v61 = vpack.c.bf16 %v309_v60, %v302_v59 }
  0xdc   :  { %v135_v8 = vpop.xlane.xlu1 %134 }
  0xdd   :  { %v123_v13 = vpop.xlane.xlu0 %122  ;;  %v183_v40 = vrot.slane %v135_v8, %v7776_v30  ;;  %v118_v8 = vld [vmem:[#allocation7 + $0x8] sm:$0xff] }
  0xde   :  { %v158_v41 = vrot.slane %v123_v13, %v7776_v30  ;;  %v695_v13 = vand.u32 4294901760, %v117_v7  ;;  %v698_v14 = vand.u32 4294901760, %v118_v8 }
  0xe0   :  { %v138_v19 = vpop.xlane.xlu1 %137  ;;  %v7833_v15 = vpack.c.bf16 %v698_v14, %v695_v13 }
  0xe1   :  { %v126_v22 = vpop.xlane.xlu0 %125  ;;  %v187_v33 = vrot.slane %v138_v19, %v7770_v23  ;;  %v775_v19 = vsub.f32 %v117_v7, %v695_v13 }
  0xe2   :  { %v163_v34 = vrot.slane %v126_v22, %v7770_v23  ;;  %v782_v22 = vsub.f32 %v118_v8, %v698_v14  ;;  %6870 = vmatpush3.bf16.msra.mxu1 %v7833_v15 }
  0xe3   :  { %v188_v46 = vsel %vm164_vm1, %v187_v33, %v183_v40  ;;  %6871 = vmatprep.subr.bf16.mxu1 %v9955_v38 }
  0xe4   :  { %v141_v31 = vpop.xlane.xlu1 %140  ;;  %v165_v47 = vsel %vm164_vm1, %v163_v34, %v158_v41  ;;  %v776_v34 = vand.u32 4294901760, %v775_v19 }
  0xe5   :  { %v129_v32 = vpop.xlane.xlu0 %128  ;;  %v192_v36 = vrot.slane %v141_v31, %v7773_v26  ;;  %v120_v31 = vld [vmem:[#allocation7 + $0x18] sm:$0xff] }
  0xe6   :  { %v170_v37 = vrot.slane %v129_v32, %v7773_v26  ;;  %v701_v32 = vand.u32 4294901760, %v119_v24  ;;  %v704_v33 = vand.u32 4294901760, %v120_v31  ;;  %v777_v40 = vsub.f32 %v775_v19, %v776_v34 }
  0xe7   :  { %v193_v50 = vsel %vm171_vm2, %v192_v36, %v188_v46  ;;  %v783_v36 = vand.u32 4294901760, %v782_v22 }
  0xe8   :  { %v144_v43 = vpop.xlane.xlu1 %143  ;;  %v172_v51 = vsel %vm171_vm2, %v170_v37, %v165_v47  ;;  %v7837_v37 = vpack.c.bf16 %v704_v33, %v701_v32  ;;  %v778_v46 = vand.u32 4294901760, %v777_v40 }
  0xe9   :  { %v132_v44 = vpop.xlane.xlu0 %131  ;;  %v197_v48 = vrot.slane %v144_v43, %v7781_v35  ;;  %v784_v41 = vsub.f32 %v782_v22, %v783_v36  ;;  %v789_v43 = vsub.f32 %v119_v24, %v701_v32 }
  0xea   :  { %v177_v49 = vrot.slane %v132_v44, %v7781_v35  ;;  %v796_v44 = vsub.f32 %v120_v31, %v704_v33  ;;  %6873 = vmatpush3.bf16.msra.mxu1 %v7837_v37 }
  0xeb   :  { %v198_v52 = vsel %vm178_vm3, %v197_v48, %v193_v50  ;;  %v785_v47 = vand.u32 4294901760, %v784_v41  ;;  %v790_v48 = vand.u32 4294901760, %v789_v43  ;;  %6874 = vmatprep.subr.bf16.mxu1 %v9955_v38 }
  0xec   :  { %v179_v53 = vsel %vm178_vm3, %v177_v49, %v172_v51  ;;  %v797_v49 = vand.u32 4294901760, %v796_v44 }
  0xed   :  { %v200_v54 = vsel %vm199_vm4, %v198_v52, %v179_v53  ;;  %v7841_v50 = vpack.c.bf16 %v785_v47, %v778_v46  ;;  %v791_v51 = vsub.f32 %v789_v43, %v790_v48 }
  0xee   :  { %v202_v55 = vsel %vm201_vm5, %v200_v54, 0  ;;  %v798_v52 = vsub.f32 %v796_v44, %v797_v49 }
  0xef   :  { %v273_v56 = vand.u32 4294901760, %v202_v55  ;;  %v792_v53 = vand.u32 4294901760, %v791_v51 }
  0xf0   :  { %v799_v54 = vand.u32 4294901760, %v798_v52 }
  0xf1   :  { %v274_v57 = vsub.f32 %v202_v55, %v273_v56 }
  0xf2   :  { %v7843_v55 = vpack.c.bf16 %v799_v54, %v792_v53 }
  0xf3   :  { %v275_v59 = vand.u32 4294901760, %v274_v57 }
  0xf5   :  { %v276_v60 = vsub.f32 %v274_v57, %v275_v59 }
  0xf7   :  { %v277_v2 = vand.u32 4294901760, %v276_v60  ;;  %v7851_v60 = vpack.c.bf16 %v797_v49, %v790_v48 }
  0xf9   :  { %6441 = vmatmul.mubr.f32.vlgmr.msra.gmra.mrb[0].mxu0 %v277_v2 }
  0xfa   :  { %6840 = vmatpush3.bf16.msra.mxu0 %v7755_v58  ;;  %6451 = vmatprep.mubr.msk.f32.mxu0 %vm7566_vm0, %v9957_v42 }
  0xfb   :  { %6841 = vmatprep.subr.bf16.mxu0 %v9955_v38 }
  0xfe   :  { %6843 = vmatpush3.bf16.msra.mxu0 %v7757_v61 }
  0xff   :  { %6844 = vmatprep.subr.bf16.mxu0 %v9955_v38 }
 0x101   :  { %6452 = vmatmul.mubr.f32.vlgmr.msra.gmra.mrb[0].mxu0 %v273_v56 }
 0x102   :  { %6846 = vmatpush3.bf16.msra.mxu0 %v7759_v62  ;;  %6462 = vmatprep.mubr.msk.f32.mxu0 %vm7566_vm0, %v9957_v42 }
 0x103   :  { %6847 = vmatprep.subr.bf16.mxu0 %v9955_v38 }
 0x106   :  { %6849 = vmatpush3.bf16.msra.mxu0 %v7761_v63 }
 0x107   :  { %6850 = vmatprep.subr.bf16.mxu0 %v9955_v38 }
 0x109   :  { %6463 = vmatmul.mubr.f32.vlgmr.msra.gmra.mrb[0].mxu0 %v274_v57  ;;  %v7847_v57 = vpack.c.bf16 %v796_v44, %v789_v43 }
 0x10a   :  { %6852 = vmatpush3.bf16.msra.mxu0 %v7742_v39  ;;  %6473 = vmatprep.mubr.msk.f32.mxu0 %vm7566_vm0, %v9957_v42 }
 0x10b   :  { %6853 = vmatprep.subr.bf16.mxu0 %v9955_v38 }
 0x10e   :  { %6855 = vmatpush3.bf16.msra.mxu0 %v7750_v45 }
 0x10f   :  { %6856 = vmatprep.subr.bf16.mxu0 %v9955_v38 }
 0x111   :  { %6474 = vmatmul.mubr.f32.vlgmr.msra.gmra.mrb[0].mxu0 %v275_v59  ;;  %v7849_v59 = vpack.c.bf16 %v783_v36, %v776_v34  ;;  %v9953_v36 = vsub.s32 1, %v7767_v18 }
 0x112   :  { %6858 = vmatpush3.bf16.msra.mxu0 %v7763_v0  ;;  %6484 = vmatprep.mubr.msk.f32.mxu0 %vm7566_vm0, %v9957_v42 }
 0x113   :  { %6859 = vmatprep.subr.bf16.mxu0 %v9955_v38 }
 0x116   :  { %6861 = vmatpush3.bf16.msra.mxu0 %v7765_v1 }
 0x117   :  { %6862 = vmatprep.subr.bf16.mxu0 %v9955_v38 }
 0x119   :  { %6485 = vmatmul.mubr.f32.vlgmr.msra.gmra.mrb[0].mxu0 %v273_v56 }
 0x11a   :  { %6864 = vmatpush3.bf16.msra.mxu0 %v7742_v39  ;;  %6495 = vmatprep.mubr.msk.f32.mxu0 %vm7566_vm0, %v9957_v42 }
 0x11b   :  { %6865 = vmatprep.subr.bf16.mxu0 %v9955_v38 }
 0x11e   :  { %6867 = vmatpush3.bf16.msra.mxu0 %v7750_v45 }
 0x11f   :  { %6904 = vmatprep.subr.bf16.mxu0 %v9955_v38 }
 0x121   :  { %6496 = vmatmul.mubr.f32.vlgmr.msra.gmra.mrb[0].mxu0 %v273_v56  ;;  %v7845_v56 = vpack.c.bf16 %v782_v22, %v775_v19  ;;  %v9954_v19 = vsub.s32 0, %v7767_v18 }
 0x122   :  { %6906 = vmatpush3.bf16.msra.mxu0 %v7742_v39  ;;  %6572 = vmatprep.mubr.msk.f32.mxu0 %vm7566_vm0, %v9957_v42 }
 0x123   :  { %6907 = vmatprep.subr.bf16.mxu0 %v9955_v38 }
 0x126   :  { %6909 = vmatpush3.bf16.msra.mxu0 %v7750_v45 }
 0x127   :  { %6910 = vmatprep.subr.bf16.mxu0 %v9955_v38 }
 0x1f4   :  { %v685_v2 = vpop.f32.mrb[0].mxu0 }
 0x1f5   :  { %v690_v7 = vmul.f32 0.00390625, %v685_v2  ;;  %v6497_v8 = vpop.f32.mrb[1].mxu0 }
 0x1f7   :  { %v692_v13 = vsel %vm201_vm5, %v690_v7, 0 }
 0x1f8   :  { %v763_v14 = vand.u32 4294901760, %v692_v13 }
 0x1fa   :  { %v764_v24 = vsub.f32 %v692_v13, %v763_v14 }
 0x1fc   :  { %v765_v31 = vand.u32 4294901760, %v764_v24 }
 0x1fe   :  { %v766_v32 = vsub.f32 %v764_v24, %v765_v31 }
 0x200   :  { %v767_v33 = vand.u32 4294901760, %v766_v32 }
 0x202   :  { %6507 = vmatmul.mubr.f32.vlgmr.msra.gmra.mrb[0].mxu1 %v767_v33 }
 0x203   :  { %6876 = vmatpush3.bf16.msra.mxu1 %v7841_v50  ;;  %6517 = vmatprep.mubr.msk.f32.mxu1 %vm7566_vm0, %v9957_v42 }
 0x204   :  { %6877 = vmatprep.subr.bf16.mxu1 %v9955_v38 }
 0x207   :  { %6879 = vmatpush3.bf16.msra.mxu1 %v7843_v55 }
 0x208   :  { %6880 = vmatprep.subr.bf16.mxu1 %v9955_v38 }
 0x20a   :  { %6518 = vmatmul.mubr.f32.vlgmr.msra.gmra.mrb[0].mxu1 %v763_v14 }
 0x20b   :  { %6882 = vmatpush3.bf16.msra.mxu1 %v7845_v56  ;;  %6528 = vmatprep.mubr.msk.f32.mxu1 %vm7566_vm0, %v9957_v42 }
 0x20c   :  { %6883 = vmatprep.subr.bf16.mxu1 %v9955_v38 }
 0x20f   :  { %6885 = vmatpush3.bf16.msra.mxu1 %v7847_v57 }
 0x210   :  { %6886 = vmatprep.subr.bf16.mxu1 %v9955_v38 }
 0x212   :  { %6529 = vmatmul.mubr.f32.vlgmr.msra.gmra.mrb[0].mxu1 %v764_v24 }
 0x213   :  { %6888 = vmatpush3.bf16.msra.mxu1 %v7833_v15  ;;  %6539 = vmatprep.mubr.msk.f32.mxu1 %vm7566_vm0, %v9957_v42 }
 0x214   :  { %6889 = vmatprep.subr.bf16.mxu1 %v9955_v38 }
 0x217   :  { %6891 = vmatpush3.bf16.msra.mxu1 %v7837_v37 }
 0x218   :  { %6892 = vmatprep.subr.bf16.mxu1 %v9955_v38 }
 0x21a   :  { %6540 = vmatmul.mubr.f32.vlgmr.msra.gmra.mrb[0].mxu1 %v765_v31 }
 0x21b   :  { %6894 = vmatpush3.bf16.msra.mxu1 %v7849_v59  ;;  %6550 = vmatprep.mubr.msk.f32.mxu1 %vm7566_vm0, %v9957_v42 }
 0x21c   :  { %6895 = vmatprep.subr.bf16.mxu1 %v9955_v38 }
 0x21f   :  { %6897 = vmatpush3.bf16.msra.mxu1 %v7851_v60 }
 0x220   :  { %6898 = vmatprep.subr.bf16.mxu1 %v9955_v38 }
 0x222   :  { %6551 = vmatmul.mubr.f32.vlgmr.msra.gmra.mrb[0].mxu1 %v763_v14 }
 0x223   :  { %6900 = vmatpush3.bf16.msra.mxu1 %v7833_v15  ;;  %6561 = vmatprep.mubr.msk.f32.mxu1 %vm7566_vm0, %v9957_v42 }
 0x224   :  { %6901 = vmatprep.subr.bf16.mxu1 %v9955_v38 }
 0x227   :  { %6903 = vmatpush3.bf16.msra.mxu1 %v7837_v37 }
 0x228   :  { %6940 = vmatprep.subr.bf16.mxu1 %v9955_v38 }
 0x22a   :  { %6562 = vmatmul.mubr.f32.vlgmr.msra.gmra.mrb[0].mxu1 %v763_v14 }
 0x22b   :  { %6942 = vmatpush3.bf16.msra.mxu1 %v7833_v15  ;;  %6638 = vmatprep.mubr.msk.f32.mxu1 %vm7566_vm0, %v9957_v42 }
 0x22c   :  { %6943 = vmatprep.subr.bf16.mxu1 %v9955_v38 }
 0x22f   :  { %6945 = vmatpush3.bf16.msra.mxu1 %v7837_v37 }
 0x230   :  { %6946 = vmatprep.subr.bf16.mxu1 %v9955_v38 }
 0x2fd   :  { %v1175_v22 = vpop.f32.mrb[0].mxu1 }
 0x2fe   :  { %v1182_v34 = vrot.slane %v1175_v22, %v9954_v19  ;;  %v6563_v40 = vpop.f32.mrb[1].mxu1  ;;  %v1201_v41 = vrot.slane %v1175_v22, %v9953_v36 }
 0x300   :  { %1188 = vbcast.lane.b32.xlu1 %v1182_v34, 264  ;;  %1184 = vbcast.lane.b32.xlu0 %v1182_v34, 256 }
 0x304   :  { %1203 = vbcast.lane.b32.xlu1 %v1201_v41, 256  ;;  %1192 = vbcast.lane.b32.xlu0 %v1182_v34, 272 }
 0x308   :  { %1207 = vbcast.lane.b32.xlu1 %v1201_v41, 264  ;;  %1196 = vbcast.lane.b32.xlu0 %v1182_v34, 280 }
 0x30c   :  { %1211 = vbcast.lane.b32.xlu1 %v1201_v41, 272 }
 0x310   :  { %1215 = vbcast.lane.b32.xlu1 %v1201_v41, 280 }
 0x372   :  { %v1189_v43 = vpop.permute.xlu1 %1188  ;;  %v1185_v44 = vpop.permute.xlu0 %1184 }
 0x373   :  { %v7897_v46 = vsub.f32 %v7705_v11, %v1189_v43  ;;  %v7900_v47 = vsub.f32 %v7707_v12, %v1189_v43  ;;  %v7903_v48 = vsub.f32 %v7697_v5, %v1185_v44  ;;  %v7906_v49 = vsub.f32 %v7699_v6, %v1185_v44 }
 0x375   :  { %v1235_v51 = vmul.f32 %v7897_v46, %v7897_v46  ;;  %v1236_v52 = vmul.f32 %v7900_v47, %v7900_v47  ;;  %v1233_v53 = vmul.f32 %v7903_v48, %v7903_v48  ;;  %v1234_v54 = vmul.f32 %v7906_v49, %v7906_v49 }
 0x376   :  { %v1204_v2 = vpop.permute.xlu1 %1203  ;;  %v1193_v13 = vpop.permute.xlu0 %1192 }
 0x377   :  { %v7917_v7 = vsub.f32 %v7693_v3, %v1204_v2  ;;  %v7920_v8 = vsub.f32 %v7695_v4, %v1204_v2  ;;  %v1252_v14 = vadd.f32 %v1236_v52, %v1235_v51  ;;  %v1249_v24 = vadd.f32 %v1234_v54, %v1233_v53 }
 0x378   :  { %v7933_v40 = vsub.f32 %v7721_v20, %v1193_v13  ;;  %v7936_v41 = vsub.f32 %v7723_v21, %v1193_v13 }
 0x379   :  { %v1241_v31 = vmul.f32 %v7917_v7, %v7917_v7  ;;  %v1242_v32 = vmul.f32 %v7920_v8, %v7920_v8  ;;  %1253 = vadd.xlane.f32.xlu1 %v1252_v14  ;;  %1250 = vadd.xlane.f32.xlu0 %v1249_v24 }
 0x37a   :  { %v1208_v33 = vpop.permute.xlu1 %1207  ;;  %v1197_v44 = vpop.permute.xlu0 %1196 }
 0x37b   :  { %v7927_v22 = vsub.f32 %v7701_v9, %v1208_v33  ;;  %v7930_v34 = vsub.f32 %v7703_v10, %v1208_v33  ;;  %v1261_v43 = vadd.f32 %v1242_v32, %v1241_v31  ;;  %v7949_v13 = vsub.f32 %v7733_v28, %v1197_v44 }
 0x37c   :  { %v7952_v24 = vsub.f32 %v7735_v29, %v1197_v44  ;;  %v1237_v31 = vmul.f32 %v7933_v40, %v7933_v40  ;;  %v1238_v32 = vmul.f32 %v7936_v41, %v7936_v41 }
 0x37d   :  { %v1243_v51 = vmul.f32 %v7927_v22, %v7927_v22  ;;  %v1244_v52 = vmul.f32 %v7930_v34, %v7930_v34  ;;  %1262 = vadd.xlane.f32.xlu0 %v1261_v43  ;;  %v1239_v19 = vmul.f32 %v7949_v13, %v7949_v13 }
 0x37e   :  { %v1212_v53 = vpop.permute.xlu1 %1211  ;;  %v1255_v36 = vadd.f32 %v1238_v32, %v1237_v31  ;;  %v1240_v38 = vmul.f32 %v7952_v24, %v7952_v24 }
 0x37f   :  { %v7943_v54 = vsub.f32 %v7713_v16, %v1212_v53  ;;  %v7946_v2 = vsub.f32 %v7715_v17, %v1212_v53  ;;  %v1264_v14 = vadd.f32 %v1244_v52, %v1243_v51 }
 0x380   :  { %v1258_v17 = vadd.f32 %v1240_v38, %v1239_v19 }
 0x381   :  { %v1245_v33 = vmul.f32 %v7943_v54, %v7943_v54  ;;  %v1246_v43 = vmul.f32 %v7946_v2, %v7946_v2  ;;  %1265 = vadd.xlane.f32.xlu0 %v1264_v14 }
 0x382   :  { %v1216_v51 = vpop.permute.xlu1 %1215 }
 0x383   :  { %v7963_v52 = vsub.f32 %v7727_v25, %v1216_v51  ;;  %v7966_v44 = vsub.f32 %v7731_v27, %v1216_v51  ;;  %v1267_v53 = vadd.f32 %v1246_v43, %v1245_v33 }
 0x385   :  { %1268 = vadd.xlane.f32.xlu1 %v1267_v53  ;;  %v1247_v42 = vmul.f32 %v7963_v52, %v7963_v52  ;;  %v1248_v14 = vmul.f32 %v7966_v44, %v7966_v44  ;;  %1256 = vadd.xlane.f32.xlu0 %v1255_v36 }
 0x387   :  { %v1270_v25 = vadd.f32 %v1248_v14, %v1247_v42 }
 0x389   :  { %1271 = vadd.xlane.f32.xlu1 %v1270_v25  ;;  %1259 = vadd.xlane.f32.xlu0 %v1258_v17 }
 0x406   :  { %v1251_v33 = vpop.xlane.xlu0 %1250  ;;  %v1254_v32 = vpop.xlane.xlu1 %1253 }
 0x407   :  { %v1288_v53 = vrot.slane %v1254_v32, %v7770_v23  ;;  %v1284_v10 = vrot.slane %v1251_v33, %v7776_v30 }
 0x409   :  { %v1289_v14 = vsel %vm164_vm1, %v1288_v53, %v1284_v10  ;;  %v10085_v10 = vmov 0.0|0.0  }
 0x40a   :  { %v1263_v31 = vpop.xlane.xlu0 %1262 }
 0x40b   :  { %v1303_v36 = vrot.slane %v1263_v31, %v7776_v30 }
 0x40e   :  { %v1266_v43 = vpop.xlane.xlu0 %1265 }
 0x40f   :  { %v1307_v27 = vrot.slane %v1266_v43, %v7770_v23 }
 0x411   :  { %v1308_v17 = vsel %vm164_vm1, %v1307_v27, %v1303_v36 }
 0x412   :  { %v1269_v51 = vpop.xlane.xlu1 %1268  ;;  %v1257_v16 = vpop.xlane.xlu0 %1256 }
 0x413   :  { %v1312_v9 = vrot.slane %v1269_v51, %v7773_v26  ;;  %v1293_v38 = vrot.slane %v1257_v16, %v7773_v26 }
 0x415   :  { %v1313_v43 = vsel %vm171_vm2, %v1312_v9, %v1308_v17  ;;  %v1294_v33 = vsel %vm171_vm2, %v1293_v38, %v1289_v14  ;;  %v10084_v9 = vmov 0.0   ;;  %v10087_v17 = vsub.s32 1, %v7767_v18 }
 0x416   :  { %v1272_v25 = vpop.xlane.xlu1 %1271  ;;  %v1260_v19 = vpop.xlane.xlu0 %1259 }
 0x417   :  { %v1317_v42 = vrot.slane %v1272_v25, %v7781_v35  ;;  %v1298_v23 = vrot.slane %v1260_v19, %v7781_v35 }
 0x419   :  { %v1318_v32 = vsel %vm178_vm3, %v1317_v42, %v1313_v43  ;;  %v1299_v30 = vsel %vm178_vm3, %v1298_v23, %v1294_v33 }
 0x41a   :  { %v1319_v16 = vsel %vm199_vm4, %v1318_v32, %v1299_v30 }
 0x41b   :  { %v1320_v26 = vsel %vm201_vm5, %v1319_v16, 0 }
 0x41c   :  { %v1391_v27 = vand.u32 4294901760, %v1320_v26 }
 0x41e   :  { %v1392_v31 = vsub.f32 %v1320_v26, %v1391_v27 }
 0x420   :  { %v1393_v51 = vand.u32 4294901760, %v1392_v31 }
 0x422   :  { %v1394_v36 = vsub.f32 %v1392_v31, %v1393_v51 }
 0x424   :  { %v1395_v25 = vand.u32 4294901760, %v1394_v36 }
 0x426   :  { %6573 = vmatmul.mubr.f32.vlgmr.msra.gmra.mrb[2].mxu0 %v1395_v25 }
 0x427   :  { %6912 = vmatpush3.bf16.msra.mxu0 %v7755_v58  ;;  %6583 = vmatprep.mubr.msk.f32.mxu0 %vm7566_vm0, %v10084_v9 }
 0x428   :  { %6913 = vmatprep.subr.bf16.mxu0 %v10085_v10 }
 0x42b   :  { %6915 = vmatpush3.bf16.msra.mxu0 %v7757_v61 }
 0x42c   :  { %6916 = vmatprep.subr.bf16.mxu0 %v10085_v10 }
 0x42e   :  { %6584 = vmatmul.mubr.f32.vlgmr.msra.gmra.mrb[2].mxu0 %v1391_v27 }
 0x42f   :  { %6918 = vmatpush3.bf16.msra.mxu0 %v7759_v62  ;;  %6594 = vmatprep.mubr.msk.f32.mxu0 %vm7566_vm0, %v10084_v9 }
 0x430   :  { %6919 = vmatprep.subr.bf16.mxu0 %v10085_v10 }
 0x433   :  { %6921 = vmatpush3.bf16.msra.mxu0 %v7761_v63 }
 0x434   :  { %6922 = vmatprep.subr.bf16.mxu0 %v10085_v10 }
 0x436   :  { %6595 = vmatmul.mubr.f32.vlgmr.msra.gmra.mrb[2].mxu0 %v1392_v31 }
 0x437   :  { %6924 = vmatpush3.bf16.msra.mxu0 %v7742_v39  ;;  %6605 = vmatprep.mubr.msk.f32.mxu0 %vm7566_vm0, %v10084_v9 }
 0x438   :  { %6925 = vmatprep.subr.bf16.mxu0 %v10085_v10 }
 0x43b   :  { %6927 = vmatpush3.bf16.msra.mxu0 %v7750_v45 }
 0x43c   :  { %6928 = vmatprep.subr.bf16.mxu0 %v10085_v10 }
 0x43e   :  { %6606 = vmatmul.mubr.f32.vlgmr.msra.gmra.mrb[2].mxu0 %v1393_v51 }
 0x43f   :  { %6930 = vmatpush3.bf16.msra.mxu0 %v7763_v0  ;;  %6616 = vmatprep.mubr.msk.f32.mxu0 %vm7566_vm0, %v10084_v9 }
 0x440   :  { %6931 = vmatprep.subr.bf16.mxu0 %v10085_v10 }
 0x443   :  { %6933 = vmatpush3.bf16.msra.mxu0 %v7765_v1 }
 0x444   :  { %6934 = vmatprep.subr.bf16.mxu0 %v10085_v10 }
 0x446   :  { %6617 = vmatmul.mubr.f32.vlgmr.msra.gmra.mrb[2].mxu0 %v1391_v27 }
 0x447   :  { %6936 = vmatpush3.bf16.msra.mxu0 %v7742_v39  ;;  %6627 = vmatprep.mubr.msk.f32.mxu0 %vm7566_vm0, %v10084_v9  ;;  %v5805_v39 = vld [vmem:[%s9945_s2] ss:$0 sm:$0xff] }
 0x448   :  { %6937 = vmatprep.subr.bf16.mxu0 %v10085_v10  ;;  %2367 = vbcast.lane.b32.xlu1 %v5805_v39, 256 }
 0x44b   :  { %6939 = vmatpush3.bf16.msra.mxu0 %v7750_v45 }
 0x44e   :  { %6628 = vmatmul.mubr.f32.vlgmr.msra.gmra.mrb[2].mxu0 %v1391_v27 }
 0x4ba   :  { %v2368_v19 = vpop.permute.xlu1 %2367 }
 0x521   :  { %v1803_v58 = vpop.f32.mrb[2].mxu0 }
 0x522   :  { %v1807_v61 = vmul.f32 0.00390625, %v1803_v58  ;;  %v6629_v62 = vpop.f32.mrb[3].mxu0 }
 0x524   :  { %v1809_v63 = vsel %vm201_vm5, %v1807_v61, 0 }
 0x525   :  { %v1880_v0 = vand.u32 4294901760, %v1809_v63 }
 0x527   :  { %v1881_v1 = vsub.f32 %v1809_v63, %v1880_v0 }
 0x529   :  { %v1882_v35 = vand.u32 4294901760, %v1881_v1 }
 0x52b   :  { %v1883_v53 = vsub.f32 %v1881_v1, %v1882_v35 }
 0x52d   :  { %v1884_v38 = vand.u32 4294901760, %v1883_v53 }
 0x52f   :  { %6639 = vmatmul.mubr.f32.vlgmr.msra.gmra.mrb[2].mxu1 %v1884_v38 }
 0x530   :  { %6948 = vmatpush3.bf16.msra.mxu1 %v7841_v50  ;;  %6649 = vmatprep.mubr.msk.f32.mxu1 %vm7566_vm0, %v10084_v9 }
 0x531   :  { %6949 = vmatprep.subr.bf16.mxu1 %v10085_v10 }
 0x534   :  { %6951 = vmatpush3.bf16.msra.mxu1 %v7843_v55 }
 0x535   :  { %6952 = vmatprep.subr.bf16.mxu1 %v10085_v10 }
 0x537   :  { %6650 = vmatmul.mubr.f32.vlgmr.msra.gmra.mrb[2].mxu1 %v1880_v0 }
 0x538   :  { %6954 = vmatpush3.bf16.msra.mxu1 %v7845_v56  ;;  %6660 = vmatprep.mubr.msk.f32.mxu1 %vm7566_vm0, %v10084_v9 }
 0x539   :  { %6955 = vmatprep.subr.bf16.mxu1 %v10085_v10 }
 0x53c   :  { %6957 = vmatpush3.bf16.msra.mxu1 %v7847_v57 }
 0x53d   :  { %6958 = vmatprep.subr.bf16.mxu1 %v10085_v10 }
 0x53f   :  { %6661 = vmatmul.mubr.f32.vlgmr.msra.gmra.mrb[2].mxu1 %v1881_v1 }
 0x540   :  { %6960 = vmatpush3.bf16.msra.mxu1 %v7833_v15  ;;  %6671 = vmatprep.mubr.msk.f32.mxu1 %vm7566_vm0, %v10084_v9 }
 0x541   :  { %6961 = vmatprep.subr.bf16.mxu1 %v10085_v10 }
 0x544   :  { %6963 = vmatpush3.bf16.msra.mxu1 %v7837_v37 }
 0x545   :  { %6964 = vmatprep.subr.bf16.mxu1 %v10085_v10 }
 0x547   :  { %6672 = vmatmul.mubr.f32.vlgmr.msra.gmra.mrb[2].mxu1 %v1882_v35 }
 0x548   :  { %6966 = vmatpush3.bf16.msra.mxu1 %v7849_v59  ;;  %6682 = vmatprep.mubr.msk.f32.mxu1 %vm7566_vm0, %v10084_v9 }
 0x549   :  { %6967 = vmatprep.subr.bf16.mxu1 %v10085_v10 }
 0x54c   :  { %6969 = vmatpush3.bf16.msra.mxu1 %v7851_v60  ;;  %v10086_v60 = vsub.s32 0, %v7767_v18 }
 0x54d   :  { %6970 = vmatprep.subr.bf16.mxu1 %v10085_v10 }
 0x54f   :  { %6683 = vmatmul.mubr.f32.vlgmr.msra.gmra.mrb[2].mxu1 %v1880_v0 }
 0x550   :  { %6972 = vmatpush3.bf16.msra.mxu1 %v7833_v15  ;;  %6693 = vmatprep.mubr.msk.f32.mxu1 %vm7566_vm0, %v10084_v9  ;;  %v5804_v15 = vld [vmem:[%s9944_s1] ss:$0 sm:$0xff] }
 0x551   :  { %6973 = vmatprep.subr.bf16.mxu1 %v10085_v10 }
 0x554   :  { %6975 = vmatpush3.bf16.msra.mxu1 %v7837_v37 }
 0x557   :  { %6694 = vmatmul.mubr.f32.vlgmr.msra.gmra.mrb[2].mxu1 %v1880_v0 }
 0x62a   :  { %v2292_v45 = vpop.f32.mrb[2].mxu1 }
 0x62b   :  { %v2296_v50 = vmax.f32 %v2292_v45, 0.0  ;;  %v6695_v55 = vpop.f32.mrb[3].mxu1 }
 0x62d   :  { %v2298_v56 = vadd.f32 1e-06, %v2296_v50 }
 0x62f   :  { %7053 = vrsqrt.f32 %v2298_v56 }
 0x639   :  { %v7054_v57 = vpop.eup %7053 }
 0x63a   :  { %v2306_v59 = vmul.f32 %v7054_v57, %v5804_v15 }
 0x63c   :  { %v2310_v37 = vrot.slane %v2306_v59, %v10086_v60  ;;  %v2329_v42 = vrot.slane %v2306_v59, %v10087_v17 }
 0x63e   :  { %2316 = vbcast.lane.b32.xlu1 %v2310_v37, 264  ;;  %2312 = vbcast.lane.b32.xlu0 %v2310_v37, 256 }
 0x642   :  { %2320 = vbcast.lane.b32.xlu1 %v2310_v37, 272  ;;  %2371 = vbcast.lane.b32.xlu0 %v5805_v39, 264 }
 0x646   :  { %2324 = vbcast.lane.b32.xlu1 %v2310_v37, 280  ;;  %2375 = vbcast.lane.b32.xlu0 %v5805_v39, 272 }
 0x64a   :  { %2379 = vbcast.lane.b32.xlu1 %v5805_v39, 280  ;;  %2331 = vbcast.lane.b32.xlu0 %v2329_v42, 256 }
 0x64e   :  { %2335 = vbcast.lane.b32.xlu1 %v2329_v42, 264  ;;  %2339 = vbcast.lane.b32.xlu0 %v2329_v42, 272 }
 0x652   :  { %2343 = vbcast.lane.b32.xlu0 %v2329_v42, 280 }
 0x6b0   :  { %v2317_v14 = vpop.permute.xlu1 %2316  ;;  %v2313_v43 = vpop.permute.xlu0 %2312 }
 0x6b1   :  { %v2346_v23 = vmul.f32 %v2313_v43, %v7906_v49  ;;  %v2345_v33 = vmul.f32 %v2313_v43, %v7903_v48  ;;  %v2347_v27 = vmul.f32 %v2317_v14, %v7897_v46  ;;  %v2348_v18 = vmul.f32 %v2317_v14, %v7900_v47  ;;  %v7049_v46 = vld [vmem:[%s9948_s5] sm:$0xff]  }
 0x6b2   :  { %6696 = vmatprep.subr.bf16.mxu0 %v7049_v46 }
 0x6b3   :  { %v2382_v32 = vadd.f32 %v2368_v19, %v2346_v23  ;;  %v2381_v30 = vadd.f32 %v2368_v19, %v2345_v33  ;;  %6697 = vmatpush3.bf16.msra.mxu0 %v7049_v46 }
 0x6b4   :  { %v2321_v16 = vpop.permute.xlu1 %2320  ;;  %v2372_v26 = vpop.permute.xlu0 %2371 }
 0x6b5   :  { %2429 = vxpose.xlu0.b32.start [1/4] (short) %v2382_v32, 128  ;;  %2397 = vxpose.xlu1.b32.start [1/4] (short) %v2381_v30, 128  ;;  %v2384_v31 = vadd.f32 %v2372_v26, %v2348_v18  ;;  %v2383_v51 = vadd.f32 %v2372_v26, %v2347_v27  ;;  %v2349_v9 = vmul.f32 %v2321_v16, %v7933_v40  ;;  %v7050_v40 = vld [vmem:[%s9948_s5 + $0x8] sm:$0xff]  }
 0x6b6   :  { %v2350_v49 = vmul.f32 %v2321_v16, %v7936_v41  ;;  %6698 = vmatprep.subr.bf16.mxu0 %v7050_v40 }
 0x6b7   :  { %6699 = vmatpush3.bf16.msra.mxu0 %v7050_v40 }
 0x6b8   :  { %v2325_v36 = vpop.permute.xlu1 %2324  ;;  %v2376_v25 = vpop.permute.xlu0 %2375 }
 0x6b9   :  { %2430 = vxpose.xlu0.b32.cont [2/4] (short) %v2384_v31, 128  ;;  %2398 = vxpose.xlu1.b32.cont [2/4] (short) %v2383_v51, 128  ;;  %v2386_v48 = vadd.f32 %v2376_v25, %v2350_v49  ;;  %v2385_v10 = vadd.f32 %v2376_v25, %v2349_v9  ;;  %v2352_v47 = vmul.f32 %v2325_v36, %v7952_v24 }
 0x6ba   :  { %v2351_v61 = vmul.f32 %v2325_v36, %v7949_v13 }
 0x6bc   :  { %v2380_v58 = vpop.permute.xlu1 %2379  ;;  %v2332_v63 = vpop.permute.xlu0 %2331 }
 0x6bd   :  { %2431 = vxpose.xlu0.b32.cont [3/4] (short) %v2386_v48, 128  ;;  %2399 = vxpose.xlu1.b32.cont [3/4] (short) %v2385_v10, 128  ;;  %v2388_v41 = vadd.f32 %v2380_v58, %v2352_v47  ;;  %v2387_v62 = vadd.f32 %v2380_v58, %v2351_v61  ;;  %v2353_v0 = vmul.f32 %v2332_v63, %v7917_v7 }
 0x6be   :  { %v2354_v24 = vmul.f32 %v2332_v63, %v7920_v8 }
 0x6bf   :  { %v2389_v53 = vadd.f32 %v2368_v19, %v2353_v0 }
 0x6c0   :  { %v2336_v1 = vpop.permute.xlu1 %2335  ;;  %v2340_v35 = vpop.permute.xlu0 %2339  ;;  %v2390_v39 = vadd.f32 %v2368_v19, %v2354_v24 }
 0x6c1   :  { %2432 = vxpose.xlu0.b32.end [4/4] (short) %v2388_v41, 128  ;;  %2400 = vxpose.xlu1.b32.end [4/4] (short) %v2387_v62, 128  ;;  %v2355_v13 = vmul.f32 %v2336_v1, %v7927_v22  ;;  %v2356_v38 = vmul.f32 %v2336_v1, %v7930_v34  ;;  %v2357_v45 = vmul.f32 %v2340_v35, %v7943_v54 }
 0x6c2   :  { %v2358_v55 = vmul.f32 %v2340_v35, %v7946_v2 }
 0x6c3   :  { %v2391_v50 = vadd.f32 %v2372_v26, %v2355_v13  ;;  %v2392_v15 = vadd.f32 %v2372_v26, %v2356_v38  ;;  %v2393_v8 = vadd.f32 %v2376_v25, %v2357_v45 }
 0x6c4   :  { %v2344_v56 = vpop.permute.xlu0 %2343  ;;  %v2394_v57 = vadd.f32 %v2376_v25, %v2358_v55 }
 0x6c5   :  { %v2359_v7 = vmul.f32 %v2344_v56, %v7963_v52  ;;  %v2360_v22 = vmul.f32 %v2344_v56, %v7966_v44 }
 0x6c7   :  { %v2395_v34 = vadd.f32 %v2380_v58, %v2359_v7  ;;  %v2396_v59 = vadd.f32 %v2380_v58, %v2360_v22 }
 0x6f2   :  { %2461 = vxpose.xlu0.b32.start [1/4] (short) %v2389_v53, 128  ;;  %2493 = vxpose.xlu1.b32.start [1/4] (short) %v2390_v39, 128 }
 0x6f6   :  { %2462 = vxpose.xlu0.b32.cont [2/4] (short) %v2391_v50, 128  ;;  %2494 = vxpose.xlu1.b32.cont [2/4] (short) %v2392_v15, 128 }
 0x6fa   :  { %2463 = vxpose.xlu0.b32.cont [3/4] (short) %v2393_v8, 128  ;;  %2495 = vxpose.xlu1.b32.cont [3/4] (short) %v2394_v57, 128 }
 0x6fe   :  { %2464 = vxpose.xlu0.b32.end [4/4] (short) %v2395_v34, 128  ;;  %2496 = vxpose.xlu1.b32.end [4/4] (short) %v2396_v59, 128 }
 0x735   :  { %v2445_v54 = vpop.trf.xlu0  ;;  %v2413_v60 = vpop.trf.xlu1 }
 0x739   :  { %v2446_v37 = vpop.trf.xlu0  ;;  %v2414_v2 = vpop.trf.xlu1 }
 0x73a   :  { %v2525_v17 = vpack.c.bf16 %v2414_v2, %v2413_v60  ;;  %v2533_v53 = vpack.c.bf16 %v2446_v37, %v2445_v54 }
 0x73c   :  { %6700 = vmatprep.mubr.msk.bf16.mxu0 %vm201_vm5, %v2525_v17 }
 0x73d   :  { %v2447_v42 = vpop.trf.xlu0  ;;  %v2415_v19 = vpop.trf.xlu1 }
 0x741   :  { %v2448_v52 = vpop.trf.xlu0  ;;  %v2416_v14 = vpop.trf.xlu1 }
 0x742   :  { %v2526_v43 = vpack.c.bf16 %v2416_v14, %v2415_v19  ;;  %v2534_v55 = vpack.c.bf16 %v2448_v52, %v2447_v42 }
 0x744   :  { %6701 = vmatmul.mubr.msk.bf16.vlgmr.msra.gmra.mrb[4].mxu0 %vm201_vm5, %v2526_v43 }
 0x745   :  { %v2449_v44 = vpop.trf.xlu0  ;;  %v2417_v23 = vpop.trf.xlu1 }
 0x749   :  { %v2450_v33 = vpop.trf.xlu0  ;;  %v2418_v32 = vpop.trf.xlu1 }
 0x74a   :  { %v2527_v30 = vpack.c.bf16 %v2418_v32, %v2417_v23  ;;  %v2535_v56 = vpack.c.bf16 %v2450_v33, %v2449_v44 }
 0x74c   :  { %6704 = vmatprep.mubr.msk.bf16.mxu0 %vm201_vm5, %v2527_v30 }
 0x74d   :  { %v2451_v16 = vpop.trf.xlu0  ;;  %v2419_v26 = vpop.trf.xlu1 }
 0x751   :  { %v2452_v27 = vpop.trf.xlu0  ;;  %v2420_v18 = vpop.trf.xlu1 }
 0x752   :  { %v2528_v31 = vpack.c.bf16 %v2420_v18, %v2419_v26  ;;  %v2536_v22 = vpack.c.bf16 %v2452_v27, %v2451_v16 }
 0x754   :  { %6705 = vmatmul.mubr.msk.bf16.gmra.mrb[8].mxu0 %vm201_vm5, %v2528_v31 }
 0x755   :  { %v2453_v51 = vpop.trf.xlu0  ;;  %v2421_v36 = vpop.trf.xlu1 }
 0x759   :  { %v2454_v25 = vpop.trf.xlu0  ;;  %v2422_v9 = vpop.trf.xlu1 }
 0x75a   :  { %v2529_v49 = vpack.c.bf16 %v2422_v9, %v2421_v36  ;;  %v2537_v57 = vpack.c.bf16 %v2454_v25, %v2453_v51 }
 0x75c   :  { %6708 = vmatprep.mubr.msk.bf16.mxu0 %vm201_vm5, %v2529_v49 }
 0x75d   :  { %v2455_v48 = vpop.trf.xlu0  ;;  %v2423_v10 = vpop.trf.xlu1 }
 0x761   :  { %v2456_v46 = vpop.trf.xlu0  ;;  %v2424_v58 = vpop.trf.xlu1 }
 0x762   :  { %v2530_v47 = vpack.c.bf16 %v2424_v58, %v2423_v10  ;;  %v2538_v60 = vpack.c.bf16 %v2456_v46, %v2455_v48 }
 0x764   :  { %6709 = vmatmul.mubr.msk.bf16.gmra.mrb[12].mxu0 %vm201_vm5, %v2530_v47 }
 0x765   :  { %v2457_v61 = vpop.trf.xlu0  ;;  %v2425_v40 = vpop.trf.xlu1 }
 0x769   :  { %v2458_v41 = vpop.trf.xlu0  ;;  %v2426_v62 = vpop.trf.xlu1 }
 0x76a   :  { %v2531_v63 = vpack.c.bf16 %v2426_v62, %v2425_v40  ;;  %v2539_v37 = vpack.c.bf16 %v2458_v41, %v2457_v61 }
 0x76c   :  { %6712 = vmatprep.mubr.msk.bf16.mxu0 %vm201_vm5, %v2531_v63 }
 0x76d   :  { %v2459_v0 = vpop.trf.xlu0  ;;  %v2427_v24 = vpop.trf.xlu1 }
 0x771   :  { %v2460_v1 = vpop.trf.xlu0  ;;  %v2428_v35 = vpop.trf.xlu1 }
 0x772   :  { %v2532_v13 = vpack.c.bf16 %v2428_v35, %v2427_v24  ;;  %v2540_v52 = vpack.c.bf16 %v2460_v1, %v2459_v0 }
 0x774   :  { %6713 = vmatmul.mubr.msk.bf16.gmra.mrb[16].mxu0 %vm201_vm5, %v2532_v13 }
 0x775   :  { %v2477_v38 = vpop.trf.xlu0  ;;  %6716 = vmatprep.mubr.msk.bf16.mxu0 %vm201_vm5, %v2533_v53  ;;  %v2509_v39 = vpop.trf.xlu1 }
 0x779   :  { %v2478_v45 = vpop.trf.xlu0  ;;  %v2510_v50 = vpop.trf.xlu1 }
 0x77a   :  { %v2541_v14 = vpack.c.bf16 %v2478_v45, %v2477_v38  ;;  %v2549_v58 = vpack.c.bf16 %v2510_v50, %v2509_v39  ;;  %v8118_v39 = vld [vmem:[%s9949_s6] ss:$0 sm:$0xff]  ;;  %s7568_s6 = smov 96  }
 0x77c   :  { %6717 = vmatmul.mubr.msk.bf16.gmra.mrb[20].mxu0 %vm201_vm5, %v2534_v55 }
 0x77d   :  { %v2479_v15 = vpop.trf.xlu0  ;;  %6720 = vmatprep.mubr.msk.bf16.mxu0 %vm201_vm5, %v2535_v56  ;;  %v2511_v7 = vpop.trf.xlu1 }
 0x781   :  { %v2480_v8 = vpop.trf.xlu0  ;;  %v2512_v59 = vpop.trf.xlu1 }
 0x782   :  { %v2542_v32 = vpack.c.bf16 %v2480_v8, %v2479_v15  ;;  %v2550_v40 = vpack.c.bf16 %v2512_v59, %v2511_v7 }
 0x784   :  { %6721 = vmatmul.mubr.msk.bf16.gmra.mrb[24].mxu0 %vm201_vm5, %v2536_v22 }
 0x785   :  { %v2481_v34 = vpop.trf.xlu0  ;;  %6724 = vmatprep.mubr.msk.bf16.mxu0 %vm201_vm5, %v2537_v57  ;;  %v2513_v2 = vpop.trf.xlu1 }
 0x789   :  { %v2482_v54 = vpop.trf.xlu0  ;;  %v2514_v19 = vpop.trf.xlu1 }
 0x78a   :  { %v2543_v33 = vpack.c.bf16 %v2482_v54, %v2481_v34  ;;  %v2551_v41 = vpack.c.bf16 %v2514_v19, %v2513_v2 }
 0x78c   :  { %6725 = vmatmul.mubr.msk.bf16.gmra.mrb[28].mxu0 %vm201_vm5, %v2538_v60 }
 0x78d   :  { %v2483_v17 = vpop.trf.xlu0  ;;  %6728 = vmatprep.mubr.msk.bf16.mxu0 %vm201_vm5, %v2539_v37  ;;  %v2515_v44 = vpop.trf.xlu1 }
 0x791   :  { %v2484_v42 = vpop.trf.xlu0  ;;  %v2516_v16 = vpop.trf.xlu1 }
 0x792   :  { %v2544_v26 = vpack.c.bf16 %v2484_v42, %v2483_v17  ;;  %v2552_v63 = vpack.c.bf16 %v2516_v16, %v2515_v44 }
 0x794   :  { %6729 = vmatmul.mubr.msk.bf16.gmra.mrb[32].mxu0 %vm201_vm5, %v2540_v52 }
 0x795   :  { %v2485_v43 = vpop.trf.xlu0  ;;  %6732 = vmatprep.mubr.msk.bf16.mxu0 %vm201_vm5, %v2541_v14  ;;  %v2517_v31 = vpop.trf.xlu1 }
 0x799   :  { %v2486_v23 = vpop.trf.xlu0  ;;  %v2518_v49 = vpop.trf.xlu1 }
 0x79a   :  { %v2545_v18 = vpack.c.bf16 %v2486_v23, %v2485_v43  ;;  %v2553_v0 = vpack.c.bf16 %v2518_v49, %v2517_v31 }
 0x79c   :  { %6733 = vmatmul.mubr.msk.bf16.gmra.mrb[36].mxu0 %vm201_vm5, %v2542_v32 }
 0x79d   :  { %v2487_v30 = vpop.trf.xlu0  ;;  %6736 = vmatprep.mubr.msk.bf16.mxu0 %vm201_vm5, %v2543_v33  ;;  %v2519_v10 = vpop.trf.xlu1 }
 0x7a1   :  { %v2488_v27 = vpop.trf.xlu0  ;;  %v2520_v61 = vpop.trf.xlu1 }
 0x7a2   :  { %v2546_v36 = vpack.c.bf16 %v2488_v27, %v2487_v30  ;;  %v2554_v35 = vpack.c.bf16 %v2520_v61, %v2519_v10 }
 0x7a4   :  { %6737 = vmatmul.mubr.msk.bf16.gmra.mrb[40].mxu0 %vm201_vm5, %v2544_v26 }
 0x7a5   :  { %v2489_v51 = vpop.trf.xlu0  ;;  %6740 = vmatprep.mubr.msk.bf16.mxu0 %vm201_vm5, %v2545_v18  ;;  %v2521_v62 = vpop.trf.xlu1 }
 0x7a9   :  { %v2490_v25 = vpop.trf.xlu0  ;;  %v2522_v24 = vpop.trf.xlu1 }
 0x7aa   :  { %v2547_v9 = vpack.c.bf16 %v2490_v25, %v2489_v51  ;;  %v2555_v13 = vpack.c.bf16 %v2522_v24, %v2521_v62 }
 0x7ac   :  { %6741 = vmatmul.mubr.msk.bf16.gmra.mrb[44].mxu0 %vm201_vm5, %v2546_v36 }
 0x7ad   :  { %v2491_v48 = vpop.trf.xlu0  ;;  %6744 = vmatprep.mubr.msk.bf16.mxu0 %vm201_vm5, %v2547_v9  ;;  %v2523_v1 = vpop.trf.xlu1 }
 0x7b1   :  { %v2492_v46 = vpop.trf.xlu0  ;;  %v2524_v53 = vpop.trf.xlu1 }
 0x7b2   :  { %v2548_v47 = vpack.c.bf16 %v2492_v46, %v2491_v48  ;;  %v2556_v38 = vpack.c.bf16 %v2524_v53, %v2523_v1 }
 0x7b4   :  { %6745 = vmatmul.mubr.msk.bf16.gmra.mrb[48].mxu0 %vm201_vm5, %v2548_v47 }
 0x7b5   :  { %6748 = vmatprep.mubr.msk.bf16.mxu0 %vm201_vm5, %v2549_v58 }
 0x7bc   :  { %6749 = vmatmul.mubr.msk.bf16.gmra.mrb[52].mxu0 %vm201_vm5, %v2550_v40 }
 0x7bd   :  { %6752 = vmatprep.mubr.msk.bf16.mxu0 %vm201_vm5, %v2551_v41 }
 0x7c4   :  { %6753 = vmatmul.mubr.msk.bf16.gmra.mrb[56].mxu0 %vm201_vm5, %v2552_v63 }
 0x7c5   :  { %6756 = vmatprep.mubr.msk.bf16.mxu0 %vm201_vm5, %v2553_v0 }
 0x7cc   :  { %6757 = vmatmul.mubr.msk.bf16.gmra.mrb[60].mxu0 %vm201_vm5, %v2554_v35 }
 0x7cd   :  { %6760 = vmatprep.mubr.msk.bf16.mxu0 %vm201_vm5, %v2555_v13 }
 0x7d4   :  { %6761 = vmatmul.mubr.msk.bf16.gmra.mrb[64].mxu0 %vm201_vm5, %v2556_v38 }
 0x817   :  { %v6702_v45 = vpop.f32.mrb[4].mxu0 }
 0x818   :  { %v2719_v50 = vadd.f32 %v6702_v45, %v8118_v39  ;;  %v2710_v55 = vpop.f32.mrb[5].mxu0 }
 0x819   :  { %v2711_v56 = vadd.f32 %v8118_v39, %v2710_v55  ;;  %v6703_v15 = vpop.f32.mrb[6].mxu0 }
 0x81a   :  { %v2722_v7 = vadd.f32 %v6703_v15, %v8118_v39  ;;  %v2713_v8 = vpop.f32.mrb[7].mxu0  ;;  %v2967_v57 = vmul.f32 0.17677669, %v2719_v50 }
 0x81b   :  { %v2714_v22 = vadd.f32 %v8118_v39, %v2713_v8  ;;  %v2965_v54 = vmul.f32 0.17677669, %v2711_v56 }
 0x81c   :  { %v2968_v34 = vmul.f32 0.17677669, %v2722_v7  ;;  %v8124_v59 = vpack.c.bf16 %v2722_v7, %v2719_v50 }
 0x81d   :  { %v2966_v60 = vmul.f32 0.17677669, %v2714_v22  ;;  %v8126_v37 = vpack.c.bf16 %v2714_v22, %v2711_v56 }
 0x81e   :  { %v8128_v2 = vpack.c.bf16 %v2968_v34, %v2967_v57 }
 0x81f   :  { %v8130_v17 = vpack.c.bf16 %v2966_v60, %v2965_v54  ;;  %3109 = vrot.lane.b32.xlu0 %v8126_v37, %s7568_s6 }
 0x821   :  { %6094 = vmatprep.mubr.msk.bf16.mxu1 %vm201_vm5, %v8130_v17 }
 0x827   :  { %v6706_v42 = vpop.f32.mrb[8].mxu0 }
 0x828   :  { %v2735_v19 = vadd.f32 %v6706_v42, %v8118_v39  ;;  %v2726_v52 = vpop.f32.mrb[9].mxu0 }
 0x829   :  { %v2727_v14 = vadd.f32 %v8118_v39, %v2726_v52  ;;  %v6707_v43 = vpop.f32.mrb[10].mxu0 }
 0x82a   :  { %v2738_v44 = vadd.f32 %v6707_v43, %v8118_v39  ;;  %v2729_v23 = vpop.f32.mrb[11].mxu0  ;;  %v2971_v32 = vmul.f32 0.17677669, %v2735_v19 }
 0x82b   :  { %v2730_v33 = vadd.f32 %v8118_v39, %v2729_v23  ;;  %v2969_v26 = vmul.f32 0.17677669, %v2727_v14 }
 0x82c   :  { %v2972_v30 = vmul.f32 0.17677669, %v2738_v44  ;;  %v8140_v16 = vpack.c.bf16 %v2738_v44, %v2735_v19 }
 0x82d   :  { %v2970_v27 = vmul.f32 0.17677669, %v2730_v33  ;;  %v8142_v18 = vpack.c.bf16 %v2730_v33, %v2727_v14 }
 0x82e   :  { %v8144_v31 = vpack.c.bf16 %v2972_v30, %v2971_v32 }
 0x82f   :  { %v8146_v51 = vpack.c.bf16 %v2970_v27, %v2969_v26  ;;  %3113 = vrot.lane.b32.xlu0 %v8142_v18, %s7568_s6 }
 0x833   :  { %3115 = vrot.lane.b32.xlu0 %v8140_v16, %s7568_s6 }
 0x837   :  { %v6710_v36 = vpop.f32.mrb[12].mxu0 }
 0x838   :  { %v2751_v25 = vadd.f32 %v6710_v36, %v8118_v39  ;;  %v2742_v9 = vpop.f32.mrb[13].mxu0 }
 0x839   :  { %v2743_v49 = vadd.f32 %v8118_v39, %v2742_v9  ;;  %v6711_v48 = vpop.f32.mrb[14].mxu0 }
 0x83a   :  { %v2754_v10 = vadd.f32 %v6711_v48, %v8118_v39  ;;  %v2745_v46 = vpop.f32.mrb[15].mxu0  ;;  %v2975_v47 = vmul.f32 0.17677669, %v2751_v25 }
 0x83b   :  { %v2746_v58 = vadd.f32 %v8118_v39, %v2745_v46  ;;  %v2973_v41 = vmul.f32 0.17677669, %v2743_v49 }
 0x83c   :  { %v2976_v61 = vmul.f32 0.17677669, %v2754_v10  ;;  %v8156_v40 = vpack.c.bf16 %v2754_v10, %v2751_v25 }
 0x83d   :  { %v2974_v62 = vmul.f32 0.17677669, %v2746_v58  ;;  %v8158_v63 = vpack.c.bf16 %v2746_v58, %v2743_v49 }
 0x83e   :  { %v8160_v0 = vpack.c.bf16 %v2976_v61, %v2975_v47 }
 0x83f   :  { %v8162_v24 = vpack.c.bf16 %v2974_v62, %v2973_v41  ;;  %3117 = vrot.lane.b32.xlu0 %v8158_v63, %s7568_s6 }
 0x843   :  { %3119 = vrot.lane.b32.xlu0 %v8156_v40, %s7568_s6 }
 0x847   :  { %v6714_v1 = vpop.f32.mrb[16].mxu0 }
 0x848   :  { %v2767_v35 = vadd.f32 %v6714_v1, %v8118_v39  ;;  %v2758_v13 = vpop.f32.mrb[17].mxu0 }
 0x849   :  { %v2759_v53 = vadd.f32 %v8118_v39, %v2758_v13  ;;  %v6715_v38 = vpop.f32.mrb[18].mxu0 }
 0x84a   :  { %v2770_v45 = vadd.f32 %v6715_v38, %v8118_v39  ;;  %v2761_v50 = vpop.f32.mrb[19].mxu0  ;;  %v2979_v56 = vmul.f32 0.17677669, %v2767_v35 }
 0x84b   :  { %v2762_v55 = vadd.f32 %v8118_v39, %v2761_v50  ;;  %v2977_v8 = vmul.f32 0.17677669, %v2759_v53 }
 0x84c   :  { %v2980_v15 = vmul.f32 0.17677669, %v2770_v45  ;;  %v8172_v7 = vpack.c.bf16 %v2770_v45, %v2767_v35 }
 0x84d   :  { %v2978_v22 = vmul.f32 0.17677669, %v2762_v55  ;;  %v8174_v57 = vpack.c.bf16 %v2762_v55, %v2759_v53 }
 0x84e   :  { %v8176_v34 = vpack.c.bf16 %v2980_v15, %v2979_v56 }
 0x84f   :  { %v8178_v54 = vpack.c.bf16 %v2978_v22, %v2977_v8  ;;  %v6718_v60 = vpop.f32.mrb[20].mxu0  ;;  %3121 = vrot.lane.b32.xlu0 %v8174_v57, %s7568_s6 }
 0x850   :  { %v2783_v42 = vadd.f32 %v6718_v60, %v8118_v39  ;;  %v2774_v19 = vpop.f32.mrb[21].mxu0 }
 0x851   :  { %v2775_v52 = vadd.f32 %v8118_v39, %v2774_v19  ;;  %v6719_v14 = vpop.f32.mrb[22].mxu0 }
 0x852   :  { %v2786_v43 = vadd.f32 %v6719_v14, %v8118_v39  ;;  %v2777_v44 = vpop.f32.mrb[23].mxu0  ;;  %v2983_v33 = vmul.f32 0.17677669, %v2783_v42 }
 0x853   :  { %v2778_v23 = vadd.f32 %v8118_v39, %v2777_v44  ;;  %3123 = vrot.lane.b32.xlu0 %v8172_v7, %s7568_s6  ;;  %v2981_v26 = vmul.f32 0.17677669, %v2775_v52 }
 0x854   :  { %v2984_v32 = vmul.f32 0.17677669, %v2786_v43  ;;  %v8188_v30 = vpack.c.bf16 %v2786_v43, %v2783_v42 }
 0x855   :  { %v2982_v27 = vmul.f32 0.17677669, %v2778_v23  ;;  %v8190_v36 = vpack.c.bf16 %v2778_v23, %v2775_v52 }
 0x856   :  { %v8192_v25 = vpack.c.bf16 %v2984_v32, %v2983_v33 }
 0x857   :  { %v8194_v9 = vpack.c.bf16 %v2982_v27, %v2981_v26  ;;  %v6722_v49 = vpop.f32.mrb[24].mxu0  ;;  %3125 = vrot.lane.b32.xlu1 %v8190_v36, %s7568_s6 }
 0x858   :  { %v2799_v48 = vadd.f32 %v6722_v49, %v8118_v39  ;;  %v2790_v10 = vpop.f32.mrb[25].mxu0 }
 0x859   :  { %v2791_v46 = vadd.f32 %v8118_v39, %v2790_v10  ;;  %v6723_v58 = vpop.f32.mrb[26].mxu0 }
 0x85a   :  { %v2802_v47 = vadd.f32 %v6723_v58, %v8118_v39  ;;  %v2793_v61 = vpop.f32.mrb[27].mxu0  ;;  %v2987_v62 = vmul.f32 0.17677669, %v2799_v48 }
 0x85b   :  { %v2794_v41 = vadd.f32 %v8118_v39, %v2793_v61  ;;  %3111 = vrot.lane.b32.xlu1 %v8124_v59, %s7568_s6  ;;  %v2985_v13 = vmul.f32 0.17677669, %v2791_v46 }
 0x85c   :  { %v2988_v1 = vmul.f32 0.17677669, %v2802_v47  ;;  %v8204_v35 = vpack.c.bf16 %v2802_v47, %v2799_v48 }
 0x85d   :  { %v2986_v53 = vmul.f32 0.17677669, %v2794_v41  ;;  %v8206_v38 = vpack.c.bf16 %v2794_v41, %v2791_v46 }
 0x85e   :  { %v8208_v45 = vpack.c.bf16 %v2988_v1, %v2987_v62 }
 0x85f   :  { %v8210_v50 = vpack.c.bf16 %v2986_v53, %v2985_v13  ;;  %v6726_v55 = vpop.f32.mrb[28].mxu0  ;;  %3127 = vrot.lane.b32.xlu1 %v8188_v30, %s7568_s6 }
 0x860   :  { %v2815_v56 = vadd.f32 %v6726_v55, %v8118_v39  ;;  %v2806_v15 = vpop.f32.mrb[29].mxu0 }
 0x861   :  { %v2807_v8 = vadd.f32 %v8118_v39, %v2806_v15  ;;  %v6727_v22 = vpop.f32.mrb[30].mxu0 }
 0x862   :  { %v2818_v60 = vadd.f32 %v6727_v22, %v8118_v39  ;;  %v2809_v42 = vpop.f32.mrb[31].mxu0  ;;  %v2991_v52 = vmul.f32 0.17677669, %v2815_v56 }
 0x863   :  { %v2810_v19 = vadd.f32 %v8118_v39, %v2809_v42  ;;  %3129 = vrot.lane.b32.xlu1 %v8206_v38, %s7568_s6  ;;  %v2989_v44 = vmul.f32 0.17677669, %v2807_v8 }
 0x864   :  { %v2992_v14 = vmul.f32 0.17677669, %v2818_v60  ;;  %v8220_v43 = vpack.c.bf16 %v2818_v60, %v2815_v56 }
 0x865   :  { %v2990_v23 = vmul.f32 0.17677669, %v2810_v19  ;;  %v8222_v33 = vpack.c.bf16 %v2810_v19, %v2807_v8 }
 0x866   :  { %v8224_v32 = vpack.c.bf16 %v2992_v14, %v2991_v52 }
 0x867   :  { %v8226_v26 = vpack.c.bf16 %v2990_v23, %v2989_v44  ;;  %v6730_v27 = vpop.f32.mrb[32].mxu0  ;;  %3131 = vrot.lane.b32.xlu1 %v8204_v35, %s7568_s6 }
 0x868   :  { %v2831_v49 = vadd.f32 %v6730_v27, %v8118_v39  ;;  %v2822_v48 = vpop.f32.mrb[33].mxu0 }
 0x869   :  { %v2823_v10 = vadd.f32 %v8118_v39, %v2822_v48  ;;  %v6731_v46 = vpop.f32.mrb[34].mxu0 }
 0x86a   :  { %v2834_v58 = vadd.f32 %v6731_v46, %v8118_v39  ;;  %v2825_v47 = vpop.f32.mrb[35].mxu0  ;;  %v2995_v41 = vmul.f32 0.17677669, %v2831_v49 }
 0x86b   :  { %v2826_v61 = vadd.f32 %v8118_v39, %v2825_v47  ;;  %3133 = vrot.lane.b32.xlu1 %v8222_v33, %s7568_s6  ;;  %v2993_v13 = vmul.f32 0.17677669, %v2823_v10 }
 0x86c   :  { %v2996_v62 = vmul.f32 0.17677669, %v2834_v58  ;;  %v8236_v1 = vpack.c.bf16 %v2834_v58, %v2831_v49 }
 0x86d   :  { %v2994_v53 = vmul.f32 0.17677669, %v2826_v61  ;;  %v8238_v55 = vpack.c.bf16 %v2826_v61, %v2823_v10 }
 0x86e   :  { %v8240_v56 = vpack.c.bf16 %v2996_v62, %v2995_v41 }
 0x86f   :  { %v8242_v15 = vpack.c.bf16 %v2994_v53, %v2993_v13  ;;  %v6734_v8 = vpop.f32.mrb[36].mxu0  ;;  %3135 = vrot.lane.b32.xlu1 %v8220_v43, %s7568_s6 }
 0x870   :  { %v2847_v22 = vadd.f32 %v6734_v8, %v8118_v39  ;;  %v2838_v60 = vpop.f32.mrb[37].mxu0 }
 0x871   :  { %v2839_v42 = vadd.f32 %v8118_v39, %v2838_v60  ;;  %v6735_v19 = vpop.f32.mrb[38].mxu0 }
 0x872   :  { %v2850_v52 = vadd.f32 %v6735_v19, %v8118_v39  ;;  %v2841_v14 = vpop.f32.mrb[39].mxu0  ;;  %v2999_v23 = vmul.f32 0.17677669, %v2847_v22 }
 0x873   :  { %v2842_v44 = vadd.f32 %v8118_v39, %v2841_v14  ;;  %3137 = vrot.lane.b32.xlu1 %v8238_v55, %s7568_s6  ;;  %v2997_v48 = vmul.f32 0.17677669, %v2839_v42 }
 0x874   :  { %v3000_v27 = vmul.f32 0.17677669, %v2850_v52  ;;  %v8252_v49 = vpack.c.bf16 %v2850_v52, %v2847_v22 }
 0x875   :  { %v2998_v10 = vmul.f32 0.17677669, %v2842_v44  ;;  %v8254_v46 = vpack.c.bf16 %v2842_v44, %v2839_v42 }
 0x876   :  { %v8256_v58 = vpack.c.bf16 %v3000_v27, %v2999_v23 }
 0x877   :  { %v8258_v47 = vpack.c.bf16 %v2998_v10, %v2997_v48  ;;  %v6738_v61 = vpop.f32.mrb[40].mxu0  ;;  %3139 = vrot.lane.b32.xlu1 %v8236_v1, %s7568_s6  ;;  %3446 = vrot.lane.b32.xlu0 %v8254_v46, %s7568_s6 }
 0x878   :  { %v2863_v41 = vadd.f32 %v6738_v61, %v8118_v39  ;;  %v2854_v62 = vpop.f32.mrb[41].mxu0 }
 0x879   :  { %v2855_v13 = vadd.f32 %v8118_v39, %v2854_v62  ;;  %v6739_v53 = vpop.f32.mrb[42].mxu0  ;;  %6142 = vmatprep.mubr.msk.bf16.mxu0 %vm201_vm5, %v8258_v47 }
 0x87a   :  { %v3003_v8 = vmul.f32 0.17677669, %v2863_v41  ;;  %v2866_v22 = vadd.f32 %v6739_v53, %v8118_v39  ;;  %v2857_v60 = vpop.f32.mrb[43].mxu0 }
 0x87b   :  { %v2858_v42 = vadd.f32 %v8118_v39, %v2857_v60  ;;  %3448 = vrot.lane.b32.xlu0 %v8252_v49, %s7568_s6  ;;  %v3001_v14 = vmul.f32 0.17677669, %v2855_v13 }
 0x87c   :  { %v3004_v19 = vmul.f32 0.17677669, %v2866_v22  ;;  %v8272_v52 = vpack.c.bf16 %v2866_v22, %v2863_v41 }
 0x87d   :  { %v3002_v44 = vmul.f32 0.17677669, %v2858_v42  ;;  %v8274_v23 = vpack.c.bf16 %v2858_v42, %v2855_v13 }
 0x87e   :  { %v8276_v27 = vpack.c.bf16 %v3004_v19, %v3003_v8 }
 0x87f   :  { %v8278_v48 = vpack.c.bf16 %v3002_v44, %v3001_v14  ;;  %v6742_v10 = vpop.f32.mrb[44].mxu0  ;;  %3450 = vrot.lane.b32.xlu0 %v8274_v23, %s7568_s6 }
 0x880   :  { %v2879_v61 = vadd.f32 %v6742_v10, %v8118_v39  ;;  %v2870_v62 = vpop.f32.mrb[45].mxu0 }
 0x881   :  { %v2871_v53 = vadd.f32 %v8118_v39, %v2870_v62  ;;  %v6743_v60 = vpop.f32.mrb[46].mxu0 }
 0x882   :  { %v3007_v41 = vmul.f32 0.17677669, %v2879_v61  ;;  %v2882_v22 = vadd.f32 %v6743_v60, %v8118_v39  ;;  %v2873_v4 = vpop.f32.mrb[47].mxu0 }
 0x883   :  { %v3005_v13 = vmul.f32 0.17677669, %v2871_v53  ;;  %v2874_v8 = vadd.f32 %v8118_v39, %v2873_v4  ;;  %3452 = vrot.lane.b32.xlu0 %v8272_v52, %s7568_s6 }
 0x884   :  { %v3008_v42 = vmul.f32 0.17677669, %v2882_v22  ;;  %v8288_v19 = vpack.c.bf16 %v2882_v22, %v2879_v61 }
 0x885   :  { %v3006_v14 = vmul.f32 0.17677669, %v2874_v8  ;;  %v8290_v44 = vpack.c.bf16 %v2874_v8, %v2871_v53 }
 0x886   :  { %v8292_v10 = vpack.c.bf16 %v3008_v42, %v3007_v41 }
 0x887   :  { %v8294_v62 = vpack.c.bf16 %v3006_v14, %v3005_v13  ;;  %v6746_v3 = vpop.f32.mrb[48].mxu0  ;;  %3454 = vrot.lane.b32.xlu0 %v8290_v44, %s7568_s6 }
 0x888   :  { %v2895_v60 = vadd.f32 %v6746_v3, %v8118_v39  ;;  %v2886_v4 = vpop.f32.mrb[49].mxu0 }
 0x889   :  { %v2887_v29 = vadd.f32 %v8118_v39, %v2886_v4  ;;  %v6747_v28 = vpop.f32.mrb[50].mxu0 }
 0x88a   :  { %v3011_v21 = vmul.f32 0.17677669, %v2895_v60  ;;  %v2898_v61 = vadd.f32 %v6747_v28, %v8118_v39  ;;  %v2889_v22 = vpop.f32.mrb[51].mxu0 }
 0x88b   :  { %v3009_v53 = vmul.f32 0.17677669, %v2887_v29  ;;  %v2890_v41 = vadd.f32 %v8118_v39, %v2889_v22  ;;  %3456 = vrot.lane.b32.xlu0 %v8288_v19, %s7568_s6 }
 0x88c   :  { %v3012_v13 = vmul.f32 0.17677669, %v2898_v61  ;;  %v8304_v8 = vpack.c.bf16 %v2898_v61, %v2895_v60 }
 0x88d   :  { %v3010_v42 = vmul.f32 0.17677669, %v2890_v41  ;;  %v8306_v14 = vpack.c.bf16 %v2890_v41, %v2887_v29 }
 0x88e   :  { %10088 = vst [vmem:[#allocation31_spill] sm:$0xff] %v8304_v8  ;;  %v8308_v3 = vpack.c.bf16 %v3012_v13, %v3011_v21 }
 0x88f   :  { %10089 = vst [vmem:[#allocation32_spill] sm:$0xff] %v8306_v14  ;;  %v8310_v4 = vpack.c.bf16 %v3010_v42, %v3009_v53  ;;  %v6750_v20 = vpop.f32.mrb[52].mxu0  ;;  %3458 = vrot.lane.b32.xlu0 %v8306_v14, %s7568_s6 }
 0x890   :  { %v2911_v28 = vadd.f32 %v6750_v20, %v8118_v39  ;;  %v2902_v22 = vpop.f32.mrb[53].mxu0 }
 0x891   :  { %v2903_v12 = vadd.f32 %v8118_v39, %v2902_v22  ;;  %v6751_v11 = vpop.f32.mrb[54].mxu0 }
 0x892   :  { %v3015_v6 = vmul.f32 0.17677669, %v2911_v28  ;;  %v2914_v60 = vadd.f32 %v6751_v11, %v8118_v39  ;;  %v2905_v61 = vpop.f32.mrb[55].mxu0 }
 0x893   :  { %v3013_v29 = vmul.f32 0.17677669, %v2903_v12  ;;  %v2906_v21 = vadd.f32 %v8118_v39, %v2905_v61  ;;  %3460 = vrot.lane.b32.xlu0 %v8304_v8, %s7568_s6 }
 0x894   :  { %v3016_v53 = vmul.f32 0.17677669, %v2914_v60  ;;  %v8320_v41 = vpack.c.bf16 %v2914_v60, %v2911_v28 }
 0x895   :  { %v3014_v13 = vmul.f32 0.17677669, %v2906_v21  ;;  %v8322_v42 = vpack.c.bf16 %v2906_v21, %v2903_v12 }
 0x896   :  { %v8324_v20 = vpack.c.bf16 %v3016_v53, %v3015_v6 }
 0x897   :  { %v8326_v22 = vpack.c.bf16 %v3014_v13, %v3013_v29  ;;  %v6754_v5 = vpop.f32.mrb[56].mxu0  ;;  %3462 = vrot.lane.b32.xlu1 %v8322_v42, %s7568_s6  ;;  %4615 = vrot.lane.b32.xlu0 %v8190_v36, %s7563_s4 }
 0x898   :  { %10090 = vst [vmem:[#allocation33_spill] sm:$0xff] %v8324_v20  ;;  %v2927_v11 = vadd.f32 %v6754_v5, %v8118_v39  ;;  %v2918_v61 = vpop.f32.mrb[57].mxu0 }
 0x899   :  { %10091 = vst [vmem:[#allocation34_spill] sm:$0xff] %v8326_v22  ;;  %v2919_v28 = vadd.f32 %v8118_v39, %v2918_v61  ;;  %v6755_v60 = vpop.f32.mrb[58].mxu0 }
 0x89a   :  { %v3019_v8 = vmul.f32 0.17677669, %v2927_v11  ;;  %v2930_v12 = vadd.f32 %v6755_v60, %v8118_v39  ;;  %v2921_v6 = vpop.f32.mrb[59].mxu0 }
 0x89b   :  { %v3017_v21 = vmul.f32 0.17677669, %v2919_v28  ;;  %v2922_v29 = vadd.f32 %v8118_v39, %v2921_v6  ;;  %3464 = vrot.lane.b32.xlu1 %v8320_v41, %s7568_s6  ;;  %4617 = vrot.lane.b32.xlu0 %v8188_v30, %s7563_s4 }
 0x89c   :  { %v3020_v36 = vmul.f32 0.17677669, %v2930_v12  ;;  %v8340_v53 = vpack.c.bf16 %v2930_v12, %v2927_v11 }
 0x89d   :  { %v3018_v5 = vmul.f32 0.17677669, %v2922_v29  ;;  %v3087_v13 = vpack.c.bf16 %v2922_v29, %v2919_v28 }
 0x89e   :  { %v8342_v61 = vpack.c.bf16 %v3020_v36, %v3019_v8 }
 0x89f   :  { %v8344_v14 = vpack.c.bf16 %v3018_v5, %v3017_v21  ;;  %v6758_v60 = vpop.f32.mrb[60].mxu0  ;;  %3466 = vrot.lane.b32.xlu1 %v3087_v13, %s7568_s6  ;;  %4619 = vrot.lane.b32.xlu0 %v8206_v38, %s7563_s4 }
 0x8a0   :  { %10092 = vst [vmem:[#allocation35_spill] sm:$0xff] %v8342_v61  ;;  %v2943_v6 = vadd.f32 %v6758_v60, %v8118_v39  ;;  %v2934_v20 = vpop.f32.mrb[61].mxu0 }
 0x8a1   :  { %10093 = vst [vmem:[#allocation36_spill] sm:$0xff] %v8344_v14  ;;  %v2935_v30 = vadd.f32 %v8118_v39, %v2934_v20  ;;  %v6759_v22 = vpop.f32.mrb[62].mxu0 }
 0x8a2   :  { %v3023_v11 = vmul.f32 0.17677669, %v2943_v6  ;;  %v2946_v12 = vadd.f32 %v6759_v22, %v8118_v39  ;;  %v2937_v28 = vpop.f32.mrb[63].mxu0 }
 0x8a3   :  { %v3021_v8 = vmul.f32 0.17677669, %v2935_v30  ;;  %v2938_v21 = vadd.f32 %v8118_v39, %v2937_v28  ;;  %3468 = vrot.lane.b32.xlu1 %v8340_v53, %s7568_s6  ;;  %4621 = vrot.lane.b32.xlu0 %v8204_v35, %s7563_s4 }
 0x8a4   :  { %v3024_v38 = vmul.f32 0.17677669, %v2946_v12  ;;  %v8357_v29 = vpack.c.bf16 %v2946_v12, %v2943_v6 }
 0x8a5   :  { %v3022_v36 = vmul.f32 0.17677669, %v2938_v21  ;;  %v3089_v5 = vpack.c.bf16 %v2938_v21, %v2935_v30 }
 0x8a6   :  { %v8359_v20 = vpack.c.bf16 %v3024_v38, %v3023_v11 }
 0x8a7   :  { %v8361_v60 = vpack.c.bf16 %v3022_v36, %v3021_v8  ;;  %v6762_v22 = vpop.f32.mrb[64].mxu0  ;;  %3470 = vrot.lane.b32.xlu1 %v3089_v5, %s7568_s6  ;;  %4623 = vrot.lane.b32.xlu0 %v8222_v33, %s7563_s4 }
 0x8a8   :  { %v2959_v28 = vadd.f32 %v6762_v22, %v8118_v39  ;;  %v2950_v61 = vpop.f32.mrb[65].mxu0 }
 0x8a9   :  { %v2951_v35 = vadd.f32 %v8118_v39, %v2950_v61  ;;  %v6763_v14 = vpop.f32.mrb[66].mxu0 }
 0x8aa   :  { %v3027_v6 = vmul.f32 0.17677669, %v2959_v28  ;;  %v2962_v12 = vadd.f32 %v6763_v14, %v8118_v39  ;;  %v2953_v30 = vpop.f32.mrb[67].mxu0 }
 0x8ab   :  { %v3025_v11 = vmul.f32 0.17677669, %v2951_v35  ;;  %v2954_v8 = vadd.f32 %v8118_v39, %v2953_v30  ;;  %3472 = vrot.lane.b32.xlu1 %v8357_v29, %s7568_s6  ;;  %4625 = vrot.lane.b32.xlu0 %v8220_v43, %s7563_s4  ;;  %v3110_v39 = vpop.permute.xlu0 %3109 }
 0x8ac   :  { %v3028_v33 = vmul.f32 0.17677669, %v2962_v12  ;;  %v8374_v21 = vpack.c.bf16 %v2962_v12, %v2959_v28  ;;  %v3190_v43 = vsel %vm201_vm5, %v3110_v39, 0 }
 0x8ad   :  { %v3026_v38 = vmul.f32 0.17677669, %v2954_v8  ;;  %v8376_v36 = vpack.c.bf16 %v2954_v8, %v2951_v35 }
 0x8ae   :  { %v8378_v61 = vpack.c.bf16 %v3028_v33, %v3027_v6 }
 0x8af   :  { %v8380_v22 = vpack.c.bf16 %v3026_v38, %v3025_v11  ;;  %3474 = vrot.lane.b32.xlu1 %v8376_v36, %s7568_s6  ;;  %4627 = vrot.lane.b32.xlu0 %v8238_v55, %s7563_s4 }
 0x8b3   :  { %3476 = vrot.lane.b32.xlu1 %v8374_v21, %s7568_s6  ;;  %4629 = vrot.lane.b32.xlu0 %v8236_v1, %s7563_s4 }
 0x8b7   :  { %4599 = vrot.lane.b32.xlu1 %v8126_v37, %s7563_s4  ;;  %4824 = vrot.lane.b32.xlu0 %v8322_v42, %s7563_s4 }
 0x8bb   :  { %4601 = vrot.lane.b32.xlu1 %v8124_v59, %s7563_s4  ;;  %4828 = vrot.lane.b32.xlu0 %v3087_v13, %s7563_s4  ;;  %v3114_v59 = vpop.permute.xlu0 %3113 }
 0x8bf   :  { %4603 = vrot.lane.b32.xlu1 %v8142_v18, %s7563_s4  ;;  %4832 = vrot.lane.b32.xlu0 %v3089_v5, %s7563_s4  ;;  %v3116_v1 = vpop.permute.xlu0 %3115 }
 0x8c3   :  { %4605 = vrot.lane.b32.xlu1 %v8140_v16, %s7563_s4 }
 0x8c7   :  { %4607 = vrot.lane.b32.xlu1 %v8158_v63, %s7563_s4  ;;  %v3118_v63 = vpop.permute.xlu0 %3117 }
 0x8c8   :  { %v3202_v28 = vsel %vm201_vm5, %v3118_v63, 0 }
 0x8c9   :  { %v3126_v37 = vpop.permute.xlu1 %3125 }
 0x8ca   :  { %7020 = vmatprep.subr.msk.bf16.mxu1 %vm201_vm5, %v3126_v37 }
 0x8cb   :  { %4609 = vrot.lane.b32.xlu1 %v8156_v40, %s7563_s4  ;;  %6079 = vmatpush3.bf16.xpose.msra.mxu1 %v3190_v43  ;;  %v3196_v40 = vsel %vm201_vm5, %v3114_v59, 0 }
 0x8cd   :  { %v3112_v18 = vpop.permute.xlu1 %3111 }
 0x8ce   :  { %v3193_v55 = vsel %vm201_vm5, %v3112_v18, 0 }
 0x8cf   :  { %4611 = vrot.lane.b32.xlu1 %v8174_v57, %s7563_s4  ;;  %v3120_v57 = vpop.permute.xlu0 %3119 }
 0x8d0   :  { %v3205_v6 = vsel %vm201_vm5, %v3120_v57, 0 }
 0x8d1   :  { %v3128_v16 = vpop.permute.xlu1 %3127 }
 0x8d2   :  { %7021 = vmatprep.subr.msk.bf16.mxu1 %vm201_vm5, %v3128_v16 }
 0x8d3   :  { %4613 = vrot.lane.b32.xlu1 %v8172_v7, %s7563_s4  ;;  %6081 = vmatpush3.bf16.xpose.msra.mxu1 %v3193_v55  ;;  %v3122_v13 = vpop.permute.xlu0 %3121  ;;  %v3199_v7 = vsel %vm201_vm5, %v3116_v1, 0 }
 0x8d4   :  { %v3208_v30 = vsel %vm201_vm5, %v3122_v13, 0 }
 0x8d5   :  { %v3130_v14 = vpop.permute.xlu1 %3129 }
 0x8d6   :  { %7022 = vmatprep.subr.msk.bf16.mxu1 %vm201_vm5, %v3130_v14 }
 0x8d7   :  { %4808 = vrot.lane.b32.xlu1 %v8254_v46, %s7563_s4  ;;  %v3124_v46 = vpop.permute.xlu0 %3123 }
 0x8d8   :  { %v3211_v33 = vsel %vm201_vm5, %v3124_v46, 0 }
 0x8d9   :  { %v3132_v42 = vpop.permute.xlu1 %3131 }
 0x8db   :  { %4826 = vrot.lane.b32.xlu1 %v8320_v41, %s7563_s4  ;;  %6083 = vmatpush3.bf16.xpose.msra.mxu1 %v3196_v40 }
 0x8dc   :  { %7023 = vmatprep.subr.msk.bf16.mxu1 %vm201_vm5, %v3132_v42 }
 0x8dd   :  { %v3134_v5 = vpop.permute.xlu1 %3133 }
 0x8df   :  { %4810 = vrot.lane.b32.xlu1 %v8252_v49, %s7563_s4 }
 0x8e1   :  { %v3136_v35 = vpop.permute.xlu1 %3135 }
 0x8e3   :  { %4812 = vrot.lane.b32.xlu1 %v8274_v23, %s7563_s4  ;;  %6085 = vmatpush3.bf16.xpose.msra.mxu1 %v3199_v7 }
 0x8e4   :  { %7024 = vmatprep.subr.msk.bf16.mxu1 %vm201_vm5, %v3134_v5 }
 0x8e5   :  { %v3138_v12 = vpop.permute.xlu1 %3137 }
 0x8e7   :  { %4830 = vrot.lane.b32.xlu1 %v8340_v53, %s7563_s4 }
 0x8e9   :  { %v3447_v41 = vpop.permute.xlu0 %3446  ;;  %v3140_v11 = vpop.permute.xlu1 %3139 }
 0x8eb   :  { %4814 = vrot.lane.b32.xlu1 %v8272_v52, %s7563_s4  ;;  %6087 = vmatpush3.bf16.xpose.msra.mxu1 %v3202_v28 }
 0x8ec   :  { %7025 = vmatprep.subr.msk.bf16.mxu1 %vm201_vm5, %v3136_v35 }
 0x8ed   :  { %v3449_v49 = vpop.permute.xlu0 %3448 }
 0x8ee   :  { %v3530_v59 = vsel %vm201_vm5, %v3449_v49, 0 }
 0x8ef   :  { %4816 = vrot.lane.b32.xlu1 %v8290_v44, %s7563_s4 }
 0x8f1   :  { %v3451_v23 = vpop.permute.xlu0 %3450 }
 0x8f2   :  { %v3533_v16 = vsel %vm201_vm5, %v3451_v23, 0 }
 0x8f3   :  { %4834 = vrot.lane.b32.xlu1 %v8357_v29, %s7563_s4  ;;  %6089 = vmatpush3.bf16.xpose.msra.mxu1 %v3205_v6 }
 0x8f4   :  { %7026 = vmatprep.subr.msk.bf16.mxu1 %vm201_vm5, %v3138_v12 }
 0x8f5   :  { %v3453_v53 = vpop.permute.xlu0 %3452 }
 0x8f6   :  { %v3536_v14 = vsel %vm201_vm5, %v3453_v53, 0 }
 0x8f7   :  { %4818 = vrot.lane.b32.xlu1 %v8288_v19, %s7563_s4  ;;  %v3527_v19 = vsel %vm201_vm5, %v3447_v41, 0 }
 0x8f9   :  { %v3455_v52 = vpop.permute.xlu0 %3454 }
 0x8fa   :  { %v3539_v42 = vsel %vm201_vm5, %v3455_v52, 0 }
 0x8fb   :  { %6091 = vmatpush3.bf16.xpose.msra.mxu1 %v3208_v30 }
 0x8fc   :  { %7027 = vmatprep.subr.msk.bf16.mxu1 %vm201_vm5, %v3140_v11 }
 0x8fd   :  { %v3457_v44 = vpop.permute.xlu0 %3456 }
 0x901   :  { %v8443_v8 = vpop.permute.xlu0 %3458 }
 0x903   :  { %6093 = vmatpush3.bf16.xpose.msra.mxu1 %v3211_v33 }
 0x905   :  { %v8446_v29 = vpop.permute.xlu0 %3460 }
 0x909   :  { %v3463_v38 = vpop.permute.xlu1 %3462  ;;  %v4616_v39 = vpop.permute.xlu0 %4615 }
 0x90a   :  { %6095 = vmatmul.mubr.msk.bf16.vlgmr.msra.gmra.mrb[4].mxu1 %vm201_vm5, %v8130_v17  ;;  %7028 = vmatprep.subr.msk.bf16.mxu0 %vm201_vm5, %v3463_v38 }
 0x90b   :  { %6174 = vmatprep.subr.bf16.mxu1 %v4616_v39  ;;  %6096 = vmatprep.mubr.msk.bf16.mxu1 %vm201_vm5, %v8128_v2 }
 0x90c   :  { %6127 = vmatpush3.bf16.xpose.msra.mxu0 %v3527_v19 }
 0x90d   :  { %v3465_v37 = vpop.permute.xlu1 %3464  ;;  %v4618_v1 = vpop.permute.xlu0 %4617 }
 0x90e   :  { %7029 = vmatprep.subr.msk.bf16.mxu0 %vm201_vm5, %v3465_v37 }
 0x911   :  { %v3467_v43 = vpop.permute.xlu1 %3466  ;;  %v4620_v55 = vpop.permute.xlu0 %4619 }
 0x912   :  { %6097 = vmatmul.mubr.msk.bf16.gmra.mrb[8].mxu1 %vm201_vm5, %v8128_v2 }
 0x913   :  { %6098 = vmatprep.mubr.msk.bf16.mxu1 %vm201_vm5, %v8146_v51 }
 0x914   :  { %6129 = vmatpush3.bf16.xpose.msra.mxu0 %v3530_v59 }
 0x915   :  { %v3469_v17 = vpop.permute.xlu1 %3468  ;;  %7030 = vmatprep.subr.msk.bf16.mxu0 %vm201_vm5, %v3467_v43  ;;  %v4622_v40 = vpop.permute.xlu0 %4621  ;;  %v10098_v43 = vld [vmem:[#allocation32_spill] sm:$0xff] }
 0x919   :  { %v3471_v18 = vpop.permute.xlu1 %3470 }
 0x91a   :  { %6099 = vmatmul.mubr.msk.bf16.gmra.mrb[12].mxu1 %vm201_vm5, %v8146_v51 }
 0x91b   :  { %6100 = vmatprep.mubr.msk.bf16.mxu1 %vm201_vm5, %v8144_v31 }
 0x91c   :  { %6131 = vmatpush3.bf16.xpose.msra.mxu0 %v3533_v16 }
 0x91d   :  { %v3473_v2 = vpop.permute.xlu1 %3472  ;;  %7031 = vmatprep.subr.msk.bf16.mxu0 %vm201_vm5, %v3469_v17 }
 0x921   :  { %v3475_v63 = vpop.permute.xlu1 %3474 }
 0x922   :  { %6101 = vmatmul.mubr.msk.bf16.gmra.mrb[16].mxu1 %vm201_vm5, %v8144_v31  ;;  %v4624_v31 = vpop.permute.xlu0 %4623 }
 0x923   :  { %6102 = vmatprep.mubr.msk.bf16.mxu1 %vm201_vm5, %v8162_v24 }
 0x924   :  { %6133 = vmatpush3.bf16.xpose.msra.mxu0 %v3536_v14 }
 0x925   :  { %v3477_v51 = vpop.permute.xlu1 %3476  ;;  %7032 = vmatprep.subr.msk.bf16.mxu0 %vm201_vm5, %v3471_v18 }
 0x926   :  { %v4626_v5 = vpop.permute.xlu0 %4625 }
 0x929   :  { %v4600_v57 = vpop.permute.xlu1 %4599 }
 0x92a   :  { %6103 = vmatmul.mubr.msk.bf16.gmra.mrb[20].mxu1 %vm201_vm5, %v8162_v24  ;;  %v3542_v24 = vsel %vm201_vm5, %v3457_v44, 0  ;;  %v4628_v41 = vpop.permute.xlu0 %4627 }
 0x92b   :  { %6175 = vmatpush3.bf16.msra.mxu1 %v4600_v57  ;;  %6104 = vmatprep.mubr.msk.bf16.mxu1 %vm201_vm5, %v8160_v0 }
 0x92c   :  { %6135 = vmatpush3.bf16.xpose.msra.mxu0 %v3539_v42  ;;  %6176 = vmatprep.subr.bf16.mxu1 %v4618_v1 }
 0x92d   :  { %v4602_v13 = vpop.permute.xlu1 %4601  ;;  %7033 = vmatprep.subr.msk.bf16.mxu0 %vm201_vm5, %v3473_v2 }
 0x92e   :  { %v4630_v49 = vpop.permute.xlu0 %4629 }
 0x92f   :  { %6177 = vmatpush3.bf16.msra.mxu1 %v4602_v13 }
 0x930   :  { %6178 = vmatprep.subr.bf16.mxu1 %v4620_v55 }
 0x931   :  { %v4604_v7 = vpop.permute.xlu1 %4603 }
 0x932   :  { %6105 = vmatmul.mubr.msk.bf16.gmra.mrb[24].mxu1 %vm201_vm5, %v8160_v0  ;;  %v3545_v0 = vsel %vm201_vm5, %v8443_v8, 0  ;;  %v4825_v6 = vpop.permute.xlu0 %4824 }
 0x933   :  { %6179 = vmatpush3.bf16.msra.mxu1 %v4604_v7  ;;  %6106 = vmatprep.mubr.msk.bf16.mxu1 %vm201_vm5, %v8178_v54 }
 0x934   :  { %6137 = vmatpush3.bf16.xpose.msra.mxu0 %v3542_v24  ;;  %6180 = vmatprep.subr.bf16.mxu1 %v4622_v40 }
 0x935   :  { %v4606_v46 = vpop.permute.xlu1 %4605  ;;  %7034 = vmatprep.subr.msk.bf16.mxu0 %vm201_vm5, %v3475_v63 }
 0x936   :  { %v4829_v30 = vpop.permute.xlu0 %4828 }
 0x937   :  { %6181 = vmatpush3.bf16.msra.mxu1 %v4606_v46 }
 0x938   :  { %6182 = vmatprep.subr.bf16.mxu1 %v4624_v31 }
 0x939   :  { %v4608_v28 = vpop.permute.xlu1 %4607 }
 0x93a   :  { %6107 = vmatmul.mubr.msk.bf16.gmra.mrb[28].mxu1 %vm201_vm5, %v8178_v54  ;;  %v3548_v54 = vsel %vm201_vm5, %v8446_v29, 0 }
 0x93b   :  { %6183 = vmatpush3.bf16.msra.mxu1 %v4608_v28  ;;  %6108 = vmatprep.mubr.msk.bf16.mxu1 %vm201_vm5, %v8176_v34 }
 0x93c   :  { %6139 = vmatpush3.bf16.xpose.msra.mxu0 %v3545_v0  ;;  %6184 = vmatprep.subr.bf16.mxu1 %v4626_v5 }
 0x93d   :  { %v4610_v35 = vpop.permute.xlu1 %4609  ;;  %7035 = vmatprep.subr.msk.bf16.mxu0 %vm201_vm5, %v3477_v51 }
 0x93f   :  { %6185 = vmatpush3.bf16.msra.mxu1 %v4610_v35 }
 0x940   :  { %6186 = vmatprep.subr.bf16.mxu1 %v4628_v41 }
 0x941   :  { %v4612_v23 = vpop.permute.xlu1 %4611 }
 0x942   :  { %6109 = vmatmul.mubr.msk.bf16.gmra.mrb[32].mxu1 %vm201_vm5, %v8176_v34 }
 0x943   :  { %6187 = vmatpush3.bf16.msra.mxu1 %v4612_v23  ;;  %6110 = vmatprep.mubr.msk.bf16.mxu1 %vm201_vm5, %v8194_v9 }
 0x944   :  { %6141 = vmatpush3.bf16.xpose.msra.mxu0 %v3548_v54  ;;  %6188 = vmatprep.subr.bf16.mxu1 %v4630_v49 }
 0x945   :  { %6286 = vmatprep.subr.bf16.mxu0 %v4825_v6  ;;  %v4614_v12 = vpop.permute.xlu1 %4613 }
 0x947   :  { %6189 = vmatpush3.bf16.msra.mxu1 %v4614_v12 }
 0x949   :  { %v4809_v53 = vpop.permute.xlu1 %4808 }
 0x94a   :  { %6111 = vmatmul.mubr.msk.bf16.gmra.mrb[36].mxu1 %vm201_vm5, %v8194_v9 }
 0x94b   :  { %6143 = vmatmul.mubr.msk.bf16.vlgmr.msra.gmra.mrb[68].mxu0 %vm201_vm5, %v8258_v47  ;;  %6112 = vmatprep.mubr.msk.bf16.mxu1 %vm201_vm5, %v8192_v25 }
 0x94c   :  { %6144 = vmatprep.mubr.msk.bf16.mxu0 %vm201_vm5, %v8256_v58  ;;  %6287 = vmatpush3.bf16.msra.mxu0 %v4809_v53 }
 0x94d   :  { %v4827_v34 = vpop.permute.xlu1 %4826 }
 0x94e   :  { %6288 = vmatprep.subr.bf16.mxu0 %v4827_v34 }
 0x951   :  { %v4811_v52 = vpop.permute.xlu1 %4810 }
 0x952   :  { %6113 = vmatmul.mubr.msk.bf16.gmra.mrb[40].mxu1 %vm201_vm5, %v8192_v25  ;;  %6289 = vmatpush3.bf16.msra.mxu0 %v4811_v52 }
 0x953   :  { %6145 = vmatmul.mubr.msk.bf16.gmra.mrb[72].mxu0 %vm201_vm5, %v8256_v58  ;;  %6114 = vmatprep.mubr.msk.bf16.mxu1 %vm201_vm5, %v8210_v50  ;;  %v4833_v58 = vpop.permute.xlu0 %4832 }
 0x954   :  { %6146 = vmatprep.mubr.msk.bf16.mxu0 %vm201_vm5, %v8278_v48  ;;  %6290 = vmatprep.subr.bf16.mxu0 %v4829_v30 }
 0x955   :  { %v4813_v9 = vpop.permute.xlu1 %4812 }
 0x956   :  { %6291 = vmatpush3.bf16.msra.mxu0 %v4813_v9 }
 0x959   :  { %v4831_v47 = vpop.permute.xlu1 %4830 }
 0x95a   :  { %6115 = vmatmul.mubr.msk.bf16.gmra.mrb[44].mxu1 %vm201_vm5, %v8210_v50  ;;  %6292 = vmatprep.subr.bf16.mxu0 %v4831_v47 }
 0x95b   :  { %6147 = vmatmul.mubr.msk.bf16.gmra.mrb[76].mxu0 %vm201_vm5, %v8278_v48  ;;  %6116 = vmatprep.mubr.msk.bf16.mxu1 %vm201_vm5, %v8208_v45 }
 0x95c   :  { %6148 = vmatprep.mubr.msk.bf16.mxu0 %vm201_vm5, %v8276_v27 }
 0x95d   :  { %v4815_v25 = vpop.permute.xlu1 %4814 }
 0x95e   :  { %6293 = vmatpush3.bf16.msra.mxu0 %v4815_v25 }
 0x95f   :  { %6294 = vmatprep.subr.bf16.mxu0 %v4833_v58 }
 0x961   :  { %v4817_v11 = vpop.permute.xlu1 %4816 }
 0x962   :  { %6117 = vmatmul.mubr.msk.bf16.gmra.mrb[48].mxu1 %vm201_vm5, %v8208_v45  ;;  %6295 = vmatpush3.bf16.msra.mxu0 %v4817_v11  ;;  %v10094_v45 = vld [vmem:[#allocation34_spill] sm:$0xff] }
 0x963   :  { %6149 = vmatmul.mubr.msk.bf16.gmra.mrb[80].mxu0 %vm201_vm5, %v8276_v27  ;;  %6118 = vmatprep.mubr.msk.bf16.mxu1 %vm201_vm5, %v8226_v26 }
 0x964   :  { %6150 = vmatprep.mubr.msk.bf16.mxu0 %vm201_vm5, %v8294_v62 }
 0x965   :  { %v4835_v50 = vpop.permute.xlu1 %4834 }
 0x966   :  { %6296 = vmatprep.subr.bf16.mxu0 %v4835_v50 }
 0x969   :  { %v4819_v48 = vpop.permute.xlu1 %4818 }
 0x96a   :  { %6119 = vmatmul.mubr.msk.bf16.gmra.mrb[52].mxu1 %vm201_vm5, %v8226_v26  ;;  %6297 = vmatpush3.bf16.msra.mxu0 %v4819_v48  ;;  %v10096_v26 = vld [vmem:[#allocation36_spill] sm:$0xff] }
 0x96b   :  { %6151 = vmatmul.mubr.msk.bf16.gmra.mrb[84].mxu0 %vm201_vm5, %v8294_v62  ;;  %6120 = vmatprep.mubr.msk.bf16.mxu1 %vm201_vm5, %v8224_v32 }
 0x96c   :  { %6152 = vmatprep.mubr.msk.bf16.mxu0 %vm201_vm5, %v8292_v10 }
 0x972   :  { %6121 = vmatmul.mubr.msk.bf16.gmra.mrb[56].mxu1 %vm201_vm5, %v8224_v32  ;;  %v10095_v32 = vld [vmem:[#allocation33_spill] sm:$0xff] }
 0x973   :  { %6153 = vmatmul.mubr.msk.bf16.gmra.mrb[88].mxu0 %vm201_vm5, %v8292_v10  ;;  %6122 = vmatprep.mubr.msk.bf16.mxu1 %vm201_vm5, %v8242_v15 }
 0x974   :  { %6154 = vmatprep.mubr.msk.bf16.mxu0 %vm201_vm5, %v8310_v4 }
 0x97a   :  { %6123 = vmatmul.mubr.msk.bf16.gmra.mrb[60].mxu1 %vm201_vm5, %v8242_v15 }
 0x97b   :  { %6155 = vmatmul.mubr.msk.bf16.gmra.mrb[92].mxu0 %vm201_vm5, %v8310_v4  ;;  %6124 = vmatprep.mubr.msk.bf16.mxu1 %vm201_vm5, %v8240_v56 }
 0x97c   :  { %6156 = vmatprep.mubr.msk.bf16.mxu0 %vm201_vm5, %v8308_v3 }
 0x982   :  { %6125 = vmatmul.mubr.msk.bf16.gmra.mrb[64].mxu1 %vm201_vm5, %v8240_v56  ;;  %v10097_v56 = vld [vmem:[#allocation35_spill] sm:$0xff] }
 0x983   :  { %6157 = vmatmul.mubr.msk.bf16.gmra.mrb[96].mxu0 %vm201_vm5, %v8308_v3 }
 0x984   :  { %6158 = vmatprep.mubr.msk.bf16.mxu0 %vm201_vm5, %v10094_v45 }
 0x98b   :  { %6159 = vmatmul.mubr.msk.bf16.gmra.mrb[100].mxu0 %vm201_vm5, %v10094_v45 }
 0x98c   :  { %6160 = vmatprep.mubr.msk.bf16.mxu0 %vm201_vm5, %v10095_v32 }
 0x993   :  { %6161 = vmatmul.mubr.msk.bf16.gmra.mrb[104].mxu0 %vm201_vm5, %v10095_v32 }
 0x994   :  { %6162 = vmatprep.mubr.msk.bf16.mxu0 %vm201_vm5, %v10096_v26 }
 0x99b   :  { %6163 = vmatmul.mubr.msk.bf16.gmra.mrb[108].mxu0 %vm201_vm5, %v10096_v26 }
 0x99c   :  { %6164 = vmatprep.mubr.msk.bf16.mxu0 %vm201_vm5, %v10097_v56 }
 0x9a3   :  { %6165 = vmatmul.mubr.msk.bf16.gmra.mrb[112].mxu0 %vm201_vm5, %v10097_v56 }
 0x9a4   :  { %6166 = vmatprep.mubr.msk.bf16.mxu0 %vm201_vm5, %v8361_v60 }
 0x9ab   :  { %6167 = vmatmul.mubr.msk.bf16.gmra.mrb[116].mxu0 %vm201_vm5, %v8361_v60 }
 0x9ac   :  { %6168 = vmatprep.mubr.msk.bf16.mxu0 %vm201_vm5, %v8359_v20 }
 0x9b3   :  { %6169 = vmatmul.mubr.msk.bf16.gmra.mrb[120].mxu0 %vm201_vm5, %v8359_v20 }
 0x9b4   :  { %6170 = vmatprep.mubr.msk.bf16.mxu0 %vm201_vm5, %v8380_v22 }
 0x9bb   :  { %6171 = vmatmul.mubr.msk.bf16.gmra.mrb[124].mxu0 %vm201_vm5, %v8380_v22 }
 0x9bc   :  { %6172 = vmatprep.mubr.msk.bf16.mxu0 %vm201_vm5, %v8378_v61 }
 0x9c3   :  { %6173 = vmatmul.mubr.msk.bf16.gmra.mrb[128].mxu0 %vm201_vm5, %v8378_v61 }
 0x9dd   :  { %v8590_v15 = vpop.f32.mrb[4].mxu1 }
 0x9de   :  { %v8592_v27 = vpop.f32.mrb[5].mxu1 }
 0x9df   :  { %v3767_v10 = vmax.f32 %v8590_v15, %v8592_v27  ;;  %v8596_v62 = vpop.f32.mrb[6].mxu1 }
 0x9e0   :  { %v8598_v3 = vpop.f32.mrb[7].mxu1 }
 0x9e1   :  { %v3770_v4 = vmax.f32 %v8596_v62, %v8598_v3  ;;  %3768 = vmax.xlane.f32.xlu0 %v3767_v10 }
 0x9e3   :  { %3771 = vmax.xlane.f32.xlu1 %v3770_v4 }
 0x9e5   :  { %v8602_v20 = vpop.f32.mrb[8].mxu1 }
 0x9e6   :  { %v8604_v60 = vpop.f32.mrb[9].mxu1 }
 0x9e7   :  { %v3773_v61 = vmax.f32 %v8602_v20, %v8604_v60  ;;  %v8608_v22 = vpop.f32.mrb[10].mxu1 }
 0x9e8   :  { %v8610_v44 = vpop.f32.mrb[11].mxu1 }
 0x9e9   :  { %v3776_v8 = vmax.f32 %v8608_v22, %v8610_v44  ;;  %3774 = vmax.xlane.f32.xlu0 %v3773_v61 }
 0x9ed   :  { %v8614_v33 = vpop.f32.mrb[12].mxu1 }
 0x9ee   :  { %v8616_v29 = vpop.f32.mrb[13].mxu1 }
 0x9ef   :  { %v3779_v38 = vmax.f32 %v8614_v33, %v8616_v29  ;;  %v8620_v39 = vpop.f32.mrb[14].mxu1 }
 0x9f0   :  { %v8622_v19 = vpop.f32.mrb[15].mxu1 }
 0x9f1   :  { %v3782_v37 = vmax.f32 %v8620_v39, %v8622_v19 }
 0x9f4   :  { %4820 = vrot.lane.b32.xlu1 %v10098_v43, %s7563_s4 }
 0x9f5   :  { %v8628_v59 = vpop.f32.mrb[16].mxu1 }
 0x9f6   :  { %v8630_v17 = vpop.f32.mrb[17].mxu1 }
 0x9f7   :  { %v3785_v18 = vmax.f32 %v8628_v59, %v8630_v17  ;;  %v8634_v1 = vpop.f32.mrb[18].mxu1 }
 0x9f8   :  { %4838 = vrot.lane.b32.xlu1 %v8374_v21, %s7563_s4  ;;  %v8638_v16 = vpop.f32.mrb[19].mxu1 }
 0x9f9   :  { %10099 = vst [vmem:[#allocation34_spill] sm:$0xff] %v8638_v16  ;;  %v3788_v2 = vmax.f32 %v8634_v1, %v8638_v16 }
 0x9fd   :  { %v8642_v55 = vpop.f32.mrb[20].mxu1 }
 0x9fe   :  { %10100 = vst [vmem:[#allocation33_spill] sm:$0xff] %v8642_v55  ;;  %v8644_v63 = vpop.f32.mrb[21].mxu1 }
 0x9ff   :  { %10101 = vst [vmem:[#allocation36_spill] sm:$0xff] %v8644_v63  ;;  %v3791_v14 = vmax.f32 %v8642_v55, %v8644_v63  ;;  %4836 = vrot.lane.b32.xlu0 %v8376_v36, %s7563_s4  ;;  %v8650_v51 = vpop.f32.mrb[22].mxu1 }
 0xa00   :  { %10102 = vst [vmem:[#allocation35_spill] sm:$0xff] %v8650_v51  ;;  %v8652_v40 = vpop.f32.mrb[23].mxu1 }
 0xa01   :  { %10103 = vst [vmem:[#allocation32_spill] sm:$0xff] %v8652_v40  ;;  %v3794_v21 = vmax.f32 %v8650_v51, %v8652_v40 }
 0xa05   :  { %v8656_v57 = vpop.f32.mrb[24].mxu1 }
 0xa06   :  { %10104 = vst [vmem:[#allocation37_spill] sm:$0xff] %v8656_v57  ;;  %v8658_v42 = vpop.f32.mrb[25].mxu1 }
 0xa07   :  { %10105 = vst [vmem:[#allocation38_spill] sm:$0xff] %v8658_v42  ;;  %v3797_v31 = vmax.f32 %v8656_v57, %v8658_v42  ;;  %v8662_v13 = vpop.f32.mrb[26].mxu1 }
 0xa08   :  { %10106 = vst [vmem:[#allocation39_spill] sm:$0xff] %v8662_v13  ;;  %v8664_v7 = vpop.f32.mrb[27].mxu1 }
 0xa09   :  { %10107 = vst [vmem:[#allocation40_spill] sm:$0xff] %v8664_v7  ;;  %v3800_v36 = vmax.f32 %v8662_v13, %v8664_v7 }
 0xa0d   :  { %v8668_v5 = vpop.f32.mrb[28].mxu1 }
 0xa0e   :  { %10108 = vst [vmem:[#allocation41_spill] sm:$0xff] %v8668_v5  ;;  %v8670_v24 = vpop.f32.mrb[29].mxu1 }
 0xa0f   :  { %10109 = vst [vmem:[#allocation42_spill] sm:$0xff] %v8670_v24  ;;  %v3803_v46 = vmax.f32 %v8668_v5, %v8670_v24  ;;  %v8674_v41 = vpop.f32.mrb[30].mxu1 }
 0xa10   :  { %10110 = vst [vmem:[#allocation43_spill] sm:$0xff] %v8674_v41  ;;  %v8676_v28 = vpop.f32.mrb[31].mxu1 }
 0xa11   :  { %10111 = vst [vmem:[#allocation44_spill] sm:$0xff] %v8676_v28  ;;  %v3806_v0 = vmax.f32 %v8674_v41, %v8676_v28 }
 0xa15   :  { %v8680_v35 = vpop.f32.mrb[32].mxu1 }
 0xa16   :  { %10112 = vst [vmem:[#allocation45_spill] sm:$0xff] %v8680_v35  ;;  %v8682_v49 = vpop.f32.mrb[33].mxu1 }
 0xa17   :  { %10113 = vst [vmem:[#allocation46_spill] sm:$0xff] %v8682_v49  ;;  %v3809_v23 = vmax.f32 %v8680_v35, %v8682_v49  ;;  %v8686_v54 = vpop.f32.mrb[34].mxu1 }
 0xa18   :  { %10114 = vst [vmem:[#allocation47_spill] sm:$0xff] %v8686_v54  ;;  %v8688_v6 = vpop.f32.mrb[35].mxu1 }
 0xa19   :  { %10115 = vst [vmem:[#allocation48_spill] sm:$0xff] %v8688_v6  ;;  %v3812_v12 = vmax.f32 %v8686_v54, %v8688_v6  ;;  %v10157_v54 = vld [vmem:[#allocation31_spill] sm:$0xff] }
 0xa1c   :  { %3777 = vmax.xlane.f32.xlu1 %v3776_v8 }
 0xa1d   :  { %v8692_v53 = vpop.f32.mrb[36].mxu1 }
 0xa1e   :  { %10116 = vst [vmem:[#allocation49_spill] sm:$0xff] %v8692_v53  ;;  %v8694_v34 = vpop.f32.mrb[68].mxu0  ;;  %3780 = vmax.xlane.f32.xlu0 %v3779_v38  ;;  %v8696_v52 = vpop.f32.mrb[37].mxu1 }
 0xa1f   :  { %10117 = vst [vmem:[#allocation50_spill] sm:$0xff] %v8694_v34  ;;  %10118 = vst [vmem:[#allocation51_spill] sm:$0xff] %v8696_v52  ;;  %v8698_v30 = vpop.f32.mrb[69].mxu0  ;;  %v3815_v9 = vmax.f32 %v8692_v53, %v8696_v52  ;;  %v8702_v47 = vpop.f32.mrb[38].mxu1 }
 0xa20   :  { %10119 = vst [vmem:[#allocation52_spill] sm:$0xff] %v8698_v30  ;;  %10120 = vst [vmem:[#allocation53_spill] sm:$0xff] %v8702_v47  ;;  %v3863_v25 = vmax.f32 %v8694_v34, %v8698_v30  ;;  %v8706_v58 = vpop.f32.mrb[70].mxu0  ;;  %3783 = vmax.xlane.f32.xlu1 %v3782_v37  ;;  %v8708_v11 = vpop.f32.mrb[39].mxu1 }
 0xa21   :  { %10121 = vst [vmem:[#allocation54_spill] sm:$0xff] %v8706_v58  ;;  %10122 = vst [vmem:[#allocation55_spill] sm:$0xff] %v8708_v11  ;;  %v8710_v50 = vpop.f32.mrb[71].mxu0  ;;  %v3818_v48 = vmax.f32 %v8702_v47, %v8708_v11 }
 0xa22   :  { %10123 = vst [vmem:[#allocation56_spill] sm:$0xff] %v8710_v50  ;;  %v3866_v45 = vmax.f32 %v8706_v58, %v8710_v50  ;;  %3786 = vmax.xlane.f32.xlu0 %v3785_v18 }
 0xa24   :  { %3789 = vmax.xlane.f32.xlu1 %v3788_v2 }
 0xa25   :  { %v8716_v32 = vpop.f32.mrb[40].mxu1 }
 0xa26   :  { %10124 = vst [vmem:[#allocation57_spill] sm:$0xff] %v8716_v32  ;;  %v8718_v26 = vpop.f32.mrb[72].mxu0  ;;  %3792 = vmax.xlane.f32.xlu0 %v3791_v14  ;;  %v8720_v56 = vpop.f32.mrb[41].mxu1 }
 0xa27   :  { %10125 = vst [vmem:[#allocation58_spill] sm:$0xff] %v8718_v26  ;;  %10126 = vst [vmem:[#allocation59_spill] sm:$0xff] %v8720_v56  ;;  %v8722_v10 = vpop.f32.mrb[73].mxu0  ;;  %v3821_v4 = vmax.f32 %v8716_v32, %v8720_v56  ;;  %v8726_v61 = vpop.f32.mrb[42].mxu1 }
 0xa28   :  { %10127 = vst [vmem:[#allocation60_spill] sm:$0xff] %v8722_v10  ;;  %10128 = vst [vmem:[#allocation61_spill] sm:$0xff] %v8726_v61  ;;  %v3869_v8 = vmax.f32 %v8718_v26, %v8722_v10  ;;  %v8730_v38 = vpop.f32.mrb[74].mxu0  ;;  %3795 = vmax.xlane.f32.xlu1 %v3794_v21  ;;  %v8732_v37 = vpop.f32.mrb[43].mxu1 }
 0xa29   :  { %10129 = vst [vmem:[#allocation62_spill] sm:$0xff] %v8730_v38  ;;  %10130 = vst [vmem:[#allocation63_spill] sm:$0xff] %v8732_v37  ;;  %v8734_v43 = vpop.f32.mrb[75].mxu0  ;;  %v3824_v18 = vmax.f32 %v8726_v61, %v8732_v37 }
 0xa2a   :  { %10131 = vst [vmem:[#allocation64_spill] sm:$0xff] %v8734_v43  ;;  %3798 = vmax.xlane.f32.xlu0 %v3797_v31  ;;  %v10153_v58 = vmax.f32 %v8730_v38, %v8734_v43 }
 0xa2c   :  { %3807 = vmax.xlane.f32.xlu1 %v3806_v0 }
 0xa2d   :  { %v8740_v14 = vpop.f32.mrb[44].mxu1 }
 0xa2e   :  { %10132 = vst [vmem:[#allocation65_spill] sm:$0xff] %v8740_v14  ;;  %v8742_v56 = vpop.f32.mrb[76].mxu0  ;;  %3801 = vmax.xlane.f32.xlu0 %v3800_v36  ;;  %v8744_v10 = vpop.f32.mrb[45].mxu1 }
 0xa2f   :  { %10133 = vst [vmem:[#allocation66_spill] sm:$0xff] %v8742_v56  ;;  %10134 = vst [vmem:[#allocation67_spill] sm:$0xff] %v8744_v10  ;;  %v8746_v21 = vpop.f32.mrb[77].mxu0  ;;  %v3827_v26 = vmax.f32 %v8740_v14, %v8744_v10  ;;  %v8750_v32 = vpop.f32.mrb[46].mxu1 }
 0xa30   :  { %10135 = vst [vmem:[#allocation68_spill] sm:$0xff] %v8746_v21  ;;  %10136 = vst [vmem:[#allocation69_spill] sm:$0xff] %v8750_v32  ;;  %v8754_v2 = vpop.f32.mrb[78].mxu0  ;;  %3813 = vmax.xlane.f32.xlu1 %v3812_v12  ;;  %v8756_v31 = vpop.f32.mrb[47].mxu1 }
 0xa31   :  { %10137 = vst [vmem:[#allocation70_spill] sm:$0xff] %v8754_v2  ;;  %10138 = vst [vmem:[#allocation71_spill] sm:$0xff] %v8756_v31  ;;  %v8758_v0 = vpop.f32.mrb[79].mxu0  ;;  %v3830_v36 = vmax.f32 %v8750_v32, %v8756_v31 }
 0xa32   :  { %10139 = vst [vmem:[#allocation72_spill] sm:$0xff] %v8758_v0  ;;  %3804 = vmax.xlane.f32.xlu0 %v3803_v46  ;;  %v10158_v13 = vmax.f32 %v8754_v2, %v8758_v0 }
 0xa34   :  { %3819 = vmax.xlane.f32.xlu1 %v3818_v48 }
 0xa35   :  { %v8764_v10 = vpop.f32.mrb[48].mxu1 }
 0xa36   :  { %10140 = vst [vmem:[#allocation73_spill] sm:$0xff] %v8764_v10  ;;  %v8766_v14 = vpop.f32.mrb[80].mxu0  ;;  %3810 = vmax.xlane.f32.xlu0 %v3809_v23  ;;  %v8768_v30 = vpop.f32.mrb[49].mxu1 }
 0xa37   :  { %10141 = vst [vmem:[#allocation74_spill] sm:$0xff] %v8766_v14  ;;  %10142 = vst [vmem:[#allocation75_spill] sm:$0xff] %v8768_v30  ;;  %v8770_v12 = vpop.f32.mrb[81].mxu0  ;;  %v8774_v61 = vpop.f32.mrb[50].mxu1  ;;  %v10161_v38 = vmax.f32 %v8764_v10, %v8768_v30 }
 0xa38   :  { %10143 = vst [vmem:[#allocation76_spill] sm:$0xff] %v8770_v12  ;;  %10144 = vst [vmem:[#allocation77_spill] sm:$0xff] %v8774_v61  ;;  %v8778_v34 = vpop.f32.mrb[82].mxu0  ;;  %3867 = vmax.xlane.f32.xlu1 %v3866_v45  ;;  %v8780_v46 = vpop.f32.mrb[51].mxu1 }
 0xa39   :  { %10145 = vst [vmem:[#allocation78_spill] sm:$0xff] %v8778_v34  ;;  %10146 = vst [vmem:[#allocation79_spill] sm:$0xff] %v8780_v46  ;;  %v8782_v48 = vpop.f32.mrb[83].mxu0  ;;  %v3836_v23 = vmax.f32 %v8774_v61, %v8780_v46 }
 0xa3a   :  { %10147 = vst [vmem:[#allocation80_spill] sm:$0xff] %v8782_v48  ;;  %3816 = vmax.xlane.f32.xlu0 %v3815_v9 }
 0xa3c   :  { %3825 = vmax.xlane.f32.xlu1 %v3824_v18 }
 0xa3d   :  { %v8788_v37 = vpop.f32.mrb[52].mxu1 }
 0xa3e   :  { %10148 = vst [vmem:[#allocation81_spill] sm:$0xff] %v8788_v37  ;;  %v8790_v52 = vpop.f32.mrb[84].mxu0  ;;  %3864 = vmax.xlane.f32.xlu0 %v3863_v25  ;;  %v8792_v31 = vpop.f32.mrb[53].mxu1 }
 0xa3f   :  { %10149 = vst [vmem:[#allocation82_spill] sm:$0xff] %v8790_v52  ;;  %10150 = vst [vmem:[#allocation83_spill] sm:$0xff] %v8792_v31  ;;  %v8794_v45 = vpop.f32.mrb[85].mxu0  ;;  %v3839_v53 = vmax.f32 %v8788_v37, %v8792_v31  ;;  %v8798_v50 = vpop.f32.mrb[54].mxu1 }
 0xa40   :  { %10151 = vst [vmem:[#allocation84_spill] sm:$0xff] %v8794_v45  ;;  %v8802_v32 = vpop.f32.mrb[86].mxu0  ;;  %3831 = vmax.xlane.f32.xlu1 %v3830_v36  ;;  %v8804_v9 = vpop.f32.mrb[55].mxu1  ;;  %v10169_v2 = vmax.f32 %v8790_v52, %v8794_v45 }
 0xa41   :  { %v8806_v18 = vpop.f32.mrb[87].mxu0 }
 0xa42   :  { %10152 = vst [vmem:[#allocation85_spill] sm:$0xff] %v8806_v18  ;;  %3822 = vmax.xlane.f32.xlu0 %v3821_v4 }
 0xa44   :  { %3837 = vmax.xlane.f32.xlu1 %v3836_v23  ;;  %v10156_v23 = vmax.f32 %v8742_v56, %v8746_v21 }
 0xa45   :  { %v8812_v31 = vpop.f32.mrb[56].mxu1 }
 0xa46   :  { %v8814_v37 = vpop.f32.mrb[88].mxu0  ;;  %3870 = vmax.xlane.f32.xlu0 %v3869_v8  ;;  %v8816_v46 = vpop.f32.mrb[57].mxu1 }
 0xa47   :  { %v8818_v36 = vpop.f32.mrb[89].mxu0  ;;  %v8822_v49 = vpop.f32.mrb[58].mxu1 }
 0xa48   :  { %v8826_v61 = vpop.f32.mrb[90].mxu0  ;;  %v8828_v4 = vpop.f32.mrb[59].mxu1 }
 0xa49   :  { %v8832_v8 = vpop.f32.mrb[91].mxu0 }
 0xa4a   :  { %3873 = vmax.xlane.f32.xlu0 %v10153_v58 }
 0xa4d   :  { %v8839_v11 = vpop.f32.mrb[60].mxu1 }
 0xa4e   :  { %v8841_v47 = vpop.f32.mrb[92].mxu0  ;;  %3828 = vmax.xlane.f32.xlu0 %v3827_v26  ;;  %v8843_v25 = vpop.f32.mrb[61].mxu1 }
 0xa4f   :  { %10154 = vst [vmem:[#allocation86_spill] sm:$0xff] %v8841_v47  ;;  %v8845_v24 = vpop.f32.mrb[93].mxu0  ;;  %v8849_v5 = vpop.f32.mrb[62].mxu1 }
 0xa50   :  { %10155 = vst [vmem:[#allocation87_spill] sm:$0xff] %v8845_v24  ;;  %v8853_v6 = vpop.f32.mrb[94].mxu0  ;;  %v8855_v58 = vpop.f32.mrb[63].mxu1 }
 0xa51   :  { %v8859_v26 = vpop.f32.mrb[95].mxu0 }
 0xa52   :  { %3876 = vmax.xlane.f32.xlu0 %v10156_v23 }
 0xa55   :  { %4822 = vrot.lane.b32.xlu1 %v10157_v54, %s7563_s4  ;;  %v8868_v35 = vpop.f32.mrb[64].mxu1  ;;  %v10162_v54 = vmax.f32 %v8766_v14, %v8770_v12 }
 0xa56   :  { %v8870_v7 = vpop.f32.mrb[96].mxu0  ;;  %3879 = vmax.xlane.f32.xlu0 %v10158_v13  ;;  %v8875_v43 = vpop.f32.mrb[65].mxu1 }
 0xa57   :  { %v8877_v28 = vpop.f32.mrb[97].mxu0  ;;  %v8881_v21 = vpop.f32.mrb[66].mxu1 }
 0xa58   :  { %v8885_v23 = vpop.f32.mrb[98].mxu0  ;;  %v8887_v56 = vpop.f32.mrb[67].mxu1 }
 0xa59   :  { %10159 = vst [vmem:[#allocation31_spill] sm:$0xff] %v8885_v23  ;;  %v8891_v13 = vpop.f32.mrb[99].mxu0 }
 0xa5a   :  { %10160 = vst [vmem:[#allocation88_spill] sm:$0xff] %v8891_v13  ;;  %3834 = vmax.xlane.f32.xlu0 %v10161_v38  ;;  %v10165_v38 = vmax.f32 %v8778_v34, %v8782_v48 }
 0xa5e   :  { %v8898_v41 = vpop.f32.mrb[100].mxu0  ;;  %3882 = vmax.xlane.f32.xlu0 %v10162_v54 }
 0xa5f   :  { %v8903_v42 = vpop.f32.mrb[101].mxu0 }
 0xa60   :  { %v8907_v57 = vpop.f32.mrb[102].mxu0 }
 0xa61   :  { %10163 = vst [vmem:[#allocation89_spill] sm:$0xff] %v8907_v57  ;;  %v8909_v40 = vpop.f32.mrb[103].mxu0 }
 0xa62   :  { %10164 = vst [vmem:[#allocation90_spill] sm:$0xff] %v8909_v40  ;;  %3885 = vmax.xlane.f32.xlu0 %v10165_v38 }
 0xa66   :  { %v8916_v30 = vpop.f32.mrb[104].mxu0  ;;  %3840 = vmax.xlane.f32.xlu0 %v3839_v53  ;;  %v10171_v53 = vmax.f32 %v8802_v32, %v8806_v18 }
 0xa67   :  { %v8918_v54 = vpop.f32.mrb[105].mxu0 }
 0xa68   :  { %10166 = vst [vmem:[#allocation91_spill] sm:$0xff] %v8918_v54  ;;  %v8922_v0 = vpop.f32.mrb[106].mxu0 }
 0xa69   :  { %10167 = vst [vmem:[#allocation92_spill] sm:$0xff] %v8922_v0  ;;  %v8924_v14 = vpop.f32.mrb[107].mxu0 }
 0xa6a   :  { %10168 = vst [vmem:[#allocation93_spill] sm:$0xff] %v8924_v14  ;;  %3888 = vmax.xlane.f32.xlu0 %v10169_v2 }
 0xa6e   :  { %v8931_v38 = vpop.f32.mrb[108].mxu0  ;;  %v3769_v48 = vpop.xlane.xlu0 %3768  ;;  %3891 = vmax.xlane.f32.xlu0 %v10171_v53 }
 0xa6f   :  { %10170 = vst [vmem:[#allocation94_spill] sm:$0xff] %v8931_v38  ;;  %v8936_v34 = vpop.f32.mrb[109].mxu0  ;;  %v3959_v12 = vsub.f32 %v8590_v15, %v3769_v48  ;;  %v3960_v51 = vsub.f32 %v8592_v27, %v3769_v48  ;;  %v10175_v15 = vmax.f32 %v8812_v31, %v8816_v46 }
 0xa70   :  { %10172 = vst [vmem:[#allocation95_spill] sm:$0xff] %v8936_v34  ;;  %v8942_v63 = vpop.f32.mrb[110].mxu0  ;;  %v3772_v45 = vpop.xlane.xlu1 %3771 }
 0xa71   :  { %10173 = vst [vmem:[#allocation96_spill] sm:$0xff] %v8942_v63  ;;  %v4087_v2 = vmul.f32 1.442695, %v3959_v12  ;;  %v4089_v52 = vmul.f32 1.442695, %v3960_v51  ;;  %v8944_v55 = vpop.f32.mrb[111].mxu0  ;;  %v3961_v16 = vsub.f32 %v8596_v62, %v3772_v45  ;;  %v3962_v53 = vsub.f32 %v8598_v3, %v3772_v45 }
 0xa72   :  { %10174 = vst [vmem:[#allocation97_spill] sm:$0xff] %v8944_v55  ;;  %3846 = vmax.xlane.f32.xlu0 %v10175_v15  ;;  %v10177_v62 = vmax.f32 %v8814_v37, %v8818_v36 }
 0xa73   :  { %7055 = vpow2.f32 %v4087_v2  ;;  %v4091_v27 = vmul.f32 1.442695, %v3961_v16  ;;  %v4093_v48 = vmul.f32 1.442695, %v3962_v53 }
 0xa74   :  { %7057 = vpow2.f32 %v4089_v52  ;;  %v4821_v12 = vpop.permute.xlu1 %4820 }
 0xa75   :  { %7059 = vpow2.f32 %v4091_v27 }
 0xa76   :  { %7061 = vpow2.f32 %v4093_v48  ;;  %v8953_v51 = vpop.f32.mrb[112].mxu0  ;;  %v3775_v10 = vpop.xlane.xlu0 %3774  ;;  %3894 = vmax.xlane.f32.xlu0 %v10177_v62  ;;  %v10181_v48 = vmax.f32 %v8798_v50, %v8804_v9  ;;  %v10185_v62 = vmax.f32 %v8841_v47, %v8845_v24 }
 0xa77   :  { %10176 = vst [vmem:[#allocation98_spill] sm:$0xff] %v8953_v51  ;;  %v8958_v3 = vpop.f32.mrb[113].mxu0  ;;  %v3963_v45 = vsub.f32 %v8602_v20, %v3775_v10  ;;  %v3964_v15 = vsub.f32 %v8604_v60, %v3775_v10  ;;  %v10182_v20 = vmax.f32 %v8839_v11, %v8843_v25 }
 0xa78   :  { %10178 = vst [vmem:[#allocation99_spill] sm:$0xff] %v8958_v3  ;;  %v3929_v16 = vmax.f32 %v8953_v51, %v8958_v3  ;;  %v8964_v52 = vpop.f32.mrb[114].mxu0  ;;  %v4839_v60 = vpop.permute.xlu1 %4838  ;;  %v10190_v51 = vmax.f32 %v8826_v61, %v8832_v8 }
 0xa79   :  { %10179 = vst [vmem:[#allocation100_spill] sm:$0xff] %v8964_v52  ;;  %v4095_v2 = vmul.f32 1.442695, %v3963_v45  ;;  %v4097_v53 = vmul.f32 1.442695, %v3964_v15  ;;  %v8966_v27 = vpop.f32.mrb[115].mxu0  ;;  %3843 = vmax.xlane.f32.xlu1 %v10181_v48  ;;  %v10183_v45 = vmax.f32 %v8822_v49, %v8828_v4 }
 0xa7a   :  { %10180 = vst [vmem:[#allocation101_spill] sm:$0xff] %v8966_v27  ;;  %v4837_v18 = vpop.permute.xlu0 %4836  ;;  %3852 = vmax.xlane.f32.xlu0 %v10182_v20 }
 0xa7b   :  { %7063 = vpow2.f32 %v4095_v2  ;;  %6298 = vmatprep.subr.bf16.mxu0 %v4837_v18 }
 0xa7c   :  { %7065 = vpow2.f32 %v4097_v53  ;;  %6299 = vmatpush3.bf16.msra.mxu0 %v4821_v12 }
 0xa7d   :  { %v7056_v10 = vpop.eup %7055  ;;  %6300 = vmatprep.subr.bf16.mxu0 %v4839_v60  ;;  %3849 = vmax.xlane.f32.xlu1 %v10183_v45 }
 0xa7e   :  { %v7058_v15 = vpop.eup %7057  ;;  %v8979_v48 = vpop.f32.mrb[116].mxu0  ;;  %3900 = vmax.xlane.f32.xlu0 %v10185_v62 }
 0xa7f   :  { %10184 = vst [vmem:[#allocation102_spill] sm:$0xff] %v8979_v48  ;;  %v7060_v3 = vpop.eup %7059  ;;  %v8984_v20 = vpop.f32.mrb[117].mxu0  ;;  %v8986_v18 = vadd.f32 %v7058_v15, %v7056_v10 }
 0xa80   :  { %10186 = vst [vmem:[#allocation103_spill] sm:$0xff] %v8984_v20  ;;  %v7062_v2 = vpop.eup %7061  ;;  %v3935_v12 = vmax.f32 %v8979_v48, %v8984_v20  ;;  %v8990_v53 = vpop.f32.mrb[118].mxu0  ;;  %v4535_v60 = vpack.c.bf16 %v7060_v3, %v7056_v10  ;;  %v10193_v10 = vmax.f32 %v8849_v5, %v8855_v58 }
 0xa81   :  { %10187 = vst [vmem:[#allocation104_spill] sm:$0xff] %v8986_v18  ;;  %10188 = vst [vmem:[#allocation105_spill] sm:$0xff] %v8990_v53  ;;  %v8992_v45 = vpop.f32.mrb[119].mxu0  ;;  %3897 = vmax.xlane.f32.xlu1 %v10190_v51  ;;  %v4536_v24 = vpack.c.bf16 %v7062_v2, %v7058_v15  ;;  %v8997_v62 = vadd.f32 %v7062_v2, %v7060_v3  ;;  %v10192_v18 = vmax.f32 %v8868_v35, %v8875_v43 }
 0xa82   :  { %10189 = vst [vmem:[#allocation106_spill] sm:$0xff] %v8992_v45  ;;  %v3938_v47 = vmax.f32 %v8990_v53, %v8992_v45  ;;  %v10195_v3 = vmax.f32 %v8870_v7, %v8877_v28  ;;  %v10202_v45 = vmax.f32 %v8881_v21, %v8887_v56 }
 0xa83   :  { %10191 = vst [vmem:[#allocation107_spill] sm:$0xff] %v8997_v62  ;;  %3858 = vmax.xlane.f32.xlu0 %v10192_v18  ;;  %4679 = vmatprep.mubr.bf16.mxu1 %v4536_v24  ;;  %v10201_v62 = vmax.f32 %v8898_v41, %v8903_v42 }
 0xa84   :  { %4680 = vmatmul.mubr.bf16.vlgmr.msra.gmra.mrb[68].mxu1 %v4535_v60 }
 0xa85   :  { %v9004_v20 = vpop.eup %7063  ;;  %3855 = vmax.xlane.f32.xlu1 %v10193_v10  ;;  %v10200_v10 = vmax.f32 %v8853_v6, %v8859_v26 }
 0xa86   :  { %v9009_v48 = vpop.eup %7065  ;;  %v9011_v51 = vpop.f32.mrb[120].mxu0 }
 0xa87   :  { %10194 = vst [vmem:[#allocation108_spill] sm:$0xff] %v9011_v51  ;;  %3906 = vmax.xlane.f32.xlu0 %v10195_v3  ;;  %v9016_v15 = vpop.f32.mrb[121].mxu0  ;;  %v9020_v24 = vadd.f32 %v9009_v48, %v9004_v20 }
 0xa88   :  { %10196 = vst [vmem:[#allocation109_spill] sm:$0xff] %v9016_v15  ;;  %v3941_v18 = vmax.f32 %v9011_v51, %v9016_v15  ;;  %v9024_v2 = vpop.f32.mrb[122].mxu0  ;;  %v10209_v51 = vmax.f32 %v8931_v38, %v8936_v34 }
 0xa89   :  { %10197 = vst [vmem:[#allocation110_spill] sm:$0xff] %v9020_v24  ;;  %10198 = vst [vmem:[#allocation111_spill] sm:$0xff] %v9024_v2  ;;  %v9026_v60 = vpop.f32.mrb[123].mxu0  ;;  %3903 = vmax.xlane.f32.xlu1 %v10200_v10  ;;  %v10204_v24 = vmax.f32 %v8916_v30, %v8918_v54 }
 0xa8a   :  { %10199 = vst [vmem:[#allocation112_spill] sm:$0xff] %v9026_v60  ;;  %v3944_v3 = vmax.f32 %v9024_v2, %v9026_v60 }
 0xa8b   :  { %3912 = vmax.xlane.f32.xlu0 %v10201_v62  ;;  %v10208_v62 = vmax.f32 %v8885_v23, %v8891_v13 }
 0xa8d   :  { %3861 = vmax.xlane.f32.xlu1 %v10202_v45 }
 0xa8e   :  { %v9039_v53 = vpop.f32.mrb[124].mxu0 }
 0xa8f   :  { %10203 = vst [vmem:[#allocation113_spill] sm:$0xff] %v9039_v53  ;;  %3918 = vmax.xlane.f32.xlu0 %v10204_v24  ;;  %v9044_v15 = vpop.f32.mrb[125].mxu0  ;;  %v10210_v24 = vmax.f32 %v8907_v57, %v8909_v40 }
 0xa90   :  { %10205 = vst [vmem:[#allocation114_spill] sm:$0xff] %v9044_v15  ;;  %v3947_v10 = vmax.f32 %v9039_v53, %v9044_v15  ;;  %v9048_v60 = vpop.f32.mrb[126].mxu0 }
 0xa91   :  { %10206 = vst [vmem:[#allocation115_spill] sm:$0xff] %v9048_v60  ;;  %v9050_v2 = vpop.f32.mrb[127].mxu0  ;;  %3909 = vmax.xlane.f32.xlu1 %v10208_v62 }
 0xa92   :  { %10207 = vst [vmem:[#allocation116_spill] sm:$0xff] %v9050_v2  ;;  %v3950_v45 = vmax.f32 %v9048_v60, %v9050_v2  ;;  %v10215_v2 = vmax.f32 %v8922_v0, %v8924_v14 }
 0xa93   :  { %3924 = vmax.xlane.f32.xlu0 %v10209_v51 }
 0xa95   :  { %3915 = vmax.xlane.f32.xlu1 %v10210_v24  ;;  %v10217_v24 = vmax.f32 %v8964_v52, %v8966_v27 }
 0xa96   :  { %v9063_v15 = vpop.f32.mrb[128].mxu0 }
 0xa97   :  { %10211 = vst [vmem:[#allocation117_spill] sm:$0xff] %v9063_v15  ;;  %3930 = vmax.xlane.f32.xlu0 %v3929_v16  ;;  %v9065_v53 = vpop.f32.mrb[129].mxu0  ;;  %v10216_v16 = vmax.f32 %v8942_v63, %v8944_v55 }
 0xa98   :  { %10212 = vst [vmem:[#allocation118_spill] sm:$0xff] %v9065_v53  ;;  %v3953_v13 = vmax.f32 %v9063_v15, %v9065_v53  ;;  %v9069_v62 = vpop.f32.mrb[130].mxu0 }
 0xa99   :  { %10213 = vst [vmem:[#allocation119_spill] sm:$0xff] %v9069_v62  ;;  %v9071_v23 = vpop.f32.mrb[131].mxu0  ;;  %3921 = vmax.xlane.f32.xlu1 %v10215_v2 }
 0xa9a   :  { %10214 = vst [vmem:[#allocation120_spill] sm:$0xff] %v9071_v23  ;;  %v3956_v51 = vmax.f32 %v9069_v62, %v9071_v23 }
 0xa9b   :  { %3936 = vmax.xlane.f32.xlu0 %v3935_v12 }
 0xa9d   :  { %3927 = vmax.xlane.f32.xlu1 %v10216_v16 }
 0xa9f   :  { %3942 = vmax.xlane.f32.xlu0 %v3941_v18 }
 0xaa1   :  { %3933 = vmax.xlane.f32.xlu1 %v10217_v24 }
 0xaa3   :  { %3948 = vmax.xlane.f32.xlu0 %v3947_v10 }
 0xaa5   :  { %3939 = vmax.xlane.f32.xlu1 %v3938_v47 }
 0xaa7   :  { %3954 = vmax.xlane.f32.xlu0 %v3953_v13 }
 0xaa9   :  { %v3778_v60 = vpop.xlane.xlu1 %3777  ;;  %3945 = vmax.xlane.f32.xlu1 %v3944_v3 }
 0xaaa   :  { %v3965_v2 = vsub.f32 %v8608_v22, %v3778_v60  ;;  %v3966_v53 = vsub.f32 %v8610_v44, %v3778_v60 }
 0xaab   :  { %v3781_v23 = vpop.xlane.xlu0 %3780 }
 0xaac   :  { %v4099_v12 = vmul.f32 1.442695, %v3965_v2  ;;  %v4101_v62 = vmul.f32 1.442695, %v3966_v53  ;;  %v3967_v15 = vsub.f32 %v8614_v33, %v3781_v23  ;;  %v3968_v18 = vsub.f32 %v8616_v29, %v3781_v23  ;;  %v10219_v2 = vld [vmem:[#allocation33_spill] sm:$0xff] }
 0xaad   :  { %v3784_v16 = vpop.xlane.xlu1 %3783  ;;  %3951 = vmax.xlane.f32.xlu1 %v3950_v45 }
 0xaae   :  { %7067 = vpow2.f32 %v4099_v12  ;;  %v4103_v24 = vmul.f32 1.442695, %v3967_v15  ;;  %v4105_v10 = vmul.f32 1.442695, %v3968_v18  ;;  %v3969_v47 = vsub.f32 %v8620_v39, %v3784_v16  ;;  %v10218_v39 = vld [vmem:[#allocation34_spill] sm:$0xff] }
 0xaaf   :  { %7069 = vpow2.f32 %v4101_v62  ;;  %v3970_v13 = vsub.f32 %v8622_v19, %v3784_v16  ;;  %v3787_v22 = vpop.xlane.xlu0 %3786 }
 0xab0   :  { %7071 = vpow2.f32 %v4103_v24  ;;  %v4107_v44 = vmul.f32 1.442695, %v3969_v47  ;;  %v3971_v60 = vsub.f32 %v8628_v59, %v3787_v22  ;;  %v3972_v53 = vsub.f32 %v8630_v17, %v3787_v22  ;;  %v10220_v59 = vld [vmem:[#allocation36_spill] sm:$0xff] }
 0xab1   :  { %7073 = vpow2.f32 %v4105_v10  ;;  %v4109_v33 = vmul.f32 1.442695, %v3970_v13  ;;  %v3790_v29 = vpop.xlane.xlu1 %3789  ;;  %3957 = vmax.xlane.f32.xlu1 %v3956_v51  ;;  %v10221_v10 = vld [vmem:[#allocation35_spill] sm:$0xff] }
 0xab2   :  { %7075 = vpow2.f32 %v4107_v44  ;;  %v4111_v23 = vmul.f32 1.442695, %v3971_v60  ;;  %v4113_v15 = vmul.f32 1.442695, %v3972_v53  ;;  %v3973_v3 = vsub.f32 %v8634_v1, %v3790_v29  ;;  %v10222_v1 = vld [vmem:[#allocation32_spill] sm:$0xff]  ;;  %v10223_v53 = vld [vmem:[#allocation37_spill] sm:$0xff] }
 0xab3   :  { %7077 = vpow2.f32 %v4109_v33  ;;  %v3974_v45 = vsub.f32 %v10218_v39, %v3790_v29  ;;  %v3793_v19 = vpop.xlane.xlu0 %3792  ;;  %v10224_v29 = vld [vmem:[#allocation38_spill] sm:$0xff] }
 0xab4   :  { %7079 = vpow2.f32 %v4111_v23  ;;  %v4115_v62 = vmul.f32 1.442695, %v3973_v3  ;;  %v3975_v12 = vsub.f32 %v10219_v2, %v3793_v19  ;;  %v3976_v18 = vsub.f32 %v10220_v59, %v3793_v19 }
 0xab5   :  { %7081 = vpow2.f32 %v4113_v15  ;;  %v4117_v17 = vmul.f32 1.442695, %v3974_v45  ;;  %v3796_v16 = vpop.xlane.xlu1 %3795 }
 0xab6   :  { %7083 = vpow2.f32 %v4115_v62  ;;  %v4119_v51 = vmul.f32 1.442695, %v3975_v12  ;;  %v4121_v24 = vmul.f32 1.442695, %v3976_v18  ;;  %v3977_v47 = vsub.f32 %v10221_v10, %v3796_v16  ;;  %v10225_v12 = vld [vmem:[#allocation43_spill] sm:$0xff] }
 0xab7   :  { %7085 = vpow2.f32 %v4117_v17  ;;  %v3978_v13 = vsub.f32 %v10222_v1, %v3796_v16  ;;  %v3799_v22 = vpop.xlane.xlu0 %3798  ;;  %v10226_v17 = vld [vmem:[#allocation44_spill] sm:$0xff] }
 0xab8   :  { %v7068_v44 = vpop.eup %7067  ;;  %7087 = vpow2.f32 %v4119_v51  ;;  %v4123_v60 = vmul.f32 1.442695, %v3977_v47  ;;  %v3979_v33 = vsub.f32 %v10223_v53, %v3799_v22  ;;  %v3980_v23 = vsub.f32 %v10224_v29, %v3799_v22  ;;  %v10229_v22 = vld [vmem:[#allocation40_spill] sm:$0xff] }
 0xab9   :  { %v7070_v3 = vpop.eup %7069  ;;  %7089 = vpow2.f32 %v4121_v24  ;;  %v4125_v15 = vmul.f32 1.442695, %v3978_v13  ;;  %v3808_v39 = vpop.xlane.xlu1 %3807  ;;  %v4537_v45 = vpack.c.bf16 %v7068_v44, %v9004_v20  ;;  %v10228_v20 = vld [vmem:[#allocation39_spill] sm:$0xff] }
 0xaba   :  { %v9101_v19 = vpop.eup %7071  ;;  %7091 = vpow2.f32 %v4123_v60  ;;  %v4127_v62 = vmul.f32 1.442695, %v3979_v33  ;;  %v4129_v2 = vmul.f32 1.442695, %v3980_v23  ;;  %v3985_v59 = vsub.f32 %v10225_v12, %v3808_v39 }
 0xabb   :  { %v7074_v18 = vpop.eup %7073  ;;  %7093 = vpow2.f32 %v4125_v15  ;;  %v3986_v16 = vsub.f32 %v10226_v17, %v3808_v39  ;;  %v4538_v51 = vpack.c.bf16 %v7070_v3, %v9009_v48  ;;  %v3802_v10 = vpop.xlane.xlu0 %3801  ;;  %v9106_v47 = vadd.f32 %v7070_v3, %v7068_v44  ;;  %v10231_v39 = vld [vmem:[#allocation47_spill] sm:$0xff] }
 0xabc   :  { %v7076_v24 = vpop.eup %7075  ;;  %7095 = vpow2.f32 %v4127_v62  ;;  %v4139_v1 = vmul.f32 1.442695, %v3985_v59  ;;  %v3981_v13 = vsub.f32 %v10228_v20, %v3802_v10  ;;  %v3982_v60 = vsub.f32 %v10229_v22, %v3802_v10  ;;  %v10232_v59 = vld [vmem:[#allocation48_spill] sm:$0xff]  ;;  %v10234_v20 = vld [vmem:[#allocation41_spill] sm:$0xff] }
 0xabd   :  { %10227 = vst [vmem:[#allocation34_spill] sm:$0xff] %v9106_v47  ;;  %v7078_v53 = vpop.eup %7077  ;;  %7097 = vpow2.f32 %v4129_v2  ;;  %v4141_v33 = vmul.f32 1.442695, %v3986_v16  ;;  %4687 = vmatprep.mubr.bf16.mxu1 %v4538_v51  ;;  %v3814_v29 = vpop.xlane.xlu1 %3813  ;;  %v4539_v23 = vpack.c.bf16 %v7076_v24, %v9101_v19  ;;  %v9112_v15 = vadd.f32 %v7074_v18, %v9101_v19 }
 0xabe   :  { %v9114_v48 = vpop.eup %7079  ;;  %7099 = vpow2.f32 %v4139_v1  ;;  %v4131_v44 = vmul.f32 1.442695, %v3981_v13  ;;  %v4133_v3 = vmul.f32 1.442695, %v3982_v60  ;;  %4688 = vmatmul.mubr.bf16.gmra.mrb[72].mxu1 %v4537_v45  ;;  %v3989_v62 = vsub.f32 %v10231_v39, %v3814_v29  ;;  %v10235_v1 = vld [vmem:[#allocation42_spill] sm:$0xff] }
 0xabf   :  { %10230 = vst [vmem:[#allocation33_spill] sm:$0xff] %v9112_v15  ;;  %v7082_v12 = vpop.eup %7081  ;;  %7101 = vpow2.f32 %v4141_v33  ;;  %v3990_v2 = vsub.f32 %v10232_v59, %v3814_v29  ;;  %v4540_v17 = vpack.c.bf16 %v7078_v53, %v7074_v18  ;;  %v3805_v16 = vpop.xlane.xlu0 %3804  ;;  %v9118_v51 = vadd.f32 %v7078_v53, %v7076_v24  ;;  %v10252_v15 = vld [vmem:[#allocation52_spill] sm:$0xff] }
 0xac0   :  { %v9120_v10 = vpop.eup %7083  ;;  %7103 = vpow2.f32 %v4131_v44  ;;  %v4147_v19 = vmul.f32 1.442695, %v3989_v62  ;;  %v3983_v22 = vsub.f32 %v10234_v20, %v3805_v16  ;;  %v3984_v13 = vsub.f32 %v10235_v1, %v3805_v16  ;;  %v10237_v44 = vld [vmem:[#allocation53_spill] sm:$0xff] }
 0xac1   :  { %10233 = vst [vmem:[#allocation36_spill] sm:$0xff] %v9118_v51  ;;  %v7086_v60 = vpop.eup %7085  ;;  %7105 = vpow2.f32 %v4133_v3  ;;  %v4149_v45 = vmul.f32 1.442695, %v3990_v2  ;;  %4695 = vmatprep.mubr.bf16.mxu1 %v4540_v17  ;;  %v3820_v39 = vpop.xlane.xlu1 %3819  ;;  %v9127_v18 = vadd.f32 %v7082_v12, %v9114_v48  ;;  %v10238_v3 = vld [vmem:[#allocation55_spill] sm:$0xff]  ;;  %v10240_v51 = vld [vmem:[#allocation45_spill] sm:$0xff] }
 0xac2   :  { %v9129_v24 = vpop.eup %7087  ;;  %7107 = vpow2.f32 %v4147_v19  ;;  %v4135_v53 = vmul.f32 1.442695, %v3983_v22  ;;  %v4137_v29 = vmul.f32 1.442695, %v3984_v13  ;;  %v3993_v62 = vsub.f32 %v10237_v44, %v3820_v39  ;;  %v10241_v22 = vld [vmem:[#allocation46_spill] sm:$0xff] }
 0xac3   :  { %10236 = vst [vmem:[#allocation35_spill] sm:$0xff] %v9127_v18  ;;  %v9132_v59 = vpop.eup %7089  ;;  %7109 = vpow2.f32 %v4149_v45  ;;  %v3994_v2 = vsub.f32 %v10238_v3, %v3820_v39  ;;  %v3811_v17 = vpop.xlane.xlu0 %3810  ;;  %v4542_v16 = vpack.c.bf16 %v7086_v60, %v7082_v12  ;;  %v9136_v20 = vadd.f32 %v7086_v60, %v9120_v10 }
 0xac4   :  { %v9138_v1 = vpop.eup %7091  ;;  %7111 = vpow2.f32 %v4135_v53  ;;  %v4155_v33 = vmul.f32 1.442695, %v3993_v62  ;;  %v3987_v19 = vsub.f32 %v10240_v51, %v3811_v17  ;;  %v3988_v13 = vsub.f32 %v10241_v22, %v3811_v17  ;;  %v10243_v51 = vld [vmem:[#allocation54_spill] sm:$0xff] }
 0xac5   :  { %10239 = vst [vmem:[#allocation32_spill] sm:$0xff] %v9136_v20  ;;  %v7094_v18 = vpop.eup %7093  ;;  %7113 = vpow2.f32 %v4137_v29  ;;  %v4157_v44 = vmul.f32 1.442695, %v3994_v2  ;;  %v3868_v47 = vpop.xlane.xlu1 %3867  ;;  %v9146_v12 = vadd.f32 %v9132_v59, %v9129_v24  ;;  %v10244_v29 = vld [vmem:[#allocation56_spill] sm:$0xff] }
 0xac6   :  { %v9148_v60 = vpop.eup %7095  ;;  %7115 = vpow2.f32 %v4155_v33  ;;  %v4143_v39 = vmul.f32 1.442695, %v3987_v19  ;;  %v4145_v53 = vmul.f32 1.442695, %v3988_v13  ;;  %4696 = vmatmul.mubr.bf16.gmra.mrb[76].mxu1 %v4539_v23  ;;  %v4025_v62 = vsub.f32 %v10243_v51, %v3868_v47  ;;  %v10246_v19 = vld [vmem:[#allocation49_spill] sm:$0xff]  ;;  %v10247_v13 = vld [vmem:[#allocation51_spill] sm:$0xff] }
 0xac7   :  { %10242 = vst [vmem:[#allocation37_spill] sm:$0xff] %v9146_v12  ;;  %v9151_v3 = vpop.eup %7097  ;;  %7117 = vpow2.f32 %v4157_v44  ;;  %4703 = vmatprep.mubr.bf16.mxu1 %v4542_v16  ;;  %v4026_v2 = vsub.f32 %v10244_v29, %v3868_v47  ;;  %v3817_v17 = vpop.xlane.xlu0 %3816  ;;  %v4544_v22 = vpack.c.bf16 %v7094_v18, %v9132_v59  ;;  %v9156_v45 = vadd.f32 %v7094_v18, %v9138_v1 }
 0xac8   :  { %v9158_v20 = vpop.eup %7099  ;;  %7119 = vpow2.f32 %v4143_v39  ;;  %v4219_v33 = vmul.f32 1.442695, %v4025_v62  ;;  %v3991_v23 = vsub.f32 %v10246_v19, %v3817_v17  ;;  %v3992_v51 = vsub.f32 %v10247_v13, %v3817_v17  ;;  %v10249_v39 = vld [vmem:[#allocation61_spill] sm:$0xff]  ;;  %v10250_v17 = vld [vmem:[#allocation63_spill] sm:$0xff] }
 0xac9   :  { %10245 = vst [vmem:[#allocation38_spill] sm:$0xff] %v9156_v45  ;;  %v9162_v12 = vpop.eup %7101  ;;  %7121 = vpow2.f32 %v4145_v53  ;;  %v4221_v16 = vmul.f32 1.442695, %v4026_v2  ;;  %v3826_v44 = vpop.xlane.xlu1 %3825  ;;  %v9166_v47 = vadd.f32 %v9151_v3, %v9148_v60 }
 0xaca   :  { %v9168_v59 = vpop.eup %7103  ;;  %7123 = vpow2.f32 %v4219_v33  ;;  %v4151_v18 = vmul.f32 1.442695, %v3991_v23  ;;  %v4153_v29 = vmul.f32 1.442695, %v3992_v51  ;;  %v3997_v62 = vsub.f32 %v10249_v39, %v3826_v44  ;;  %v10251_v23 = vld [vmem:[#allocation50_spill] sm:$0xff] }
 0xacb   :  { %10248 = vst [vmem:[#allocation43_spill] sm:$0xff] %v9166_v47  ;;  %v9171_v45 = vpop.eup %7105  ;;  %7125 = vpow2.f32 %v4221_v16  ;;  %v3998_v19 = vsub.f32 %v10250_v17, %v3826_v44  ;;  %v3865_v13 = vpop.xlane.xlu0 %3864  ;;  %v4382_v53 = vadd.f32 %v9162_v12, %v9158_v20 }
 0xacc   :  { %v9178_v47 = vpop.eup %7107  ;;  %7127 = vpow2.f32 %v4151_v18  ;;  %v4163_v33 = vmul.f32 1.442695, %v3997_v62  ;;  %v4023_v51 = vsub.f32 %v10251_v23, %v3865_v13  ;;  %v4024_v39 = vsub.f32 %v10252_v15, %v3865_v13 }
 0xacd   :  { %v9182_v27 = vpop.eup %7109  ;;  %7129 = vpow2.f32 %v4153_v29  ;;  %v4165_v16 = vmul.f32 1.442695, %v3998_v19  ;;  %4383 = vadd.xlane.f32.xlu1 %v4382_v53  ;;  %v3832_v44 = vpop.xlane.xlu1 %3831  ;;  %v4546_v17 = vpack.c.bf16 %v9171_v45, %v9151_v3  ;;  %v9188_v2 = vadd.f32 %v9171_v45, %v9168_v59  ;;  %v10255_v29 = vld [vmem:[#allocation69_spill] sm:$0xff]  ;;  %v10256_v3 = vld [vmem:[#allocation71_spill] sm:$0xff] }
 0xace   :  { %v9190_v52 = vpop.eup %7111  ;;  %7131 = vpow2.f32 %v4163_v33  ;;  %v4215_v18 = vmul.f32 1.442695, %v4023_v51  ;;  %v4217_v62 = vmul.f32 1.442695, %v4024_v39  ;;  %v10254_v15 = vpack.c.bf16 %v9120_v10, %v9114_v48  ;;  %v10257_v10 = vld [vmem:[#allocation57_spill] sm:$0xff] }
 0xacf   :  { %10253 = vst [vmem:[#allocation44_spill] sm:$0xff] %v9188_v2  ;;  %v4001_v19 = vsub.f32 %v10255_v29, %v3832_v44  ;;  %v9196_v13 = vpop.eup %7113  ;;  %7133 = vpow2.f32 %v4165_v16  ;;  %v4002_v53 = vsub.f32 %v10256_v3, %v3832_v44  ;;  %v3823_v23 = vpop.xlane.xlu0 %3822  ;;  %v4388_v45 = vadd.f32 %v9182_v27, %v9178_v47 }
 0xad0   :  { %4704 = vmatmul.mubr.bf16.gmra.mrb[80].mxu1 %v10254_v15  ;;  %v9203_v51 = vpop.eup %7115  ;;  %7135 = vpow2.f32 %v4215_v18  ;;  %v3995_v39 = vsub.f32 %v10257_v10, %v3823_v23  ;;  %v10258_v15 = vld [vmem:[#allocation59_spill] sm:$0xff]  ;;  %v4379_v44 = vadd.f32 %v9196_v13, %v9190_v52  ;;  %v10259_v10 = vld [vmem:[#allocation77_spill] sm:$0xff] }
 0xad1   :  { %4711 = vmatprep.mubr.bf16.mxu1 %v4544_v22  ;;  %v4171_v48 = vmul.f32 1.442695, %v4001_v19  ;;  %v3996_v29 = vsub.f32 %v10258_v15, %v3823_v23  ;;  %v9207_v2 = vpop.eup %7117  ;;  %7137 = vpow2.f32 %v4217_v62  ;;  %v4173_v22 = vmul.f32 1.442695, %v4002_v53  ;;  %4389 = vadd.xlane.f32.xlu1 %v4388_v45  ;;  %v3838_v16 = vpop.xlane.xlu1 %3837  ;;  %v10260_v62 = vld [vmem:[#allocation79_spill] sm:$0xff] }
 0xad2   :  { %v9213_v33 = vpop.eup %7119  ;;  %v4159_v18 = vmul.f32 1.442695, %v3995_v39  ;;  %v4005_v55 = vsub.f32 %v10259_v10, %v3838_v16  ;;  %v4006_v53 = vsub.f32 %v10260_v62, %v3838_v16  ;;  %4380 = vadd.xlane.f32.xlu0 %v4379_v44  ;;  %v4394_v15 = vadd.f32 %v9207_v2, %v9203_v51  ;;  %v10261_v39 = vld [vmem:[#allocation58_spill] sm:$0xff]  ;;  %v10262_v10 = vld [vmem:[#allocation60_spill] sm:$0xff]  ;;  %v10266_v62 = vld [vmem:[#allocation65_spill] sm:$0xff] }
 0xad3   :  { %7139 = vpow2.f32 %v4171_v48  ;;  %v4161_v19 = vmul.f32 1.442695, %v3996_v29  ;;  %v9216_v23 = vpop.eup %7121  ;;  %v3871_v45 = vpop.xlane.xlu0 %3870 }
 0xad4   :  { %7141 = vpow2.f32 %v4173_v22  ;;  %v9223_v63 = vpop.eup %7123  ;;  %v4179_v48 = vmul.f32 1.442695, %v4005_v55  ;;  %v4027_v29 = vsub.f32 %v10261_v39, %v3871_v45  ;;  %v4028_v14 = vsub.f32 %v10262_v10, %v3871_v45 }
 0xad5   :  { %7143 = vpow2.f32 %v4159_v18  ;;  %v7126_v0 = vpop.eup %7125  ;;  %v4181_v22 = vmul.f32 1.442695, %v4006_v53  ;;  %4395 = vadd.xlane.f32.xlu1 %v4394_v15  ;;  %v4823_v16 = vpop.permute.xlu1 %4822  ;;  %v4385_v44 = vadd.f32 %v9216_v23, %v9213_v33  ;;  %v10263_v39 = vpack.c.bf16 %v9138_v1, %v9129_v24 }
 0xad6   :  { %7145 = vpow2.f32 %v4161_v19  ;;  %v9231_v3 = vpop.eup %7127  ;;  %v4223_v18 = vmul.f32 1.442695, %v4027_v29  ;;  %v4225_v55 = vmul.f32 1.442695, %v4028_v14  ;;  %6301 = vmatpush3.bf16.msra.mxu0 %v4823_v16  ;;  %v4442_v19 = vadd.f32 %v7126_v0, %v9223_v63  ;;  %v10264_v14 = vld [vmem:[#allocation62_spill] sm:$0xff]  ;;  %v10265_v29 = vld [vmem:[#allocation64_spill] sm:$0xff] }
 0xad7   :  { %7147 = vpow2.f32 %v4179_v48  ;;  %v9237_v53 = vpop.eup %7129  ;;  %4386 = vadd.xlane.f32.xlu0 %v4385_v44  ;;  %v3874_v45 = vpop.xlane.xlu0 %3873  ;;  %v10275_v38 = vpack.c.bf16 %v9182_v27, %v9216_v23  ;;  %v10278_v23 = vld [vmem:[#allocation74_spill] sm:$0xff] }
 0xad8   :  { %4712 = vmatmul.mubr.bf16.gmra.mrb[84].mxu1 %v10263_v39  ;;  %7149 = vpow2.f32 %v4181_v22  ;;  %v9241_v10 = vpop.eup %7131  ;;  %v4029_v48 = vsub.f32 %v10264_v14, %v3874_v45  ;;  %v4030_v24 = vsub.f32 %v10265_v29, %v3874_v45  ;;  %v4391_v1 = vadd.f32 %v9237_v53, %v9231_v3 }
 0xad9   :  { %4719 = vmatprep.mubr.bf16.mxu1 %v4546_v17  ;;  %7151 = vpow2.f32 %v4223_v18  ;;  %v9247_v16 = vpop.eup %7133  ;;  %4443 = vadd.xlane.f32.xlu1 %v4442_v19  ;;  %v10267_v19 = vld [vmem:[#allocation67_spill] sm:$0xff] }
 0xada   :  { %7153 = vpow2.f32 %v4225_v55  ;;  %v7136_v22 = vpop.eup %7135  ;;  %v4227_v44 = vmul.f32 1.442695, %v4029_v48  ;;  %v4229_v39 = vmul.f32 1.442695, %v4030_v24  ;;  %v4400_v18 = vadd.f32 %v9247_v16, %v9241_v10 }
 0xadb   :  { %v7138_v15 = vpop.eup %7137  ;;  %4392 = vadd.xlane.f32.xlu0 %v4391_v1  ;;  %v3829_v14 = vpop.xlane.xlu0 %3828  ;;  %v4567_v45 = vpack.c.bf16 %v9223_v63, %v7136_v22  ;;  %v10268_v63 = vpack.c.bf16 %v9168_v59, %v9148_v60  ;;  %v10271_v59 = vld [vmem:[#allocation68_spill] sm:$0xff] }
 0xadc   :  { %7155 = vpow2.f32 %v4227_v44  ;;  %v3999_v55 = vsub.f32 %v10266_v62, %v3829_v14  ;;  %v4000_v40 = vsub.f32 %v10267_v19, %v3829_v14  ;;  %v4568_v57 = vpack.c.bf16 %v7126_v0, %v7138_v15 }
 0xadd   :  { %v9254_v29 = vpop.eup %7139  ;;  %7157 = vpow2.f32 %v4229_v39  ;;  %4401 = vadd.xlane.f32.xlu1 %v4400_v18  ;;  %v4439_v48 = vadd.f32 %v7138_v15, %v7136_v22  ;;  %v10269_v0 = vpack.c.bf16 %v9162_v12, %v9196_v13 }
 0xade   :  { %v9258_v17 = vpop.eup %7141  ;;  %v4167_v34 = vmul.f32 1.442695, %v3999_v55  ;;  %v4169_v1 = vmul.f32 1.442695, %v4000_v40  ;;  %4888 = vmatprep.mubr.bf16.mxu0 %v4568_v57  ;;  %v10270_v57 = vld [vmem:[#allocation66_spill] sm:$0xff] }
 0xadf   :  { %v9260_v24 = vpop.eup %7143  ;;  %v9267_v62 = vadd.f32 %v9258_v17, %v9254_v29  ;;  %4440 = vadd.xlane.f32.xlu0 %v4439_v48  ;;  %v3877_v15 = vpop.xlane.xlu0 %3876  ;;  %4889 = vmatmul.mubr.bf16.vlgmr.msra.gmra.mrb[132].mxu0 %v4567_v45 }
 0xae0   :  { %4720 = vmatmul.mubr.bf16.gmra.mrb[88].mxu1 %v10268_v63  ;;  %v9269_v44 = vpop.eup %7145  ;;  %7159 = vpow2.f32 %v4167_v34  ;;  %v4031_v60 = vsub.f32 %v10270_v57, %v3877_v15  ;;  %v4032_v39 = vsub.f32 %v10271_v59, %v3877_v15  ;;  %v10272_v63 = vld [vmem:[#allocation70_spill] sm:$0xff]  ;;  %v10273_v15 = vld [vmem:[#allocation72_spill] sm:$0xff] }
 0xae1   :  { %4727 = vmatprep.mubr.bf16.mxu1 %v10269_v0  ;;  %v9276_v22 = vpop.eup %7147  ;;  %v4397_v18 = vadd.f32 %v9269_v44, %v9260_v24  ;;  %7161 = vpow2.f32 %v4169_v1 }
 0xae2   :  { %v9282_v14 = vpop.eup %7149  ;;  %v4231_v55 = vmul.f32 1.442695, %v4031_v60  ;;  %v4233_v19 = vmul.f32 1.442695, %v4032_v39  ;;  %v10274_v60 = vpack.c.bf16 %v9158_v20, %v9190_v52 }
 0xae3   :  { %v7152_v13 = vpop.eup %7151  ;;  %v9288_v34 = vadd.f32 %v9282_v14, %v9276_v22  ;;  %4398 = vadd.xlane.f32.xlu0 %v4397_v18  ;;  %v3880_v48 = vpop.xlane.xlu0 %3879 }
 0xae4   :  { %v7154_v45 = vpop.eup %7153  ;;  %7163 = vpow2.f32 %v4231_v55  ;;  %v4033_v0 = vsub.f32 %v10272_v63, %v3880_v48  ;;  %v4034_v57 = vsub.f32 %v10273_v15, %v3880_v48  ;;  %v10276_v63 = vld [vmem:[#allocation73_spill] sm:$0xff]  ;;  %v10277_v15 = vld [vmem:[#allocation75_spill] sm:$0xff] }
 0xae5   :  { %v4445_v59 = vadd.f32 %v7154_v45, %v7152_v13  ;;  %7165 = vpow2.f32 %v4233_v19 }
 0xae6   :  { %v7156_v1 = vpop.eup %7155  ;;  %v4235_v40 = vmul.f32 1.442695, %v4033_v0  ;;  %v4237_v12 = vmul.f32 1.442695, %v4034_v57 }
 0xae7   :  { %v7158_v39 = vpop.eup %7157  ;;  %4446 = vadd.xlane.f32.xlu0 %v4445_v59  ;;  %v3835_v18 = vpop.xlane.xlu0 %3834  ;;  %v4569_v55 = vpack.c.bf16 %v7156_v1, %v7152_v13  ;;  %v10279_v13 = vld [vmem:[#allocation76_spill] sm:$0xff] }
 0xae8   :  { %4728 = vmatmul.mubr.bf16.gmra.mrb[92].mxu1 %v10274_v60  ;;  %7167 = vpow2.f32 %v4235_v40  ;;  %v4003_v48 = vsub.f32 %v10276_v63, %v3835_v18  ;;  %v4004_v19 = vsub.f32 %v10277_v15, %v3835_v18  ;;  %v4570_v54 = vpack.c.bf16 %v7158_v39, %v7154_v45  ;;  %v10282_v15 = vld [vmem:[#allocation78_spill] sm:$0xff] }
 0xae9   :  { %4735 = vmatprep.mubr.bf16.mxu1 %v10275_v38  ;;  %7169 = vpow2.f32 %v4237_v12  ;;  %v4448_v0 = vadd.f32 %v7158_v39, %v7156_v1  ;;  %v10280_v18 = vpack.c.bf16 %v9178_v47, %v9213_v33  ;;  %v10281_v63 = vpack.c.bf16 %v9207_v2, %v9237_v53  ;;  %v10284_v2 = vld [vmem:[#allocation81_spill] sm:$0xff] }
 0xaea   :  { %v9300_v57 = vpop.eup %7159  ;;  %v4175_v52 = vmul.f32 1.442695, %v4003_v48  ;;  %v4177_v20 = vmul.f32 1.442695, %v4004_v19  ;;  %4896 = vmatprep.mubr.bf16.mxu0 %v4570_v54 }
 0xaeb   :  { %v9302_v60 = vpop.eup %7161  ;;  %4449 = vadd.xlane.f32.xlu1 %v4448_v0  ;;  %4897 = vmatmul.mubr.bf16.gmra.mrb[136].mxu0 %v4569_v55  ;;  %v3883_v38 = vpop.xlane.xlu0 %3882  ;;  %v4555_v27 = vpack.c.bf16 %v9254_v29, %v9300_v57 }
 0xaec   :  { %7171 = vpow2.f32 %v4175_v52  ;;  %v4035_v40 = vsub.f32 %v10278_v23, %v3883_v38  ;;  %v4036_v45 = vsub.f32 %v10279_v13, %v3883_v38  ;;  %v4403_v12 = vadd.f32 %v9302_v60, %v9300_v57 }
 0xaed   :  { %7173 = vpow2.f32 %v4177_v20  ;;  %v4556_v54 = vpack.c.bf16 %v9258_v17, %v9302_v60  ;;  %v10283_v17 = vld [vmem:[#allocation80_spill] sm:$0xff] }
 0xaee   :  { %v7164_v59 = vpop.eup %7163  ;;  %v4239_v1 = vmul.f32 1.442695, %v4035_v40  ;;  %v4241_v39 = vmul.f32 1.442695, %v4036_v45  ;;  %4404 = vadd.xlane.f32.xlu0 %v4403_v12  ;;  %v10285_v40 = vld [vmem:[#allocation83_spill] sm:$0xff] }
 0xaef   :  { %v7166_v55 = vpop.eup %7165  ;;  %4407 = vadd.xlane.f32.xlu1 %v9267_v62  ;;  %v3886_v48 = vpop.xlane.xlu0 %3885 }
 0xaf0   :  { %4736 = vmatmul.mubr.bf16.gmra.mrb[96].mxu1 %v10280_v18  ;;  %7175 = vpow2.f32 %v4239_v1  ;;  %v4037_v19 = vsub.f32 %v10282_v15, %v3886_v48  ;;  %v4038_v0 = vsub.f32 %v10283_v17, %v3886_v48  ;;  %v4451_v52 = vadd.f32 %v7166_v55, %v7164_v59  ;;  %v10288_v15 = vld [vmem:[#allocation82_spill] sm:$0xff]  ;;  %v10289_v17 = vld [vmem:[#allocation84_spill] sm:$0xff] }
 0xaf1   :  { %4743 = vmatprep.mubr.bf16.mxu1 %v10281_v63  ;;  %7177 = vpow2.f32 %v4241_v39  ;;  %v10286_v39 = vpack.c.bf16 %v9203_v51, %v9231_v3 }
 0xaf2   :  { %v7168_v20 = vpop.eup %7167  ;;  %v4243_v60 = vmul.f32 1.442695, %v4037_v19  ;;  %v4245_v47 = vmul.f32 1.442695, %v4038_v0  ;;  %4452 = vadd.xlane.f32.xlu0 %v4451_v52 }
 0xaf3   :  { %v7170_v33 = vpop.eup %7169  ;;  %v3841_v38 = vpop.xlane.xlu0 %3840  ;;  %v4571_v23 = vpack.c.bf16 %v7168_v20, %v7164_v59  ;;  %v10287_v59 = vpack.c.bf16 %v9247_v16, %v9269_v44 }
 0xaf4   :  { %7179 = vpow2.f32 %v4243_v60  ;;  %v4007_v53 = vsub.f32 %v10284_v2, %v3841_v38  ;;  %v4008_v62 = vsub.f32 %v10285_v40, %v3841_v38  ;;  %v4572_v13 = vpack.c.bf16 %v7170_v33, %v7166_v55 }
 0xaf5   :  { %7181 = vpow2.f32 %v4245_v47  ;;  %v4454_v45 = vadd.f32 %v7170_v33, %v7168_v20  ;;  %v10290_v33 = vld [vmem:[#allocation85_spill] sm:$0xff] }
 0xaf6   :  { %v9323_v12 = vpop.eup %7171  ;;  %v4183_v1 = vmul.f32 1.442695, %v4007_v53  ;;  %v4185_v18 = vmul.f32 1.442695, %v4008_v62  ;;  %4904 = vmatprep.mubr.bf16.mxu0 %v4572_v13 }
 0xaf7   :  { %v7174_v63 = vpop.eup %7173  ;;  %4455 = vadd.xlane.f32.xlu1 %v4454_v45  ;;  %v3889_v48 = vpop.xlane.xlu0 %3888  ;;  %v4557_v55 = vpack.c.bf16 %v9276_v22, %v9323_v12  ;;  %4905 = vmatmul.mubr.bf16.gmra.mrb[140].mxu0 %v4571_v23 }
 0xaf8   :  { %4744 = vmatmul.mubr.bf16.gmra.mrb[100].mxu1 %v10286_v39  ;;  %7183 = vpow2.f32 %v4183_v1  ;;  %v4039_v19 = vsub.f32 %v10288_v15, %v3889_v48  ;;  %v4040_v0 = vsub.f32 %v10289_v17, %v3889_v48  ;;  %v4409_v51 = vadd.f32 %v7174_v63, %v9323_v12 }
 0xaf9   :  { %4751 = vmatprep.mubr.bf16.mxu1 %v10287_v59  ;;  %7185 = vpow2.f32 %v4185_v18  ;;  %v4558_v3 = vpack.c.bf16 %v9282_v14, %v7174_v63  ;;  %v10291_v14 = vpack.c.bf16 %v9241_v10, %v9260_v24 }
 0xafa   :  { %v7176_v52 = vpop.eup %7175  ;;  %v4247_v20 = vmul.f32 1.442695, %v4039_v19  ;;  %v4249_v16 = vmul.f32 1.442695, %v4040_v0  ;;  %4410 = vadd.xlane.f32.xlu0 %v4409_v51 }
 0xafb   :  { %v7178_v44 = vpop.eup %7177  ;;  %4413 = vadd.xlane.f32.xlu1 %v9288_v34  ;;  %v3892_v60 = vpop.xlane.xlu0 %3891 }
 0xafc   :  { %7187 = vpow2.f32 %v4247_v20  ;;  %v4041_v47 = vsub.f32 %v8802_v32, %v3892_v60  ;;  %v4042_v38 = vsub.f32 %v10290_v33, %v3892_v60  ;;  %v4457_v23 = vadd.f32 %v7178_v44, %v7176_v52 }
 0xafd   :  { %7189 = vpow2.f32 %v4249_v16 }
 0xafe   :  { %v7180_v2 = vpop.eup %7179  ;;  %v4251_v53 = vmul.f32 1.442695, %v4041_v47  ;;  %v4253_v40 = vmul.f32 1.442695, %v4042_v38  ;;  %4458 = vadd.xlane.f32.xlu0 %v4457_v23  ;;  %v10293_v23 = vld [vmem:[#allocation87_spill] sm:$0xff] }
 0xaff   :  { %v7182_v62 = vpop.eup %7181  ;;  %v3847_v13 = vpop.xlane.xlu0 %3846  ;;  %v4573_v34 = vpack.c.bf16 %v7180_v2, %v7176_v52 }
 0xb00   :  { %4752 = vmatmul.mubr.bf16.gmra.mrb[104].mxu1 %v10291_v14  ;;  %7191 = vpow2.f32 %v4251_v53  ;;  %v4011_v45 = vsub.f32 %v8812_v31, %v3847_v13  ;;  %v4012_v32 = vsub.f32 %v8816_v46, %v3847_v13  ;;  %v4574_v1 = vpack.c.bf16 %v7182_v62, %v7178_v44 }
 0xb01   :  { %4759 = vmatprep.mubr.bf16.mxu1 %v4556_v54  ;;  %7193 = vpow2.f32 %v4253_v40  ;;  %v4460_v18 = vadd.f32 %v7182_v62, %v7180_v2 }
 0xb02   :  { %v9345_v39 = vpop.eup %7183  ;;  %v4191_v63 = vmul.f32 1.442695, %v4011_v45  ;;  %v4193_v59 = vmul.f32 1.442695, %v4012_v32  ;;  %4912 = vmatprep.mubr.bf16.mxu0 %v4574_v1 }
 0xb03   :  { %v9347_v10 = vpop.eup %7185  ;;  %4461 = vadd.xlane.f32.xlu1 %v4460_v18  ;;  %4913 = vmatmul.mubr.bf16.gmra.mrb[144].mxu0 %v4573_v34  ;;  %v3895_v24 = vpop.xlane.xlu0 %3894 }
 0xb04   :  { %7195 = vpow2.f32 %v4191_v63  ;;  %v4043_v54 = vsub.f32 %v8814_v37, %v3895_v24  ;;  %v4044_v31 = vsub.f32 %v8818_v36, %v3895_v24  ;;  %v4415_v46 = vadd.f32 %v9347_v10, %v9345_v39 }
 0xb05   :  { %7197 = vpow2.f32 %v4193_v59 }
 0xb06   :  { %v7188_v48 = vpop.eup %7187  ;;  %v4255_v15 = vmul.f32 1.442695, %v4043_v54  ;;  %v4257_v19 = vmul.f32 1.442695, %v4044_v31  ;;  %4416 = vadd.xlane.f32.xlu0 %v4415_v46  ;;  %v3844_v17 = vpop.xlane.xlu1 %3843 }
 0xb07   :  { %v7190_v0 = vpop.eup %7189  ;;  %v4009_v51 = vsub.f32 %v8798_v50, %v3844_v17  ;;  %v4010_v37 = vsub.f32 %v8804_v9, %v3844_v17  ;;  %v3853_v36 = vpop.xlane.xlu0 %3852 }
 0xb08   :  { %4760 = vmatmul.mubr.bf16.gmra.mrb[108].mxu1 %v4555_v27  ;;  %7199 = vpow2.f32 %v4255_v15  ;;  %v4015_v52 = vsub.f32 %v8839_v11, %v3853_v36  ;;  %v4016_v20 = vsub.f32 %v8843_v25, %v3853_v36  ;;  %v4463_v16 = vadd.f32 %v7190_v0, %v7188_v48  ;;  %v10292_v11 = vld [vmem:[#allocation86_spill] sm:$0xff] }
 0xb09   :  { %4767 = vmatprep.mubr.bf16.mxu1 %v4558_v3  ;;  %7201 = vpow2.f32 %v4257_v19  ;;  %v4187_v44 = vmul.f32 1.442695, %v4009_v51  ;;  %v4189_v60 = vmul.f32 1.442695, %v4010_v37 }
 0xb0a   :  { %v7192_v29 = vpop.eup %7191  ;;  %v4199_v57 = vmul.f32 1.442695, %v4015_v52  ;;  %v4201_v27 = vmul.f32 1.442695, %v4016_v20  ;;  %4464 = vadd.xlane.f32.xlu0 %v4463_v16  ;;  %v3850_v47 = vpop.xlane.xlu1 %3849 }
 0xb0b   :  { %v7194_v3 = vpop.eup %7193  ;;  %7203 = vpow2.f32 %v4187_v44  ;;  %v4013_v50 = vsub.f32 %v8822_v49, %v3850_v47  ;;  %v4014_v9 = vsub.f32 %v8828_v4, %v3850_v47  ;;  %v3901_v33 = vpop.xlane.xlu0 %3900  ;;  %v4575_v38 = vpack.c.bf16 %v7192_v29, %v7188_v48 }
 0xb0c   :  { %7205 = vpow2.f32 %v4189_v60  ;;  %v4047_v25 = vsub.f32 %v10292_v11, %v3901_v33  ;;  %v4048_v2 = vsub.f32 %v10293_v23, %v3901_v33  ;;  %v4576_v53 = vpack.c.bf16 %v7194_v3, %v7190_v0  ;;  %v7051_v23 = vld [vmem:[#allocation8] sm:$0xff]  }
 0xb0d   :  { %7207 = vpow2.f32 %v4199_v57  ;;  %v4195_v40 = vmul.f32 1.442695, %v4013_v50  ;;  %v4197_v14 = vmul.f32 1.442695, %v4014_v9  ;;  %v9364_v62 = vadd.f32 %v7194_v3, %v7192_v29  ;;  %6976 = vmatprep.subr.bf16.mxu1 %v7051_v23  ;;  %6764 = vmatprep.subr.bf16.mxu0 %v7051_v23 }
 0xb0e   :  { %v9366_v13 = vpop.eup %7195  ;;  %7209 = vpow2.f32 %v4201_v27  ;;  %v4263_v34 = vmul.f32 1.442695, %v4047_v25  ;;  %v4265_v49 = vmul.f32 1.442695, %v4048_v2  ;;  %4920 = vmatprep.mubr.bf16.mxu0 %v4576_v53  ;;  %v3898_v4 = vpop.xlane.xlu1 %3897  ;;  %6978 = vmatpush3.bf16.msra.mxu1 %v7051_v23 }
 0xb0f   :  { %v9371_v45 = vpop.eup %7197  ;;  %7211 = vpow2.f32 %v4195_v40  ;;  %4921 = vmatmul.mubr.bf16.gmra.mrb[148].mxu0 %v4575_v38  ;;  %v4045_v32 = vsub.f32 %v8826_v61, %v3898_v4  ;;  %v4046_v1 = vsub.f32 %v8832_v8, %v3898_v4  ;;  %v10294_v40 = vld [vmem:[#allocation91_spill] sm:$0xff] }
 0xb10   :  { %4768 = vmatmul.mubr.bf16.gmra.mrb[112].mxu1 %v4557_v55  ;;  %v3859_v18 = vpop.xlane.xlu0 %3858  ;;  %7213 = vpow2.f32 %v4197_v14  ;;  %v4421_v22 = vadd.f32 %v9371_v45, %v9366_v13  ;;  %6765 = vmatpush3.bf16.msra.mxu0 %v7051_v23 }
 0xb11   :  { %v4019_v63 = vsub.f32 %v8868_v35, %v3859_v18  ;;  %v4020_v59 = vsub.f32 %v8875_v43, %v3859_v18  ;;  %7215 = vpow2.f32 %v4263_v34  ;;  %v4259_v12 = vmul.f32 1.442695, %v4045_v32 }
 0xb12   :  { %v4261_v55 = vmul.f32 1.442695, %v4046_v1  ;;  %v9379_v24 = vpop.eup %7199  ;;  %7217 = vpow2.f32 %v4265_v49  ;;  %4422 = vadd.xlane.f32.xlu0 %v4421_v22  ;;  %v3856_v61 = vpop.xlane.xlu1 %3855  ;;  %v10296_v22 = vld [vmem:[#allocation88_spill] sm:$0xff] }
 0xb13   :  { %v4207_v54 = vmul.f32 1.442695, %v4019_v63  ;;  %v4209_v31 = vmul.f32 1.442695, %v4020_v59  ;;  %v9381_v8 = vpop.eup %7201  ;;  %7219 = vpow2.f32 %v4259_v12  ;;  %v4017_v35 = vsub.f32 %v8849_v5, %v3856_v61  ;;  %v10295_v63 = vld [vmem:[#allocation31_spill] sm:$0xff] }
 0xb14   :  { %v4018_v43 = vsub.f32 %v8855_v58, %v3856_v61  ;;  %v3907_v46 = vpop.xlane.xlu0 %3906  ;;  %7221 = vpow2.f32 %v4261_v55  ;;  %v4469_v19 = vadd.f32 %v9381_v8, %v9379_v24  ;;  %v10297_v61 = vld [vmem:[#allocation94_spill] sm:$0xff] }
 0xb15   :  { %v4051_v48 = vsub.f32 %v8870_v7, %v3907_v46  ;;  %v4052_v15 = vsub.f32 %v8877_v28, %v3907_v46  ;;  %v7204_v17 = vpop.eup %7203  ;;  %7223 = vpow2.f32 %v4207_v54  ;;  %v4203_v0 = vmul.f32 1.442695, %v4017_v35  ;;  %v10298_v35 = vld [vmem:[#allocation95_spill] sm:$0xff] }
 0xb16   :  { %v4205_v51 = vmul.f32 1.442695, %v4018_v43  ;;  %v7206_v37 = vpop.eup %7205  ;;  %7225 = vpow2.f32 %v4209_v31  ;;  %4470 = vadd.xlane.f32.xlu0 %v4469_v19  ;;  %v3904_v5 = vpop.xlane.xlu1 %3903  ;;  %v4559_v58 = vpack.c.bf16 %v7204_v17, %v9345_v39 }
 0xb17   :  { %v4271_v36 = vmul.f32 1.442695, %v4051_v48  ;;  %v4273_v52 = vmul.f32 1.442695, %v4052_v15  ;;  %v9390_v20 = vpop.eup %7207  ;;  %7227 = vpow2.f32 %v4203_v0  ;;  %v4049_v7 = vsub.f32 %v8853_v6, %v3904_v5 }
 0xb18   :  { %v4050_v28 = vsub.f32 %v8859_v26, %v3904_v5  ;;  %v3913_v16 = vpop.xlane.xlu0 %3912  ;;  %v4560_v44 = vpack.c.bf16 %v7206_v37, %v9347_v10  ;;  %v9395_v60 = vpop.eup %7209  ;;  %7229 = vpow2.f32 %v4205_v51  ;;  %v4418_v27 = vadd.f32 %v7206_v37, %v7204_v17 }
 0xb19   :  { %v4055_v29 = vsub.f32 %v8898_v41, %v3913_v16  ;;  %v4056_v57 = vsub.f32 %v8903_v42, %v3913_v16  ;;  %v9399_v47 = vpop.eup %7211  ;;  %7231 = vpow2.f32 %v4271_v36  ;;  %v4267_v39 = vmul.f32 1.442695, %v4049_v7 }
 0xb1a   :  { %v4269_v3 = vmul.f32 1.442695, %v4050_v28  ;;  %4775 = vmatprep.mubr.bf16.mxu1 %v4560_v44  ;;  %v4427_v6 = vadd.f32 %v9395_v60, %v9390_v20  ;;  %v7214_v26 = vpop.eup %7213  ;;  %7233 = vpow2.f32 %v4273_v52  ;;  %4419 = vadd.xlane.f32.xlu1 %v4418_v27  ;;  %v3862_v9 = vpop.xlane.xlu1 %3861  ;;  %v4561_v42 = vpack.c.bf16 %v9399_v47, %v9366_v13  ;;  %v10299_v52 = vld [vmem:[#allocation89_spill] sm:$0xff]  ;;  %v10302_v27 = vld [vmem:[#allocation99_spill] sm:$0xff] }
 0xb1b   :  { %v4279_v10 = vmul.f32 1.442695, %v4055_v29  ;;  %v4281_v50 = vmul.f32 1.442695, %v4056_v57  ;;  %4776 = vmatmul.mubr.bf16.gmra.mrb[116].mxu1 %v4559_v58  ;;  %v9405_v41 = vpop.eup %7215  ;;  %7235 = vpow2.f32 %v4267_v39  ;;  %v4021_v33 = vsub.f32 %v8881_v21, %v3862_v9  ;;  %v10300_v58 = vld [vmem:[#allocation90_spill] sm:$0xff] }
 0xb1c   :  { %4428 = vadd.xlane.f32.xlu0 %v4427_v6  ;;  %v4022_v38 = vsub.f32 %v8887_v56, %v3862_v9  ;;  %v3919_v11 = vpop.xlane.xlu0 %3918  ;;  %v4562_v25 = vpack.c.bf16 %v7214_v26, %v9371_v45  ;;  %v9410_v2 = vpop.eup %7217  ;;  %7237 = vpow2.f32 %v4269_v3  ;;  %v4424_v13 = vadd.f32 %v7214_v26, %v9399_v47  ;;  %v10301_v29 = vld [vmem:[#allocation98_spill] sm:$0xff] }
 0xb1d   :  { %v4059_v53 = vsub.f32 %v8916_v30, %v3919_v11  ;;  %v4060_v14 = vsub.f32 %v10294_v40, %v3919_v11  ;;  %v7220_v34 = vpop.eup %7219  ;;  %7239 = vpow2.f32 %v4279_v10  ;;  %v4211_v49 = vmul.f32 1.442695, %v4021_v33 }
 0xb1e   :  { %v4213_v4 = vmul.f32 1.442695, %v4022_v38  ;;  %4783 = vmatprep.mubr.bf16.mxu1 %v4562_v25  ;;  %v9417_v56 = vadd.f32 %v9410_v2, %v9405_v41  ;;  %v7222_v21 = vpop.eup %7221  ;;  %7241 = vpow2.f32 %v4281_v50  ;;  %4467 = vadd.xlane.f32.xlu1 %v9364_v62  ;;  %v3910_v30 = vpop.xlane.xlu1 %3909  ;;  %v4577_v1 = vpack.c.bf16 %v7220_v34, %v9379_v24  ;;  %v10303_v38 = vld [vmem:[#allocation92_spill] sm:$0xff]  ;;  %v10304_v25 = vld [vmem:[#allocation93_spill] sm:$0xff] }
 0xb1f   :  { %v4287_v45 = vmul.f32 1.442695, %v4059_v53  ;;  %v4289_v32 = vmul.f32 1.442695, %v4060_v14  ;;  %v9421_v18 = vpop.eup %7223  ;;  %7243 = vpow2.f32 %v4211_v49  ;;  %v4053_v59 = vsub.f32 %v10295_v63, %v3910_v30  ;;  %v10306_v49 = vld [vmem:[#allocation103_spill] sm:$0xff] }
 0xb20   :  { %v4054_v12 = vsub.f32 %v10296_v22, %v3910_v30  ;;  %v3925_v55 = vpop.xlane.xlu0 %3924  ;;  %v4578_v54 = vpack.c.bf16 %v7222_v21, %v9381_v8  ;;  %v9426_v31 = vpop.eup %7225  ;;  %7245 = vpow2.f32 %v4213_v4  ;;  %v4472_v24 = vadd.f32 %v7222_v21, %v7220_v34 }
 0xb21   :  { %v4063_v62 = vsub.f32 %v10297_v61, %v3925_v55  ;;  %v4064_v43 = vsub.f32 %v10298_v35, %v3925_v55  ;;  %v9430_v46 = vpop.eup %7227  ;;  %7247 = vpow2.f32 %v4287_v45  ;;  %v4275_v48 = vmul.f32 1.442695, %v4053_v59 }
 0xb22   :  { %v4277_v15 = vmul.f32 1.442695, %v4054_v12  ;;  %4928 = vmatprep.mubr.bf16.mxu0 %v4578_v54  ;;  %v4433_v19 = vadd.f32 %v9426_v31, %v9421_v18  ;;  %v7230_v8 = vpop.eup %7229  ;;  %7249 = vpow2.f32 %v4289_v32  ;;  %4425 = vadd.xlane.f32.xlu1 %v4424_v13  ;;  %v3916_v51 = vpop.xlane.xlu1 %3915  ;;  %v4563_v37 = vpack.c.bf16 %v9430_v46, %v9390_v20  ;;  %v10305_v13 = vld [vmem:[#allocation102_spill] sm:$0xff]  ;;  %v10307_v12 = vld [vmem:[#allocation96_spill] sm:$0xff]  ;;  %v10308_v54 = vld [vmem:[#allocation97_spill] sm:$0xff] }
 0xb23   :  { %v4295_v17 = vmul.f32 1.442695, %v4063_v62  ;;  %v4297_v0 = vmul.f32 1.442695, %v4064_v43  ;;  %4784 = vmatmul.mubr.bf16.gmra.mrb[120].mxu1 %v4561_v42  ;;  %v9436_v36 = vpop.eup %7231  ;;  %7251 = vpow2.f32 %v4275_v48  ;;  %4929 = vmatmul.mubr.bf16.gmra.mrb[152].mxu0 %v4577_v1  ;;  %v4057_v5 = vsub.f32 %v10299_v52, %v3916_v51  ;;  %v10310_v48 = vld [vmem:[#allocation109_spill] sm:$0xff] }
 0xb24   :  { %4434 = vadd.xlane.f32.xlu0 %v4433_v19  ;;  %v4058_v7 = vsub.f32 %v10300_v58, %v3916_v51  ;;  %v3931_v28 = vpop.xlane.xlu0 %3930  ;;  %v4564_v16 = vpack.c.bf16 %v7230_v8, %v9395_v60  ;;  %v9441_v44 = vpop.eup %7233  ;;  %7253 = vpow2.f32 %v4277_v15  ;;  %v4430_v20 = vadd.f32 %v7230_v8, %v9430_v46 }
 0xb25   :  { %v4067_v57 = vsub.f32 %v10301_v29, %v3931_v28  ;;  %v4068_v47 = vsub.f32 %v10302_v27, %v3931_v28  ;;  %v7236_v39 = vpop.eup %7235  ;;  %7255 = vpow2.f32 %v4295_v17  ;;  %v4283_v3 = vmul.f32 1.442695, %v4057_v5  ;;  %v10312_v28 = vld [vmem:[#allocation100_spill] sm:$0xff]  ;;  %v10313_v29 = vld [vmem:[#allocation101_spill] sm:$0xff] }
 0xb26   :  { %v4285_v6 = vmul.f32 1.442695, %v4058_v7  ;;  %4791 = vmatprep.mubr.bf16.mxu1 %v4564_v16  ;;  %v4481_v26 = vadd.f32 %v9441_v44, %v9436_v36  ;;  %v7238_v10 = vpop.eup %7237  ;;  %7257 = vpow2.f32 %v4297_v0  ;;  %4473 = vadd.xlane.f32.xlu1 %v4472_v24  ;;  %v3922_v9 = vpop.xlane.xlu1 %3921  ;;  %v4579_v42 = vpack.c.bf16 %v7236_v39, %v9405_v41  ;;  %v10309_v24 = vld [vmem:[#allocation108_spill] sm:$0xff] }
 0xb27   :  { %v4303_v60 = vmul.f32 1.442695, %v4067_v57  ;;  %v4305_v50 = vmul.f32 1.442695, %v4068_v47  ;;  %v9449_v33 = vpop.eup %7239  ;;  %7259 = vpow2.f32 %v4283_v3  ;;  %v4061_v11 = vsub.f32 %v10303_v38, %v3922_v9  ;;  %v10311_v7 = vld [vmem:[#allocation104_spill] sm:$0xff] }
 0xb28   :  { %4476 = vadd.xlane.f32.xlu0 %v9417_v56  ;;  %v4062_v23 = vsub.f32 %v10304_v25, %v3922_v9  ;;  %v3937_v53 = vpop.xlane.xlu0 %3936  ;;  %v4580_v40 = vpack.c.bf16 %v7238_v10, %v9410_v2  ;;  %v9455_v14 = vpop.eup %7241  ;;  %7261 = vpow2.f32 %v4285_v6  ;;  %v4478_v41 = vadd.f32 %v7238_v10, %v7236_v39  ;;  %v10314_v39 = vld [vmem:[#allocation113_spill] sm:$0xff]  ;;  %v10315_v6 = vld [vmem:[#allocation114_spill] sm:$0xff] }
 0xb29   :  { %v4071_v34 = vsub.f32 %v10305_v13, %v3937_v53  ;;  %v4072_v4 = vsub.f32 %v10306_v49, %v3937_v53  ;;  %v9459_v21 = vpop.eup %7243  ;;  %7263 = vpow2.f32 %v4303_v60  ;;  %v4291_v45 = vmul.f32 1.442695, %v4061_v11  ;;  %v10316_v53 = vld [vmem:[#allocation110_spill] sm:$0xff] }
 0xb2a   :  { %v4293_v56 = vmul.f32 1.442695, %v4062_v23  ;;  %4936 = vmatprep.mubr.bf16.mxu0 %v4580_v40  ;;  %v9463_v32 = vadd.f32 %v9455_v14, %v9449_v33  ;;  %v7246_v30 = vpop.eup %7245  ;;  %7265 = vpow2.f32 %v4305_v50  ;;  %4431 = vadd.xlane.f32.xlu1 %v4430_v20  ;;  %v3928_v63 = vpop.xlane.xlu1 %3927  ;;  %v4565_v59 = vpack.c.bf16 %v9459_v21, %v9421_v18  ;;  %v10317_v40 = vld [vmem:[#allocation105_spill] sm:$0xff] }
 0xb2b   :  { %v4311_v2 = vmul.f32 1.442695, %v4071_v34  ;;  %v4313_v1 = vmul.f32 1.442695, %v4072_v4  ;;  %4792 = vmatmul.mubr.bf16.gmra.mrb[124].mxu1 %v4563_v37  ;;  %v9467_v22 = vpop.eup %7247  ;;  %7267 = vpow2.f32 %v4291_v45  ;;  %4937 = vmatmul.mubr.bf16.gmra.mrb[156].mxu0 %v4579_v42  ;;  %v4065_v55 = vsub.f32 %v10307_v12, %v3928_v63  ;;  %v10318_v34 = vld [vmem:[#allocation106_spill] sm:$0xff] }
 0xb2c   :  { %4482 = vadd.xlane.f32.xlu0 %v4481_v26  ;;  %v4066_v61 = vsub.f32 %v10308_v54, %v3928_v63  ;;  %v3943_v62 = vpop.xlane.xlu0 %3942  ;;  %v4566_v35 = vpack.c.bf16 %v7246_v30, %v9426_v31  ;;  %v9472_v43 = vpop.eup %7249  ;;  %7269 = vpow2.f32 %v4293_v56  ;;  %v4436_v18 = vadd.f32 %v7246_v30, %v9459_v21  ;;  %v10320_v30 = vld [vmem:[#allocation118_spill] sm:$0xff] }
 0xb2d   :  { %v4075_v46 = vsub.f32 %v10309_v24, %v3943_v62  ;;  %v4076_v15 = vsub.f32 %v10310_v48, %v3943_v62  ;;  %v7252_v19 = vpop.eup %7251  ;;  %7271 = vpow2.f32 %v4311_v2  ;;  %v4299_v8 = vmul.f32 1.442695, %v4065_v55  ;;  %v10323_v48 = vld [vmem:[#allocation111_spill] sm:$0xff] }
 0xb2e   :  { %v4301_v17 = vmul.f32 1.442695, %v4066_v61  ;;  %4799 = vmatprep.mubr.bf16.mxu1 %v4566_v35  ;;  %v9479_v0 = vadd.f32 %v9472_v43, %v9467_v22  ;;  %v7254_v51 = vpop.eup %7253  ;;  %7273 = vpow2.f32 %v4313_v1  ;;  %4437 = vadd.xlane.f32.xlu1 %v4436_v18  ;;  %v3934_v52 = vpop.xlane.xlu1 %3933  ;;  %v4581_v5 = vpack.c.bf16 %v7252_v19, %v9436_v36  ;;  %v10321_v61 = vld [vmem:[#allocation107_spill] sm:$0xff]  ;;  %v10324_v18 = vld [vmem:[#allocation112_spill] sm:$0xff] }
 0xb2f   :  { %v4319_v31 = vmul.f32 1.442695, %v4075_v46  ;;  %v4321_v37 = vmul.f32 1.442695, %v4076_v15  ;;  %v9482_v58 = vpop.eup %7255  ;;  %7275 = vpow2.f32 %v4299_v8  ;;  %v4069_v16 = vsub.f32 %v10312_v28, %v3934_v52  ;;  %v10322_v46 = vld [vmem:[#allocation33_spill] sm:$0xff] }
 0xb30   :  { %4344 = vadd.xlane.f32.xlu0 %v10311_v7  ;;  %v4070_v57 = vsub.f32 %v10313_v29, %v3934_v52  ;;  %v3949_v27 = vpop.xlane.xlu0 %3948  ;;  %v4582_v47 = vpack.c.bf16 %v7254_v51, %v9441_v44  ;;  %v9488_v20 = vpop.eup %7257  ;;  %7277 = vpow2.f32 %v4301_v17  ;;  %v9492_v36 = vadd.f32 %v7254_v51, %v7252_v19  ;;  %v10325_v7 = vld [vmem:[#allocation34_spill] sm:$0xff]  ;;  %v10326_v29 = vld [vmem:[#allocation35_spill] sm:$0xff] }
 0xb31   :  { %v4079_v3 = vsub.f32 %v10314_v39, %v3949_v27  ;;  %v4080_v26 = vsub.f32 %v10315_v6, %v3949_v27  ;;  %v7260_v10 = vpop.eup %7259  ;;  %7279 = vpow2.f32 %v4319_v31  ;;  %v4307_v60 = vmul.f32 1.442695, %v4069_v16 }
 0xb32   :  { %v4309_v50 = vmul.f32 1.442695, %v4070_v57  ;;  %4944 = vmatprep.mubr.bf16.mxu0 %v4582_v47  ;;  %v9496_v9 = vadd.f32 %v9488_v20, %v9482_v58  ;;  %v7262_v42 = vpop.eup %7261  ;;  %7281 = vpow2.f32 %v4321_v37  ;;  %4479 = vadd.xlane.f32.xlu1 %v4478_v41  ;;  %v3940_v11 = vpop.xlane.xlu1 %3939  ;;  %v4583_v25 = vpack.c.bf16 %v7260_v10, %v9449_v33  ;;  %v10319_v41 = vld [vmem:[#allocation117_spill] sm:$0xff]  ;;  %v10327_v57 = vld [vmem:[#allocation115_spill] sm:$0xff]  ;;  %v10328_v47 = vld [vmem:[#allocation116_spill] sm:$0xff] }
 0xb33   :  { %v4327_v44 = vmul.f32 1.442695, %v4079_v3  ;;  %v4329_v38 = vmul.f32 1.442695, %v4080_v26  ;;  %4800 = vmatmul.mubr.bf16.gmra.mrb[128].mxu1 %v4565_v59  ;;  %v9499_v23 = vpop.eup %7263  ;;  %7283 = vpow2.f32 %v4307_v60  ;;  %4945 = vmatmul.mubr.bf16.gmra.mrb[160].mxu0 %v4581_v5  ;;  %v4073_v13 = vsub.f32 %v10317_v40, %v3940_v11 }
 0xb34   :  { %4350 = vadd.xlane.f32.xlu0 %v10316_v53  ;;  %v4074_v49 = vsub.f32 %v10318_v34, %v3940_v11  ;;  %v3955_v4 = vpop.xlane.xlu0 %3954  ;;  %v4584_v21 = vpack.c.bf16 %v7262_v42, %v9455_v14  ;;  %v9505_v45 = vpop.eup %7265  ;;  %7285 = vpow2.f32 %v4309_v50  ;;  %v9509_v2 = vadd.f32 %v7262_v42, %v7260_v10  ;;  %v10331_v53 = vld [vmem:[#allocation119_spill] sm:$0xff] }
 0xb35   :  { %v4083_v56 = vsub.f32 %v10319_v41, %v3955_v4  ;;  %v4084_v33 = vsub.f32 %v10320_v30, %v3955_v4  ;;  %v9511_v1 = vpop.eup %7267  ;;  %7287 = vpow2.f32 %v4327_v44  ;;  %v4315_v63 = vmul.f32 1.442695, %v4073_v13  ;;  %v10329_v44 = vld [vmem:[#allocation36_spill] sm:$0xff] }
 0xb36   :  { %v4317_v59 = vmul.f32 1.442695, %v4074_v49  ;;  %4952 = vmatprep.mubr.bf16.mxu0 %v4584_v21  ;;  %v9515_v12 = vadd.f32 %v9505_v45, %v9499_v23  ;;  %v7270_v14 = vpop.eup %7269  ;;  %7289 = vpow2.f32 %v4329_v38  ;;  %4347 = vadd.xlane.f32.xlu1 %v10321_v61  ;;  %v3946_v62 = vpop.xlane.xlu1 %3945  ;;  %v4585_v35 = vpack.c.bf16 %v9511_v1, %v9467_v22  ;;  %v10332_v13 = vld [vmem:[#allocation120_spill] sm:$0xff] }
 0xb37   :  { %v4335_v55 = vmul.f32 1.442695, %v4083_v56  ;;  %v4337_v54 = vmul.f32 1.442695, %v4084_v33  ;;  %v9520_v24 = vpop.eup %7271  ;;  %7291 = vpow2.f32 %v4315_v63  ;;  %v4077_v15 = vsub.f32 %v10323_v48, %v3946_v62  ;;  %v10335_v48 = vld [vmem:[#allocation38_spill] sm:$0xff] }
 0xb38   :  { %4356 = vadd.xlane.f32.xlu0 %v10322_v46  ;;  %v4078_v19 = vsub.f32 %v10324_v18, %v3946_v62  ;;  %v4586_v8 = vpack.c.bf16 %v7270_v14, %v9472_v43  ;;  %v9526_v17 = vpop.eup %7273  ;;  %7293 = vpow2.f32 %v4317_v59  ;;  %v9529_v51 = vadd.f32 %v7270_v14, %v9511_v1  ;;  %v10333_v1 = vld [vmem:[#allocation32_spill] sm:$0xff] }
 0xb39   :  { %v9531_v31 = vpop.eup %7275  ;;  %7295 = vpow2.f32 %v4335_v55  ;;  %v4323_v22 = vmul.f32 1.442695, %v4077_v15  ;;  %v9535_v52 = vadd.f32 %v9526_v17, %v9520_v24  ;;  %v7052_v15 = vld [vmem:[#allocation8 + $0x8] sm:$0xff]  }
 0xb3a   :  { %v4325_v37 = vmul.f32 1.442695, %v4078_v19  ;;  %v7278_v5 = vpop.eup %7277  ;;  %7297 = vpow2.f32 %v4337_v54  ;;  %4353 = vadd.xlane.f32.xlu1 %v10325_v7  ;;  %v3952_v43 = vpop.xlane.xlu1 %3951  ;;  %v4587_v28 = vpack.c.bf16 %v9531_v31, %v9482_v58  ;;  %6977 = vmatprep.subr.bf16.mxu1 %v7052_v15 }
 0xb3b   :  { %v9540_v16 = vpop.eup %7279  ;;  %7299 = vpow2.f32 %v4323_v22  ;;  %4953 = vmatmul.mubr.bf16.gmra.mrb[164].mxu0 %v4583_v25  ;;  %v4081_v27 = vsub.f32 %v10327_v57, %v3952_v43  ;;  %v4082_v39 = vsub.f32 %v10328_v47, %v3952_v43  ;;  %v4588_v3 = vpack.c.bf16 %v7278_v5, %v9488_v20  ;;  %v10330_v25 = vld [vmem:[#allocation37_spill] sm:$0xff]  ;;  %6766 = vmatprep.subr.bf16.mxu0 %v7052_v15 }
 0xb3c   :  { %4362 = vadd.xlane.f32.xlu0 %v10326_v29  ;;  %v9546_v6 = vpop.eup %7281  ;;  %7301 = vpow2.f32 %v4325_v37  ;;  %4960 = vmatprep.mubr.bf16.mxu0 %v4586_v8  ;;  %v9549_v26 = vadd.f32 %v7278_v5, %v9531_v31 }
 0xb3d   :  { %v9551_v58 = vpop.eup %7283  ;;  %v4331_v10 = vmul.f32 1.442695, %v4081_v27  ;;  %v4333_v60 = vmul.f32 1.442695, %v4082_v39  ;;  %v9555_v50 = vadd.f32 %v9546_v6, %v9540_v16  ;;  %6979 = vmatpush3.bf16.msra.mxu1 %v7052_v15  ;;  %6767 = vmatpush3.bf16.msra.mxu0 %v7052_v15 }
 0xb3e   :  { %v7286_v42 = vpop.eup %7285  ;;  %4359 = vadd.xlane.f32.xlu1 %v10329_v44  ;;  %v3958_v38 = vpop.xlane.xlu1 %3957  ;;  %v4589_v20 = vpack.c.bf16 %v9551_v58, %v9499_v23 }
 0xb3f   :  { %v9560_v11 = vpop.eup %7287  ;;  %7303 = vpow2.f32 %v4331_v10  ;;  %v4085_v40 = vsub.f32 %v10331_v53, %v3958_v38  ;;  %v4086_v34 = vsub.f32 %v10332_v13, %v3958_v38  ;;  %v4590_v49 = vpack.c.bf16 %v7286_v42, %v9505_v45  ;;  %v10334_v45 = vld [vmem:[#allocation43_spill] sm:$0xff] }
 0xb40   :  { %4368 = vadd.xlane.f32.xlu0 %v10330_v25  ;;  %v9566_v4 = vpop.eup %7289  ;;  %7305 = vpow2.f32 %v4333_v60  ;;  %v4508_v21 = vadd.f32 %v7286_v42, %v9551_v58 }
 0xb41   :  { %v7292_v41 = vpop.eup %7291  ;;  %v4339_v56 = vmul.f32 1.442695, %v4085_v40  ;;  %v4341_v30 = vmul.f32 1.442695, %v4086_v34  ;;  %v4523_v23 = vadd.f32 %v9566_v4, %v9560_v11 }
 0xb42   :  { %v7294_v33 = vpop.eup %7293  ;;  %4365 = vadd.xlane.f32.xlu1 %v10333_v1  ;;  %v4591_v63 = vpack.c.bf16 %v7292_v41, %v9520_v24 }
 0xb43   :  { %v9573_v59 = vpop.eup %7295  ;;  %7307 = vpow2.f32 %v4339_v56  ;;  %4961 = vmatmul.mubr.bf16.gmra.mrb[168].mxu0 %v4585_v35  ;;  %v4592_v14 = vpack.c.bf16 %v7294_v33, %v9526_v17  ;;  %v4514_v55 = vadd.f32 %v7294_v33, %v7292_v41  ;;  %v10336_v17 = vld [vmem:[#allocation44_spill] sm:$0xff] }
 0xb44   :  { %4374 = vadd.xlane.f32.xlu0 %v10334_v45  ;;  %v7298_v54 = vpop.eup %7297  ;;  %7309 = vpow2.f32 %v4341_v30  ;;  %4968 = vmatprep.mubr.bf16.mxu0 %v4588_v3 }
 0xb45   :  { %v7300_v61 = vpop.eup %7299  ;;  %v4529_v62 = vadd.f32 %v7298_v54, %v9573_v59 }
 0xb46   :  { %v7302_v46 = vpop.eup %7301  ;;  %4371 = vadd.xlane.f32.xlu1 %v10335_v48  ;;  %v4593_v24 = vpack.c.bf16 %v7300_v61, %v9540_v16 }
 0xb47   :  { %v4594_v18 = vpack.c.bf16 %v7302_v46, %v9546_v6  ;;  %v4520_v35 = vadd.f32 %v7302_v46, %v7300_v61 }
 0xb48   :  { %4488 = vadd.xlane.f32.xlu0 %v9463_v32 }
 0xb49   :  { %v7304_v19 = vpop.eup %7303 }
 0xb4a   :  { %v7306_v8 = vpop.eup %7305  ;;  %4377 = vadd.xlane.f32.xlu1 %v10336_v17  ;;  %v4595_v31 = vpack.c.bf16 %v7304_v19, %v9560_v11 }
 0xb4b   :  { %4969 = vmatmul.mubr.bf16.gmra.mrb[172].mxu0 %v4587_v28  ;;  %v4596_v22 = vpack.c.bf16 %v7306_v8, %v9566_v4  ;;  %v4526_v37 = vadd.f32 %v7306_v8, %v7304_v19 }
 0xb4c   :  { %4494 = vadd.xlane.f32.xlu0 %v9479_v0  ;;  %4976 = vmatprep.mubr.bf16.mxu0 %v4590_v49 }
 0xb4d   :  { %v7308_v32 = vpop.eup %7307 }
 0xb4e   :  { %v7310_v5 = vpop.eup %7309  ;;  %4485 = vadd.xlane.f32.xlu1 %v9492_v36  ;;  %v4597_v7 = vpack.c.bf16 %v7308_v32, %v9573_v59 }
 0xb4f   :  { %v4598_v43 = vpack.c.bf16 %v7310_v5, %v7298_v54  ;;  %v4532_v16 = vadd.f32 %v7310_v5, %v7308_v32 }
 0xb50   :  { %4500 = vadd.xlane.f32.xlu0 %v9496_v9 }
 0xb52   :  { %4491 = vadd.xlane.f32.xlu1 %v9509_v2 }
 0xb53   :  { %4977 = vmatmul.mubr.bf16.gmra.mrb[176].mxu0 %v4589_v20 }
 0xb54   :  { %4506 = vadd.xlane.f32.xlu0 %v9515_v12  ;;  %4984 = vmatprep.mubr.bf16.mxu0 %v4592_v14 }
 0xb56   :  { %4497 = vadd.xlane.f32.xlu1 %v9529_v51 }
 0xb57   :  { %v6190_v0 = vpop.f32.mrb[68].mxu1 }
 0xb58   :  { %4512 = vadd.xlane.f32.xlu0 %v9535_v52  ;;  %v6191_v28 = vpop.f32.mrb[69].mxu1 }
 0xb59   :  { %v9593_v29 = vadd.f32 %v6191_v28, %v6190_v0  ;;  %v6193_v36 = vpop.f32.mrb[70].mxu1 }
 0xb5a   :  { %4503 = vadd.xlane.f32.xlu1 %v9549_v26  ;;  %v6194_v9 = vpop.f32.mrb[71].mxu1  ;;  %v4384_v27 = vpop.xlane.xlu1 %4383 }
 0xb5b   :  { %v9597_v57 = vadd.f32 %v6194_v9, %v6193_v36  ;;  %4985 = vmatmul.mubr.bf16.gmra.mrb[180].mxu0 %v4591_v63 }
 0xb5c   :  { %4518 = vadd.xlane.f32.xlu0 %v9555_v50  ;;  %4992 = vmatprep.mubr.bf16.mxu0 %v4594_v18 }
 0xb5e   :  { %4509 = vadd.xlane.f32.xlu1 %v4508_v21  ;;  %v9607_v39 = vpop.xlane.xlu1 %4389 }
 0xb5f   :  { %v9599_v2 = vpop.xlane.xlu0 %4380 }
 0xb60   :  { %4524 = vadd.xlane.f32.xlu0 %v4523_v23 }
 0xb62   :  { %4515 = vadd.xlane.f32.xlu1 %v4514_v55  ;;  %v9609_v6 = vpop.xlane.xlu1 %4395 }
 0xb63   :  { %4993 = vmatmul.mubr.bf16.gmra.mrb[184].mxu0 %v4593_v24 }
 0xb64   :  { %4530 = vadd.xlane.f32.xlu0 %v4529_v62  ;;  %5000 = vmatprep.mubr.bf16.mxu0 %v4596_v22  ;;  %v9601_v12 = vpop.xlane.xlu0 %4386 }
 0xb66   :  { %4521 = vadd.xlane.f32.xlu1 %v4520_v35  ;;  %v4444_v58 = vpop.xlane.xlu1 %4443 }
 0xb68   :  { %v9603_v51 = vpop.xlane.xlu0 %4392 }
 0xb6a   :  { %4527 = vadd.xlane.f32.xlu1 %v4526_v37  ;;  %v9615_v60 = vpop.xlane.xlu1 %4401 }
 0xb6b   :  { %5001 = vmatmul.mubr.bf16.gmra.mrb[188].mxu0 %v4595_v31 }
 0xb6c   :  { %5008 = vmatprep.mubr.bf16.mxu0 %v4598_v43  ;;  %v4441_v52 = vpop.xlane.xlu0 %4440 }
 0xb6d   :  { %7311 = vrcp.f32 %v4441_v52 }
 0xb6e   :  { %4533 = vadd.xlane.f32.xlu1 %v4532_v16  ;;  %7313 = vrcp.f32 %v4444_v58 }
 0xb6f   :  { %7315 = vrcp.f32 %v4384_v27 }
 0xb70   :  { %v9605_v47 = vpop.xlane.xlu0 %4398  ;;  %7317 = vrcp.f32 %v9599_v2 }
 0xb73   :  { %5009 = vmatmul.mubr.bf16.gmra.mrb[192].mxu0 %v4597_v7 }
 0xb74   :  { %v4447_v3 = vpop.xlane.xlu0 %4446 }
 0xb75   :  { %7319 = vrcp.f32 %v4447_v3 }
 0xb77   :  { %v7312_v58 = vpop.eup %7311 }
 0xb78   :  { %v9619_v42 = vpop.xlane.xlu1 %4449 }
 0xb79   :  { %7321 = vrcp.f32 %v9619_v42 }
 0xb7a   :  { %7323 = vrcp.f32 %v9607_v39 }
 0xb7b   :  { %v9611_v26 = vpop.xlane.xlu0 %4404  ;;  %7325 = vrcp.f32 %v9601_v12 }
 0xb7c   :  { %v9625_v40 = vpop.xlane.xlu1 %4407  ;;  %7327 = vrcp.f32 %v9609_v6 }
 0xb7d   :  { %7329 = vrcp.f32 %v9603_v51 }
 0xb7f   :  { %v9613_v10 = vpop.xlane.xlu0 %4452 }
 0xb84   :  { %v9631_v49 = vpop.xlane.xlu1 %4455 }
 0xb87   :  { %v9617_v50 = vpop.xlane.xlu0 %4410 }
 0xb88   :  { %v9639_v1 = vpop.xlane.xlu1 %4413 }
 0xb8b   :  { %v9621_v38 = vpop.xlane.xlu0 %4458 }
 0xb90   :  { %v9643_v14 = vpop.xlane.xlu1 %4461 }
 0xb91   :  { %v6196_v44 = vpop.f32.mrb[72].mxu1 }
 0xb92   :  { %v6197_v20 = vpop.f32.mrb[73].mxu1 }
 0xb93   :  { %v9623_v11 = vadd.f32 %v6197_v20, %v6196_v44  ;;  %v6199_v25 = vpop.f32.mrb[74].mxu1  ;;  %v9629_v34 = vpop.xlane.xlu0 %4416 }
 0xb94   :  { %v6200_v53 = vpop.f32.mrb[75].mxu1 }
 0xb95   :  { %v9627_v13 = vadd.f32 %v6200_v53, %v6199_v25 }
 0xb97   :  { %v9635_v30 = vpop.xlane.xlu0 %4464 }
 0xb99   :  { %v6202_v4 = vpop.f32.mrb[76].mxu1 }
 0xb9a   :  { %v6203_v21 = vpop.f32.mrb[77].mxu1 }
 0xb9b   :  { %v9633_v41 = vadd.f32 %v6203_v21, %v6202_v4  ;;  %v6205_v56 = vpop.f32.mrb[78].mxu1  ;;  %v7314_v21 = vpop.eup %7313 }
 0xb9c   :  { %v6206_v23 = vpop.f32.mrb[79].mxu1 }
 0xb9d   :  { %v9637_v33 = vadd.f32 %v6206_v23, %v6205_v56 }
 0xb9f   :  { %v9641_v63 = vpop.xlane.xlu0 %4422 }
 0xba3   :  { %v6208_v59 = vpop.f32.mrb[80].mxu1  ;;  %v9649_v46 = vpop.xlane.xlu0 %4470 }
 0xba4   :  { %v6209_v45 = vpop.f32.mrb[81].mxu1 }
 0xba5   :  { %v9645_v55 = vadd.f32 %v6209_v45, %v6208_v59  ;;  %v6211_v54 = vpop.f32.mrb[82].mxu1 }
 0xba6   :  { %v6212_v61 = vpop.f32.mrb[83].mxu1 }
 0xba7   :  { %v9647_v62 = vadd.f32 %v6212_v61, %v6211_v54  ;;  %v9651_v48 = vpop.xlane.xlu1 %4419 }
 0xba9   :  { %v9657_v8 = vpop.xlane.xlu0 %4428 }
 0xbab   :  { %v6214_v24 = vpop.f32.mrb[84].mxu1  ;;  %v9655_v19 = vpop.xlane.xlu1 %4467 }
 0xbac   :  { %v6215_v15 = vpop.f32.mrb[85].mxu1 }
 0xbad   :  { %v9653_v18 = vadd.f32 %v6215_v15, %v6214_v24  ;;  %v6217_v35 = vpop.f32.mrb[86].mxu1  ;;  %v7316_v15 = vpop.eup %7315 }
 0xbae   :  { %v6218_v17 = vpop.f32.mrb[87].mxu1 }
 0xbaf   :  { %v9659_v31 = vadd.f32 %v6218_v17, %v6217_v35  ;;  %v9661_v22 = vpop.xlane.xlu1 %4425 }
 0xbb1   :  { %v9663_v37 = vpop.xlane.xlu0 %4434 }
 0xbb2   :  { %v6302_v16 = vpop.f32.mrb[132].mxu0 }
 0xbb3   :  { %v6220_v32 = vpop.f32.mrb[88].mxu1  ;;  %v9668_v0 = vpop.xlane.xlu1 %4473 }
 0xbb4   :  { %v6221_v5 = vpop.f32.mrb[89].mxu1  ;;  %v6303_v28 = vpop.f32.mrb[133].mxu0 }
 0xbb5   :  { %v9665_v7 = vadd.f32 %v6221_v5, %v6220_v32  ;;  %v6223_v43 = vpop.f32.mrb[90].mxu1  ;;  %v6304_v36 = vadd.f32 %v6303_v28, %v6302_v16  ;;  %v9670_v9 = vpop.xlane.xlu0 %4476 }
 0xbb6   :  { %v6224_v52 = vpop.f32.mrb[91].mxu1  ;;  %v6305_v20 = vpop.f32.mrb[134].mxu0 }
 0xbb7   :  { %v9672_v44 = vadd.f32 %v6224_v52, %v6223_v43  ;;  %v9674_v25 = vmul.f32 %v7312_v58, %v6304_v36  ;;  %v6306_v27 = vpop.f32.mrb[135].mxu0  ;;  %v9676_v4 = vpop.xlane.xlu1 %4431 }
 0xbb8   :  { %v6307_v53 = vadd.f32 %v6306_v27, %v6305_v20  ;;  %v7318_v32 = vpop.eup %7317 }
 0xbb9   :  { %v9678_v2 = vpop.xlane.xlu0 %4482  ;;  %v7320_v52 = vpop.eup %7319 }
 0xbba   :  { %v9681_v23 = vmul.f32 %v7314_v21, %v6307_v53 }
 0xbbb   :  { %v6226_v56 = vpop.f32.mrb[92].mxu1  ;;  %v9687_v61 = vpop.xlane.xlu1 %4437 }
 0xbbc   :  { %v6227_v59 = vpop.f32.mrb[93].mxu1  ;;  %v5161_v3 = vpack.c.bf16 %v9681_v23, %v9674_v25 }
 0xbbd   :  { %v6228_v45 = vadd.f32 %v6227_v59, %v6226_v56  ;;  %v6229_v54 = vpop.f32.mrb[94].mxu1  ;;  %v4345_v35 = vpop.xlane.xlu0 %4344 }
 0xbbe   :  { %v6230_v24 = vpop.f32.mrb[95].mxu1  ;;  %v6308_v42 = vpop.f32.mrb[136].mxu0  ;;  %7331 = vrcp.f32 %v4345_v35 }
 0xbbf   :  { %v6231_v17 = vadd.f32 %v6230_v24, %v6229_v54  ;;  %v5093_v5 = vmul.f32 %v7318_v32, %v6228_v45  ;;  %v6309_v16 = vpop.f32.mrb[137].mxu0  ;;  %v9689_v28 = vpop.xlane.xlu1 %4479  ;;  %7333 = vrcp.f32 %v9613_v10 }
 0xbc0   :  { %v6310_v39 = vadd.f32 %v6309_v16, %v6308_v42  ;;  %v6311_v36 = vpop.f32.mrb[138].mxu0  ;;  %v7322_v54 = vpop.eup %7321 }
 0xbc1   :  { %v5094_v43 = vmul.f32 %v7316_v15, %v6231_v17  ;;  %v4351_v58 = vpop.xlane.xlu0 %4350  ;;  %v6312_v21 = vpop.f32.mrb[139].mxu0 }
 0xbc2   :  { %v9693_v27 = vmul.f32 %v7320_v52, %v6310_v39  ;;  %v6313_v59 = vadd.f32 %v6312_v21, %v6311_v36  ;;  %v7324_v15 = vpop.eup %7323 }
 0xbc3   :  { %v5151_v12 = vpack.c.bf16 %v5094_v43, %v5093_v5  ;;  %v6232_v20 = vpop.f32.mrb[96].mxu1  ;;  %v4348_v24 = vpop.xlane.xlu1 %4347 }
 0xbc4   :  { %v6233_v53 = vpop.f32.mrb[97].mxu1  ;;  %v9697_v17 = vmul.f32 %v7322_v54, %v6313_v59  ;;  %7335 = vrcp.f32 %v4348_v24  ;;  %v7326_v42 = vpop.eup %7325 }
 0xbc5   :  { %v6234_v56 = vadd.f32 %v6233_v53, %v6232_v20  ;;  %v6235_v45 = vpop.f32.mrb[98].mxu1  ;;  %6780 = vmatprep.mubr.msk.bf16.mxu1 %vm201_vm5, %v5151_v12  ;;  %v4357_v51 = vpop.xlane.xlu0 %4356  ;;  %7337 = vrcp.f32 %v9631_v49 }
 0xbc6   :  { %v6236_v6 = vpop.f32.mrb[99].mxu1  ;;  %7339 = vrcp.f32 %v4351_v58  ;;  %v5162_v5 = vpack.c.bf16 %v9697_v17, %v9693_v27  ;;  %v7328_v12 = vpop.eup %7327 }
 0xbc7   :  { %v6237_v32 = vadd.f32 %v6236_v6, %v6235_v45  ;;  %v5095_v35 = vmul.f32 %v7326_v42, %v6234_v56  ;;  %7341 = vrcp.f32 %v9615_v60  ;;  %v4354_v10 = vpop.xlane.xlu1 %4353  ;;  %v7330_v53 = vpop.eup %7329 }
 0xbc8   :  { %7343 = vrcp.f32 %v4354_v10  ;;  %v7332_v56 = vpop.eup %7331 }
 0xbc9   :  { %v5096_v43 = vmul.f32 %v7324_v15, %v6237_v32  ;;  %v4363_v39 = vpop.xlane.xlu0 %4362  ;;  %7345 = vrcp.f32 %v9605_v47  ;;  %v7334_v47 = vpop.eup %7333 }
 0xbca   :  { %7347 = vrcp.f32 %v4357_v51  ;;  %v6314_v58 = vpop.f32.mrb[140].mxu0 }
 0xbcb   :  { %v5152_v16 = vpack.c.bf16 %v5096_v43, %v5095_v35  ;;  %v6238_v36 = vpop.f32.mrb[100].mxu1  ;;  %7349 = vrcp.f32 %v9611_v26  ;;  %v4360_v21 = vpop.xlane.xlu1 %4359 }
 0xbcc   :  { %v6239_v52 = vpop.f32.mrb[101].mxu1  ;;  %v6315_v60 = vpop.f32.mrb[141].mxu0  ;;  %7351 = vrcp.f32 %v4360_v21 }
 0xbcd   :  { %v6240_v20 = vadd.f32 %v6239_v52, %v6238_v36  ;;  %v6241_v49 = vpop.f32.mrb[102].mxu1  ;;  %6781 = vmatmul.mubr.msk.bf16.vlgmr.msra.gmra.mrb[132].mxu1 %vm201_vm5, %v5152_v16  ;;  %v6316_v45 = vadd.f32 %v6315_v60, %v6314_v58  ;;  %v4369_v54 = vpop.xlane.xlu0 %4368  ;;  %7353 = vrcp.f32 %v9621_v38  ;;  %v5081_v16 = vmul.f32 %v7332_v56, %v9593_v29 }
 0xbce   :  { %v6242_v24 = vpop.f32.mrb[103].mxu1  ;;  %v6317_v15 = vpop.f32.mrb[142].mxu0  ;;  %7355 = vrcp.f32 %v4363_v39 }
 0xbcf   :  { %v5097_v59 = vmul.f32 %v7330_v53, %v6240_v20  ;;  %v6243_v6 = vadd.f32 %v6242_v24, %v6241_v49  ;;  %v7336_v51 = vpop.eup %7335  ;;  %v9707_v32 = vmul.f32 %v7334_v47, %v6316_v45  ;;  %v6318_v42 = vpop.f32.mrb[143].mxu0 }
 0xbd0   :  { %v7338_v35 = vpop.eup %7337  ;;  %v6319_v43 = vadd.f32 %v6318_v42, %v6317_v15  ;;  %v4366_v10 = vpop.xlane.xlu1 %4365  ;;  %v5082_v36 = vmul.f32 %v7336_v51, %v9597_v57 }
 0xbd1   :  { %v5098_v26 = vmul.f32 %v7328_v12, %v6243_v6  ;;  %v7340_v52 = vpop.eup %7339  ;;  %7357 = vrcp.f32 %v4366_v10  ;;  %v4375_v12 = vpop.xlane.xlu0 %4374 }
 0xbd2   :  { %v7342_v58 = vpop.eup %7341  ;;  %7359 = vrcp.f32 %v9643_v14  ;;  %v9712_v49 = vmul.f32 %v7338_v35, %v6319_v43  ;;  %v5145_v53 = vpack.c.bf16 %v5082_v36, %v5081_v16  ;;  %v5083_v29 = vmul.f32 %v7340_v52, %v9623_v11 }
 0xbd3   :  { %v6244_v20 = vpop.f32.mrb[104].mxu1  ;;  %v5153_v38 = vpack.c.bf16 %v5098_v26, %v5097_v59  ;;  %v7344_v21 = vpop.eup %7343  ;;  %7361 = vrcp.f32 %v4369_v54 }
 0xbd4   :  { %v6245_v39 = vpop.f32.mrb[105].mxu1  ;;  %v7346_v24 = vpop.eup %7345  ;;  %7363 = vrcp.f32 %v9625_v40  ;;  %v5084_v57 = vmul.f32 %v7344_v21, %v9627_v13  ;;  %v5163_v14 = vpack.c.bf16 %v9712_v49, %v9707_v32  ;;  %6768 = vmatprep.mubr.msk.bf16.mxu0 %vm201_vm5, %v5145_v53 }
 0xbd5   :  { %v6246_v60 = vadd.f32 %v6245_v39, %v6244_v20  ;;  %v6247_v45 = vpop.f32.mrb[106].mxu1  ;;  %6784 = vmatprep.mubr.msk.bf16.mxu1 %vm201_vm5, %v5153_v38  ;;  %v4372_v56 = vpop.xlane.xlu1 %4371 }
 0xbd6   :  { %v6248_v59 = vpop.f32.mrb[107].mxu1  ;;  %v7348_v54 = vpop.eup %7347  ;;  %7365 = vrcp.f32 %v4372_v56  ;;  %v5146_v15 = vpack.c.bf16 %v5084_v57, %v5083_v29 }
 0xbd7   :  { %v6249_v47 = vadd.f32 %v6248_v59, %v6247_v45  ;;  %v7350_v6 = vpop.eup %7349  ;;  %v6320_v51 = vpop.f32.mrb[144].mxu0  ;;  %7367 = vrcp.f32 %v4375_v12  ;;  %v5099_v11 = vmul.f32 %v7346_v24, %v6246_v60  ;;  %v5085_v16 = vmul.f32 %v7348_v54, %v9633_v41 }
 0xbd8   :  { %v7352_v40 = vpop.eup %7351  ;;  %v6321_v13 = vpop.f32.mrb[145].mxu0  ;;  %6769 = vmatmul.mubr.msk.bf16.vlgmr.msra.gmra.mrb[196].mxu0 %vm201_vm5, %v5146_v15 }
 0xbd9   :  { %v5100_v42 = vmul.f32 %v7342_v58, %v6249_v47  ;;  %v7354_v35 = vpop.eup %7353  ;;  %v4378_v26 = vpop.xlane.xlu1 %4377  ;;  %v6322_v43 = vadd.f32 %v6321_v13, %v6320_v51  ;;  %v5086_v36 = vmul.f32 %v7352_v40, %v9637_v33 }
 0xbda   :  { %v6323_v10 = vpop.f32.mrb[146].mxu0  ;;  %v7356_v52 = vpop.eup %7355  ;;  %7369 = vrcp.f32 %v4378_v26 }
 0xbdb   :  { %v5154_v20 = vpack.c.bf16 %v5100_v42, %v5099_v11  ;;  %v6250_v38 = vpop.f32.mrb[108].mxu1  ;;  %7371 = vrcp.f32 %v9617_v50  ;;  %v9725_v39 = vmul.f32 %v7354_v35, %v6322_v43  ;;  %v6324_v53 = vpop.f32.mrb[147].mxu0  ;;  %v5147_v21 = vpack.c.bf16 %v5086_v36, %v5085_v16 }
 0xbdc   :  { %v6251_v58 = vpop.f32.mrb[109].mxu1  ;;  %v7358_v12 = vpop.eup %7357  ;;  %7373 = vrcp.f32 %v9635_v30  ;;  %v6325_v45 = vadd.f32 %v6324_v53, %v6323_v10  ;;  %v5087_v50 = vmul.f32 %v7356_v52, %v9645_v55 }
 0xbdd   :  { %v6252_v60 = vadd.f32 %v6251_v58, %v6250_v38  ;;  %v6253_v24 = vpop.f32.mrb[110].mxu1  ;;  %6785 = vmatmul.mubr.msk.bf16.gmra.mrb[136].mxu1 %vm201_vm5, %v5154_v20  ;;  %v7360_v41 = vpop.eup %7359  ;;  %7375 = vrcp.f32 %v9639_v1  ;;  %6772 = vmatprep.mubr.msk.bf16.mxu0 %vm201_vm5, %v5147_v21  ;;  %v5088_v29 = vmul.f32 %v7358_v12, %v9647_v62 }
 0xbde   :  { %v6254_v33 = vpop.f32.mrb[111].mxu1  ;;  %v7362_v57 = vpop.eup %7361  ;;  %v9733_v56 = vmul.f32 %v7360_v41, %v6325_v45  ;;  %7377 = vrcp.f32 %v9655_v19 }
 0xbdf   :  { %v6255_v59 = vadd.f32 %v6254_v33, %v6253_v24  ;;  %v7364_v30 = vpop.eup %7363  ;;  %v5148_v54 = vpack.c.bf16 %v5088_v29, %v5087_v50  ;;  %v5101_v15 = vmul.f32 %v7350_v6, %v6252_v60  ;;  %v5089_v55 = vmul.f32 %v7362_v57, %v9653_v18 }
 0xbe0   :  { %v7366_v47 = vpop.eup %7365  ;;  %v5164_v1 = vpack.c.bf16 %v9733_v56, %v9725_v39  ;;  %7379 = vrcp.f32 %v9629_v34 }
 0xbe1   :  { %v5102_v51 = vmul.f32 %v7364_v30, %v6255_v59  ;;  %6773 = vmatmul.mubr.msk.bf16.gmra.mrb[200].mxu0 %vm201_vm5, %v5148_v54  ;;  %v5090_v62 = vmul.f32 %v7366_v47, %v9659_v31  ;;  %v7368_v40 = vpop.eup %7367  ;;  %7381 = vrcp.f32 %v9651_v48 }
 0xbe2   :  { %v6326_v35 = vpop.f32.mrb[148].mxu0  ;;  %v5091_v18 = vmul.f32 %v7368_v40, %v9665_v7  ;;  %7383 = vrcp.f32 %v9641_v63 }
 0xbe3   :  { %v5155_v11 = vpack.c.bf16 %v5102_v51, %v5101_v15  ;;  %v6256_v42 = vpop.f32.mrb[112].mxu1  ;;  %v5149_v26 = vpack.c.bf16 %v5090_v62, %v5089_v55  ;;  %v6327_v6 = vpop.f32.mrb[149].mxu0  ;;  %7385 = vrcp.f32 %v9649_v46 }
 0xbe4   :  { %v6257_v13 = vpop.f32.mrb[113].mxu1  ;;  %v7370_v19 = vpop.eup %7369  ;;  %v6328_v36 = vadd.f32 %v6327_v6, %v6326_v35  ;;  %7387 = vrcp.f32 %v9661_v22 }
 0xbe5   :  { %v6258_v43 = vadd.f32 %v6257_v13, %v6256_v42  ;;  %v6259_v10 = vpop.f32.mrb[114].mxu1  ;;  %6788 = vmatprep.mubr.msk.bf16.mxu1 %vm201_vm5, %v5155_v11  ;;  %v7372_v16 = vpop.eup %7371  ;;  %6776 = vmatprep.mubr.msk.bf16.mxu0 %vm201_vm5, %v5149_v26  ;;  %v5092_v31 = vmul.f32 %v7370_v19, %v9672_v44  ;;  %7389 = vrcp.f32 %v9668_v0 }
 0xbe6   :  { %v6260_v52 = vpop.f32.mrb[115].mxu1  ;;  %v7374_v20 = vpop.eup %7373  ;;  %7391 = vrcp.f32 %v9657_v8 }
 0xbe7   :  { %v6261_v38 = vadd.f32 %v6260_v52, %v6259_v10  ;;  %v6329_v58 = vpop.f32.mrb[150].mxu0  ;;  %v7376_v53 = vpop.eup %7375  ;;  %v9746_v21 = vmul.f32 %v7374_v20, %v6328_v36  ;;  %v5150_v60 = vpack.c.bf16 %v5092_v31, %v5091_v18  ;;  %v5103_v45 = vmul.f32 %v7372_v16, %v6258_v43 }
 0xbe8   :  { %v6330_v12 = vpop.f32.mrb[151].mxu0  ;;  %v7378_v33 = vpop.eup %7377  ;;  %7393 = vrcp.f32 %v9670_v9 }
 0xbe9   :  { %v5104_v24 = vmul.f32 %v7376_v53, %v6261_v38  ;;  %v6331_v41 = vadd.f32 %v6330_v12, %v6329_v58  ;;  %6777 = vmatmul.mubr.msk.bf16.gmra.mrb[204].mxu0 %vm201_vm5, %v5150_v60  ;;  %7395 = vrcp.f32 %v9676_v4  ;;  %v4486_v18 = vpop.xlane.xlu1 %4485 }
 0xbea   :  { %v7380_v30 = vpop.eup %7379  ;;  %7397 = vrcp.f32 %v9689_v28 }
 0xbeb   :  { %v5156_v7 = vpack.c.bf16 %v5104_v24, %v5103_v45  ;;  %v9750_v44 = vmul.f32 %v7378_v33, %v6331_v41  ;;  %v7382_v15 = vpop.eup %7381  ;;  %7399 = vrcp.f32 %v9663_v37 }
 0xbec   :  { %v7384_v22 = vpop.eup %7383  ;;  %7401 = vrcp.f32 %v9678_v2 }
 0xbed   :  { %v5165_v50 = vpack.c.bf16 %v9750_v44, %v9746_v21  ;;  %6789 = vmatmul.mubr.msk.bf16.gmra.mrb[140].mxu1 %vm201_vm5, %v5156_v7  ;;  %v7386_v35 = vpop.eup %7385  ;;  %7403 = vrcp.f32 %v9687_v61  ;;  %v4492_v61 = vpop.xlane.xlu1 %4491 }
 0xbee   :  { %v6262_v34 = vpop.f32.mrb[116].mxu1  ;;  %v7388_v43 = vpop.eup %7387  ;;  %7405 = vrcp.f32 %v4486_v18 }
 0xbef   :  { %v6263_v29 = vpop.f32.mrb[117].mxu1  ;;  %v7390_v16 = vpop.eup %7389 }
 0xbf0   :  { %v6264_v57 = vadd.f32 %v6263_v29, %v6262_v34  ;;  %v6265_v59 = vpop.f32.mrb[118].mxu1  ;;  %v7392_v60 = vpop.eup %7391 }
 0xbf1   :  { %v6266_v48 = vpop.f32.mrb[119].mxu1 }
 0xbf2   :  { %v5105_v54 = vmul.f32 %v7380_v30, %v6264_v57  ;;  %v6267_v47 = vadd.f32 %v6266_v48, %v6265_v59  ;;  %v7394_v37 = vpop.eup %7393  ;;  %v4489_v48 = vpop.xlane.xlu0 %4488 }
 0xbf3   :  { %v7396_v29 = vpop.eup %7395  ;;  %7407 = vrcp.f32 %v4489_v48 }
 0xbf4   :  { %v5106_v51 = vmul.f32 %v7382_v15, %v6267_v47  ;;  %v7398_v59 = vpop.eup %7397  ;;  %7409 = vrcp.f32 %v4492_v61 }
 0xbf6   :  { %v5157_v55 = vpack.c.bf16 %v5106_v51, %v5105_v54  ;;  %v6268_v62 = vpop.f32.mrb[120].mxu1  ;;  %v6332_v63 = vpop.f32.mrb[152].mxu0 }
 0xbf7   :  { %v6269_v40 = vpop.f32.mrb[121].mxu1  ;;  %v6333_v11 = vpop.f32.mrb[153].mxu0 }
 0xbf8   :  { %v6270_v46 = vadd.f32 %v6269_v40, %v6268_v62  ;;  %v6271_v42 = vpop.f32.mrb[122].mxu1  ;;  %6792 = vmatprep.mubr.msk.bf16.mxu1 %vm201_vm5, %v5157_v55  ;;  %v6334_v0 = vadd.f32 %v6333_v11, %v6332_v63  ;;  %v6335_v13 = vpop.f32.mrb[154].mxu0 }
 0xbf9   :  { %v6272_v19 = vpop.f32.mrb[123].mxu1  ;;  %v6336_v8 = vpop.f32.mrb[155].mxu0 }
 0xbfa   :  { %v5107_v26 = vmul.f32 %v7384_v22, %v6270_v46  ;;  %v9764_v10 = vmul.f32 %v7386_v35, %v6334_v0  ;;  %v6273_v9 = vadd.f32 %v6272_v19, %v6271_v42  ;;  %v6337_v6 = vadd.f32 %v6336_v8, %v6335_v13  ;;  %v7400_v11 = vpop.eup %7399  ;;  %v4495_v18 = vpop.xlane.xlu0 %4494 }
 0xbfb   :  { %v7402_v13 = vpop.eup %7401  ;;  %7411 = vrcp.f32 %v4495_v18 }
 0xbfc   :  { %v5108_v36 = vmul.f32 %v7388_v43, %v6273_v9  ;;  %v9766_v52 = vmul.f32 %v7390_v16, %v6337_v6  ;;  %v7404_v8 = vpop.eup %7403 }
 0xbfd   :  { %v7406_v6 = vpop.eup %7405 }
 0xbfe   :  { %v6274_v31 = vpop.f32.mrb[124].mxu1  ;;  %v5158_v4 = vpack.c.bf16 %v5108_v36, %v5107_v26  ;;  %v5166_v28 = vpack.c.bf16 %v9766_v52, %v9764_v10  ;;  %v6338_v20 = vpop.f32.mrb[156].mxu0 }
 0xbff   :  { %v6275_v38 = vpop.f32.mrb[125].mxu1  ;;  %v6339_v53 = vpop.f32.mrb[157].mxu0 }
 0xc00   :  { %v6276_v58 = vadd.f32 %v6275_v38, %v6274_v31  ;;  %v6277_v12 = vpop.f32.mrb[126].mxu1  ;;  %v6340_v45 = vadd.f32 %v6339_v53, %v6338_v20  ;;  %v6341_v24 = vpop.f32.mrb[158].mxu0  ;;  %6793 = vmatmul.mubr.msk.bf16.gmra.mrb[144].mxu1 %vm201_vm5, %v5158_v4 }
 0xc01   :  { %v6278_v41 = vpop.f32.mrb[127].mxu1  ;;  %v6342_v34 = vpop.f32.mrb[159].mxu0 }
 0xc02   :  { %v5109_v33 = vmul.f32 %v7392_v60, %v6276_v58  ;;  %v6279_v7 = vadd.f32 %v6278_v41, %v6277_v12  ;;  %v9774_v57 = vmul.f32 %v7394_v37, %v6340_v45  ;;  %v6343_v2 = vadd.f32 %v6342_v34, %v6341_v24  ;;  %v4498_v4 = vpop.xlane.xlu1 %4497  ;;  %v7408_v45 = vpop.eup %7407 }
 0xc03   :  { %7413 = vrcp.f32 %v4498_v4  ;;  %v7410_v41 = vpop.eup %7409 }
 0xc04   :  { %v5110_v30 = vmul.f32 %v7396_v29, %v6279_v7  ;;  %v9776_v54 = vmul.f32 %v7398_v59, %v6343_v2  ;;  %v4501_v7 = vpop.xlane.xlu0 %4500 }
 0xc05   :  { %7415 = vrcp.f32 %v4501_v7 }
 0xc06   :  { %v5159_v47 = vpack.c.bf16 %v5110_v30, %v5109_v33  ;;  %v6280_v15 = vpop.f32.mrb[128].mxu1  ;;  %v5167_v51 = vpack.c.bf16 %v9776_v54, %v9774_v57  ;;  %v6344_v55 = vpop.f32.mrb[160].mxu0 }
 0xc07   :  { %v6281_v62 = vpop.f32.mrb[129].mxu1  ;;  %v6345_v40 = vpop.f32.mrb[161].mxu0 }
 0xc08   :  { %v6282_v63 = vadd.f32 %v6281_v62, %v6280_v15  ;;  %v6283_v46 = vpop.f32.mrb[130].mxu1  ;;  %6796 = vmatprep.mubr.msk.bf16.mxu1 %vm201_vm5, %v5159_v47  ;;  %v6346_v42 = vadd.f32 %v6345_v40, %v6344_v55  ;;  %v6347_v22 = vpop.f32.mrb[162].mxu0 }
 0xc09   :  { %v6284_v0 = vpop.f32.mrb[131].mxu1  ;;  %v6348_v19 = vpop.f32.mrb[163].mxu0 }
 0xc0a   :  { %v5111_v35 = vmul.f32 %v7400_v11, %v6282_v63  ;;  %v6285_v26 = vadd.f32 %v6284_v0, %v6283_v46  ;;  %v9781_v43 = vmul.f32 %v7402_v13, %v6346_v42  ;;  %v6349_v9 = vadd.f32 %v6348_v19, %v6347_v22  ;;  %v4504_v34 = vpop.xlane.xlu1 %4503  ;;  %v7412_v30 = vpop.eup %7411 }
 0xc0b   :  { %7417 = vrcp.f32 %v4504_v34  ;;  %v4507_v55 = vpop.xlane.xlu0 %4506 }
 0xc0c   :  { %v5112_v16 = vmul.f32 %v7404_v8, %v6285_v26  ;;  %v9783_v36 = vmul.f32 %v7406_v6, %v6349_v9  ;;  %7419 = vrcp.f32 %v4507_v55 }
 0xc0d   :  { %v7414_v61 = vpop.eup %7413 }
 0xc0e   :  { %v5160_v31 = vpack.c.bf16 %v5112_v16, %v5111_v35  ;;  %v5168_v20 = vpack.c.bf16 %v9783_v36, %v9781_v43  ;;  %v6350_v38 = vpop.f32.mrb[164].mxu0  ;;  %v4510_v62 = vpop.xlane.xlu1 %4509 }
 0xc0f   :  { %v6351_v58 = vpop.f32.mrb[165].mxu0  ;;  %7421 = vrcp.f32 %v4510_v62  ;;  %v7416_v63 = vpop.eup %7415 }
 0xc10   :  { %6797 = vmatmul.mubr.msk.bf16.gmra.mrb[148].mxu1 %vm201_vm5, %v5160_v31  ;;  %v6352_v53 = vadd.f32 %v6351_v58, %v6350_v38  ;;  %v6353_v12 = vpop.f32.mrb[166].mxu0  ;;  %v4513_v22 = vpop.xlane.xlu0 %4512 }
 0xc11   :  { %6800 = vmatprep.mubr.msk.bf16.mxu1 %vm201_vm5, %v5161_v3  ;;  %v6354_v60 = vpop.f32.mrb[167].mxu0  ;;  %7423 = vrcp.f32 %v4513_v22 }
 0xc12   :  { %v6355_v24 = vadd.f32 %v6354_v60, %v6353_v12  ;;  %v9792_v37 = vmul.f32 %v7408_v45, %v6352_v53  ;;  %v4516_v0 = vpop.xlane.xlu1 %4515 }
 0xc13   :  { %7425 = vrcp.f32 %v4516_v0 }
 0xc14   :  { %v5130_v33 = vmul.f32 %v7410_v41, %v6355_v24  ;;  %v4519_v9 = vpop.xlane.xlu0 %4518 }
 0xc15   :  { %v7418_v46 = vpop.eup %7417  ;;  %7427 = vrcp.f32 %v4519_v9 }
 0xc16   :  { %v5169_v29 = vpack.c.bf16 %v5130_v33, %v9792_v37  ;;  %v6356_v2 = vpop.f32.mrb[168].mxu0  ;;  %v7420_v13 = vpop.eup %7419 }
 0xc17   :  { %v6357_v59 = vpop.f32.mrb[169].mxu0  ;;  %v4522_v6 = vpop.xlane.xlu1 %4521 }
 0xc18   :  { %6801 = vmatmul.mubr.msk.bf16.gmra.mrb[152].mxu1 %vm201_vm5, %v5162_v5  ;;  %v6358_v25 = vadd.f32 %v6357_v59, %v6356_v2  ;;  %v6359_v23 = vpop.f32.mrb[170].mxu0  ;;  %7429 = vrcp.f32 %v4522_v6  ;;  %v4525_v58 = vpop.xlane.xlu0 %4524 }
 0xc19   :  { %6804 = vmatprep.mubr.msk.bf16.mxu1 %vm201_vm5, %v5163_v14  ;;  %v6360_v3 = vpop.f32.mrb[171].mxu0  ;;  %v7422_v26 = vpop.eup %7421  ;;  %7431 = vrcp.f32 %v4525_v58 }
 0xc1a   :  { %v6361_v48 = vadd.f32 %v6360_v3, %v6359_v23  ;;  %v5131_v47 = vmul.f32 %v7412_v30, %v6358_v25 }
 0xc1b   :  { %v7424_v16 = vpop.eup %7423  ;;  %v4528_v53 = vpop.xlane.xlu1 %4527 }
 0xc1c   :  { %v5132_v15 = vmul.f32 %v7414_v61, %v6361_v48  ;;  %7433 = vrcp.f32 %v4528_v53  ;;  %v4531_v34 = vpop.xlane.xlu0 %4530 }
 0xc1d   :  { %v7426_v31 = vpop.eup %7425  ;;  %7435 = vrcp.f32 %v4531_v34 }
 0xc1e   :  { %v5170_v27 = vpack.c.bf16 %v5132_v15, %v5131_v47  ;;  %v6362_v17 = vpop.f32.mrb[172].mxu0 }
 0xc1f   :  { %v6363_v5 = vpop.f32.mrb[173].mxu0  ;;  %v7428_v24 = vpop.eup %7427 }
 0xc20   :  { %6805 = vmatmul.mubr.msk.bf16.gmra.mrb[156].mxu1 %vm201_vm5, %v5164_v1  ;;  %v6364_v32 = vadd.f32 %v6363_v5, %v6362_v17  ;;  %v6365_v49 = vpop.f32.mrb[174].mxu0 }
 0xc21   :  { %6808 = vmatprep.mubr.msk.bf16.mxu1 %vm201_vm5, %v5165_v50  ;;  %v6366_v14 = vpop.f32.mrb[175].mxu0 }
 0xc22   :  { %v6367_v40 = vadd.f32 %v6366_v14, %v6365_v49  ;;  %v5133_v11 = vmul.f32 %v7416_v63, %v6364_v32  ;;  %v7430_v37 = vpop.eup %7429 }
 0xc23   :  { %v7432_v48 = vpop.eup %7431 }
 0xc24   :  { %v5134_v42 = vmul.f32 %v7418_v46, %v6367_v40 }
 0xc26   :  { %v5171_v39 = vpack.c.bf16 %v5134_v42, %v5133_v11  ;;  %v6368_v56 = vpop.f32.mrb[176].mxu0  ;;  %v7434_v47 = vpop.eup %7433 }
 0xc27   :  { %v6369_v1 = vpop.f32.mrb[177].mxu0  ;;  %v7436_v14 = vpop.eup %7435 }
 0xc28   :  { %6809 = vmatmul.mubr.msk.bf16.gmra.mrb[160].mxu1 %vm201_vm5, %v5166_v28  ;;  %v6370_v21 = vadd.f32 %v6369_v1, %v6368_v56  ;;  %v6371_v44 = vpop.f32.mrb[178].mxu0 }
 0xc29   :  { %6812 = vmatprep.mubr.msk.bf16.mxu1 %vm201_vm5, %v5167_v51  ;;  %v6372_v50 = vpop.f32.mrb[179].mxu0 }
 0xc2a   :  { %v6373_v35 = vadd.f32 %v6372_v50, %v6371_v44  ;;  %v5135_v19 = vmul.f32 %v7420_v13, %v6370_v21  ;;  %v9842_v21 = vld [vmem:[%s9951_s8] ss:$0 sm:$0xff]  ;;  %s7569_s8 = smov [#allocation10]  }
 0xc2b   :  { %s5790_s12 = sshll.u32 %s7569_s8, 4  ;;  %s5791_s12 = int_to_ptr.vmem [resolvable:$true] %s5790_s12 }
 0xc2c   :  { %v5136_v8 = vmul.f32 %v7422_v26, %v6373_v35  ;;  %s7527_s27 = scalar_lea.vmem %s5791_s12, 1024  ;;  %p7532_p5 = scmp.lt.s32.totalorder %s5791_s12, %s5791_s12 }
 0xc2d   :  { %p7528_p4 = scmp.ne.s32.totalorder %s5791_s12, %s7527_s27  ;;  %p7533_p6 = scmp.lt.s32.totalorder %s7527_s27, %s7527_s27 }
 0xc2e   :  { %v5172_v10 = vpack.c.bf16 %v5136_v8, %v5135_v19  ;;  %v6374_v52 = vpop.f32.mrb[180].mxu0 }
 0xc2f   :  { %v6375_v28 = vpop.f32.mrb[181].mxu0  ;;  %p7534_p7 = por %p7533_p6, %p7532_p5 }
 0xc30   :  { %6813 = vmatmul.mubr.msk.bf16.gmra.mrb[164].mxu1 %vm201_vm5, %v5168_v20  ;;  %v6376_v57 = vadd.f32 %v6375_v28, %v6374_v52  ;;  %v6377_v54 = vpop.f32.mrb[182].mxu0 }
 0xc31   :  { %6816 = vmatprep.mubr.msk.bf16.mxu1 %vm201_vm5, %v5169_v29  ;;  %v6378_v51 = vpop.f32.mrb[183].mxu0  ;;  %v4534_v29 = vpop.xlane.xlu1 %4533  ;;  %p7535_p8 = pnand %p7534_p7, %p7528_p4 }
 0xc32   :  { %v6379_v18 = vadd.f32 %v6378_v51, %v6377_v54  ;;  %v5137_v4 = vmul.f32 %v7424_v16, %v6376_v57  ;;  %7437 = vrcp.f32 %v4534_v29 }
 0xc34   :  { %v5138_v38 = vmul.f32 %v7426_v31, %v6379_v18 }
 0xc36   :  { %v5173_v12 = vpack.c.bf16 %v5138_v38, %v5137_v4  ;;  %v6380_v60 = vpop.f32.mrb[184].mxu0 }
 0xc37   :  { %v6381_v45 = vpop.f32.mrb[185].mxu0 }
 0xc38   :  { %6817 = vmatmul.mubr.msk.bf16.gmra.mrb[168].mxu1 %vm201_vm5, %v5170_v27  ;;  %v6382_v43 = vadd.f32 %v6381_v45, %v6380_v60  ;;  %v6383_v36 = vpop.f32.mrb[186].mxu0 }
 0xc39   :  { %6820 = vmatprep.mubr.msk.bf16.mxu1 %vm201_vm5, %v5171_v39  ;;  %v6384_v20 = vpop.f32.mrb[187].mxu0 }
 0xc3a   :  { %v6385_v41 = vadd.f32 %v6384_v20, %v6383_v36  ;;  %v5139_v33 = vmul.f32 %v7428_v24, %v6382_v43 }
 0xc3c   :  { %v5140_v7 = vmul.f32 %v7430_v37, %v6385_v41  ;;  %v7438_v40 = vpop.eup %7437 }
 0xc3e   :  { %v5174_v2 = vpack.c.bf16 %v5140_v7, %v5139_v33  ;;  %v6386_v59 = vpop.f32.mrb[188].mxu0 }
 0xc3f   :  { %v6387_v25 = vpop.f32.mrb[189].mxu0 }
 0xc40   :  { %6821 = vmatmul.mubr.msk.bf16.gmra.mrb[172].mxu1 %vm201_vm5, %v5172_v10  ;;  %v6388_v23 = vadd.f32 %v6387_v25, %v6386_v59  ;;  %v6389_v3 = vpop.f32.mrb[190].mxu0 }
 0xc41   :  { %6824 = vmatprep.mubr.msk.bf16.mxu1 %vm201_vm5, %v5173_v12  ;;  %v6390_v30 = vpop.f32.mrb[191].mxu0 }
 0xc42   :  { %v6391_v61 = vadd.f32 %v6390_v30, %v6389_v3  ;;  %v5141_v15 = vmul.f32 %v7432_v48, %v6388_v23 }
 0xc44   :  { %v5142_v55 = vmul.f32 %v7434_v47, %v6391_v61 }
 0xc46   :  { %v5175_v62 = vpack.c.bf16 %v5142_v55, %v5141_v15  ;;  %v6392_v27 = vpop.f32.mrb[192].mxu0 }
 0xc47   :  { %v6393_v17 = vpop.f32.mrb[193].mxu0 }
 0xc48   :  { %6825 = vmatmul.mubr.msk.bf16.gmra.mrb[176].mxu1 %vm201_vm5, %v5174_v2  ;;  %v6394_v5 = vadd.f32 %v6393_v17, %v6392_v27  ;;  %v6395_v32 = vpop.f32.mrb[194].mxu0 }
 0xc49   :  { %6828 = vmatprep.mubr.msk.bf16.mxu1 %vm201_vm5, %v5175_v62  ;;  %v6396_v49 = vpop.f32.mrb[195].mxu0 }
 0xc4a   :  { %v6397_v63 = vadd.f32 %v6396_v49, %v6395_v32  ;;  %v5143_v46 = vmul.f32 %v7436_v14, %v6394_v5 }
 0xc4c   :  { %v5144_v11 = vmul.f32 %v7438_v40, %v6397_v63 }
 0xc4e   :  { %v5176_v42 = vpack.c.bf16 %v5144_v11, %v5143_v46 }
 0xc50   :  { %6829 = vmatmul.mubr.msk.bf16.gmra.mrb[180].mxu1 %vm201_vm5, %v5176_v42 }
 0xca0   :  { %v9831_v22 = vpop.f32.mrb[132].mxu1 }
 0xca1   :  { %v9833_v0 = vpop.f32.mrb[133].mxu1  ;;  %v5387_v63 = vadd.f32 %v9831_v22, %v9842_v21 }
 0xca2   :  { %v9835_v39 = vpop.f32.mrb[134].mxu1  ;;  %v5379_v55 = vadd.f32 %v9842_v21, %v9833_v0 }
 0xca3   :  { %v9837_v56 = vpop.f32.mrb[135].mxu1  ;;  %v5390_v46 = vadd.f32 %v9835_v39, %v9842_v21 }
 0xca4   :  { %v5382_v27 = vadd.f32 %v9842_v21, %v9837_v56 }
 0xcab   :  { %v6770_v1 = vpop.f32.mrb[196].mxu0 }
 0xcac   :  { %v5330_v44 = vpop.f32.mrb[197].mxu0  ;;  %v5339_v54 = vadd.f32 %v6770_v1, %v9842_v21 }
 0xcad   :  { %v5331_v50 = vadd.f32 %v9842_v21, %v5330_v44  ;;  %v6771_v13 = vpop.f32.mrb[198].mxu0 }
 0xcae   :  { %v5333_v35 = vpop.f32.mrb[199].mxu0  ;;  %v5342_v31 = vadd.f32 %v6771_v13, %v9842_v21 }
 0xcaf   :  { %5585 = vxpose.xlu0.b32.start [1/16] (narrow) %v5331_v50, 32  ;;  %v5334_v6 = vadd.f32 %v9842_v21, %v5333_v35 }
 0xcb0   :  { %v6786_v26 = vpop.f32.mrb[136].mxu1 }
 0xcb1   :  { %v5394_v19 = vpop.f32.mrb[137].mxu1  ;;  %v5403_v18 = vadd.f32 %v6786_v26, %v9842_v21 }
 0xcb2   :  { %v5395_v8 = vadd.f32 %v9842_v21, %v5394_v19  ;;  %v6787_v9 = vpop.f32.mrb[138].mxu1 }
 0xcb3   :  { %v5397_v10 = vpop.f32.mrb[139].mxu1  ;;  %5586 = vxpose.xlu0.b32.cont [2/16] (narrow) %v5334_v6, 32  ;;  %v5406_v38 = vadd.f32 %v6787_v9, %v9842_v21 }
 0xcb4   :  { %5617 = vxpose.xlu1.b32.start [1/16] (narrow) %v5395_v8, 32  ;;  %v6774_v52 = vpop.f32.mrb[200].mxu0  ;;  %v5398_v28 = vadd.f32 %v9842_v21, %v5397_v10 }
 0xcb5   :  { %v5346_v57 = vpop.f32.mrb[201].mxu0  ;;  %v5355_v33 = vadd.f32 %v6774_v52, %v9842_v21 }
 0xcb6   :  { %v6775_v51 = vpop.f32.mrb[202].mxu0  ;;  %v5347_v53 = vadd.f32 %v9842_v21, %v5346_v57 }
 0xcb7   :  { %v5349_v16 = vpop.f32.mrb[203].mxu0  ;;  %5587 = vxpose.xlu0.b32.cont [3/16] (narrow) %v5339_v54, 32  ;;  %v5358_v34 = vadd.f32 %v6775_v51, %v9842_v21 }
 0xcb8   :  { %5618 = vxpose.xlu1.b32.cont [2/16] (narrow) %v5398_v28, 32  ;;  %v5350_v24 = vadd.f32 %v9842_v21, %v5349_v16 }
 0xcbb   :  { %5588 = vxpose.xlu0.b32.cont [4/16] (narrow) %v5342_v31, 32 }
 0xcbc   :  { %5619 = vxpose.xlu1.b32.cont [3/16] (narrow) %v5403_v18, 32  ;;  %v6778_v4 = vpop.f32.mrb[204].mxu0 }
 0xcbd   :  { %v5362_v58 = vpop.f32.mrb[205].mxu0  ;;  %v5371_v3 = vadd.f32 %v6778_v4, %v9842_v21 }
 0xcbe   :  { %v6779_v12 = vpop.f32.mrb[206].mxu0  ;;  %v5363_v2 = vadd.f32 %v9842_v21, %v5362_v58 }
 0xcbf   :  { %v5365_v60 = vpop.f32.mrb[207].mxu0  ;;  %5589 = vxpose.xlu0.b32.cont [5/16] (narrow) %v5347_v53, 32  ;;  %v5374_v47 = vadd.f32 %v6779_v12, %v9842_v21 }
 0xcc0   :  { %5620 = vxpose.xlu1.b32.cont [4/16] (narrow) %v5406_v38, 32  ;;  %v6790_v45 = vpop.f32.mrb[140].mxu1  ;;  %v5366_v59 = vadd.f32 %v9842_v21, %v5365_v60 }
 0xcc1   :  { %v5410_v43 = vpop.f32.mrb[141].mxu1  ;;  %v5419_v7 = vadd.f32 %v6790_v45, %v9842_v21 }
 0xcc2   :  { %v5411_v36 = vadd.f32 %v9842_v21, %v5410_v43  ;;  %v6791_v20 = vpop.f32.mrb[142].mxu1 }
 0xcc3   :  { %v5413_v41 = vpop.f32.mrb[143].mxu1  ;;  %5590 = vxpose.xlu0.b32.cont [6/16] (narrow) %v5350_v24, 32  ;;  %v5422_v29 = vadd.f32 %v6791_v20, %v9842_v21 }
 0xcc4   :  { %5621 = vxpose.xlu1.b32.cont [5/16] (narrow) %v5411_v36, 32  ;;  %v5414_v37 = vadd.f32 %v9842_v21, %v5413_v41 }
 0xcc7   :  { %5591 = vxpose.xlu0.b32.cont [7/16] (narrow) %v5355_v33, 32 }
 0xcc8   :  { %5622 = vxpose.xlu1.b32.cont [6/16] (narrow) %v5414_v37, 32 }
 0xccb   :  { %5592 = vxpose.xlu0.b32.cont [8/16] (narrow) %v5358_v34, 32 }
 0xccc   :  { %5623 = vxpose.xlu1.b32.cont [7/16] (narrow) %v5419_v7, 32 }
 0xccf   :  { %5593 = vxpose.xlu0.b32.cont [9/16] (narrow) %v5363_v2, 32 }
 0xcd0   :  { %5624 = vxpose.xlu1.b32.cont [8/16] (narrow) %v5422_v29, 32 }
 0xcd3   :  { %5594 = vxpose.xlu0.b32.cont [10/16] (narrow) %v5366_v59, 32  ;;  %v6794_v25 = vpop.f32.mrb[144].mxu1 }
 0xcd4   :  { %v5426_v23 = vpop.f32.mrb[145].mxu1  ;;  %v5435_v62 = vadd.f32 %v6794_v25, %v9842_v21 }
 0xcd5   :  { %v5427_v30 = vadd.f32 %v9842_v21, %v5426_v23  ;;  %v6795_v48 = vpop.f32.mrb[146].mxu1 }
 0xcd6   :  { %v5429_v61 = vpop.f32.mrb[147].mxu1  ;;  %v5438_v17 = vadd.f32 %v6795_v48, %v9842_v21 }
 0xcd7   :  { %5595 = vxpose.xlu0.b32.cont [11/16] (narrow) %v5371_v3, 32  ;;  %5625 = vxpose.xlu1.b32.cont [9/16] (narrow) %v5427_v30, 32  ;;  %v5430_v15 = vadd.f32 %v9842_v21, %v5429_v61 }
 0xcdb   :  { %5596 = vxpose.xlu0.b32.cont [12/16] (narrow) %v5374_v47, 32  ;;  %5626 = vxpose.xlu1.b32.cont [10/16] (narrow) %v5430_v15, 32 }
 0xcdf   :  { %5597 = vxpose.xlu0.b32.cont [13/16] (narrow) %v5379_v55, 32  ;;  %5627 = vxpose.xlu1.b32.cont [11/16] (narrow) %v5435_v62, 32 }
 0xce3   :  { %v6798_v5 = vpop.f32.mrb[148].mxu1  ;;  %5598 = vxpose.xlu0.b32.cont [14/16] (narrow) %v5382_v27, 32  ;;  %5628 = vxpose.xlu1.b32.cont [12/16] (narrow) %v5438_v17, 32 }
 0xce4   :  { %v5442_v32 = vpop.f32.mrb[149].mxu1  ;;  %v5451_v44 = vadd.f32 %v6798_v5, %v9842_v21 }
 0xce5   :  { %v5443_v49 = vadd.f32 %v9842_v21, %v5442_v32  ;;  %v6799_v14 = vpop.f32.mrb[150].mxu1 }
 0xce6   :  { %v5445_v40 = vpop.f32.mrb[151].mxu1  ;;  %v5454_v22 = vadd.f32 %v6799_v14, %v9842_v21 }
 0xce7   :  { %5599 = vxpose.xlu0.b32.cont [15/16] (narrow) %v5387_v63, 32  ;;  %5629 = vxpose.xlu1.b32.cont [13/16] (narrow) %v5443_v49, 32  ;;  %v5446_v11 = vadd.f32 %v9842_v21, %v5445_v40 }
 0xceb   :  { %v6802_v42 = vpop.f32.mrb[152].mxu1  ;;  %5600 = vxpose.xlu0.b32.end [16/16] (narrow) %v5390_v46, 32  ;;  %5630 = vxpose.xlu1.b32.cont [14/16] (narrow) %v5446_v11, 32 }
 0xcec   :  { %v5458_v0 = vpop.f32.mrb[153].mxu1  ;;  %v5467_v19 = vadd.f32 %v6802_v42, %v9842_v21  ;;  %v10337_v42 = vld [vmem:[#allocation17_spill] sm:$0xff] }
 0xced   :  { %v5459_v56 = vadd.f32 %v9842_v21, %v5458_v0  ;;  %v6803_v1 = vpop.f32.mrb[154].mxu1 }
 0xcee   :  { %v5461_v50 = vpop.f32.mrb[155].mxu1  ;;  %v5470_v9 = vadd.f32 %v6803_v1, %v9842_v21 }
 0xcef   :  { %5631 = vxpose.xlu1.b32.cont [15/16] (narrow) %v5451_v44, 32  ;;  %5649 = vxpose.xlu0.b32.start [1/16] (narrow) %v5459_v56, 32  ;;  %v5462_v13 = vadd.f32 %v9842_v21, %v5461_v50  ;;  %v10338_v44 = vld [vmem:[#allocation18_spill] sm:$0xff] }
 0xcf3   :  { %v6806_v35 = vpop.f32.mrb[156].mxu1  ;;  %5632 = vxpose.xlu1.b32.end [16/16] (narrow) %v5454_v22, 32  ;;  %5650 = vxpose.xlu0.b32.cont [2/16] (narrow) %v5462_v13, 32 }
 0xcf4   :  { %v5474_v39 = vpop.f32.mrb[157].mxu1  ;;  %v5483_v31 = vadd.f32 %v6806_v35, %v9842_v21  ;;  %v10339_v35 = vld [vmem:[#allocation21_spill] sm:$0xff] }
 0xcf5   :  { %v6807_v26 = vpop.f32.mrb[158].mxu1  ;;  %v5475_v28 = vadd.f32 %v9842_v21, %v5474_v39 }
 0xcf6   :  { %v5477_v8 = vpop.f32.mrb[159].mxu1  ;;  %v5486_v38 = vadd.f32 %v6807_v26, %v9842_v21 }
 0xcf7   :  { %5651 = vxpose.xlu0.b32.cont [3/16] (narrow) %v5467_v19, 32  ;;  %v5478_v54 = vadd.f32 %v9842_v21, %v5477_v8  ;;  %v10340_v8 = vld [vmem:[#allocation22_spill] sm:$0xff] }
 0xcfb   :  { %v6810_v6 = vpop.f32.mrb[160].mxu1  ;;  %5652 = vxpose.xlu0.b32.cont [4/16] (narrow) %v5470_v9, 32 }
 0xcfc   :  { %v5490_v10 = vpop.f32.mrb[161].mxu1  ;;  %v5499_v7 = vadd.f32 %v6810_v6, %v9842_v21 }
 0xcfd   :  { %v6811_v52 = vpop.f32.mrb[162].mxu1  ;;  %v5491_v45 = vadd.f32 %v9842_v21, %v5490_v10  ;;  %v10341_v10 = vld [vmem:[#allocation25_spill] sm:$0xff] }
 0xcfe   :  { %v5493_v57 = vpop.f32.mrb[163].mxu1  ;;  %v5502_v2 = vadd.f32 %v6811_v52, %v9842_v21 }
 0xcff   :  { %5653 = vxpose.xlu0.b32.cont [5/16] (narrow) %v5475_v28, 32  ;;  %v5494_v20 = vadd.f32 %v9842_v21, %v5493_v57 }
 0xd03   :  { %v6814_v51 = vpop.f32.mrb[164].mxu1  ;;  %5654 = vxpose.xlu0.b32.cont [6/16] (narrow) %v5478_v54, 32 }
 0xd04   :  { %v5506_v16 = vpop.f32.mrb[165].mxu1  ;;  %v5515_v27 = vadd.f32 %v6814_v51, %v9842_v21  ;;  %v10342_v51 = vld [vmem:[#allocation26_spill] sm:$0xff] }
 0xd05   :  { %v6815_v18 = vpop.f32.mrb[166].mxu1  ;;  %v5507_v30 = vadd.f32 %v9842_v21, %v5506_v16 }
 0xd06   :  { %v5509_v4 = vpop.f32.mrb[167].mxu1  ;;  %v5518_v49 = vadd.f32 %v6815_v18, %v9842_v21 }
 0xd07   :  { %5655 = vxpose.xlu0.b32.cont [7/16] (narrow) %v5483_v31, 32  ;;  %v5510_v47 = vadd.f32 %v9842_v21, %v5509_v4  ;;  %v10343_v31 = vld [vmem:[#allocation29_spill] sm:$0xff] }
 0xd0b   :  { %v6818_v58 = vpop.f32.mrb[168].mxu1  ;;  %5656 = vxpose.xlu0.b32.cont [8/16] (narrow) %v5486_v38, 32 }
 0xd0c   :  { %v5522_v53 = vpop.f32.mrb[169].mxu1  ;;  %v5531_v37 = vadd.f32 %v6818_v58, %v9842_v21 }
 0xd0d   :  { %v5523_v12 = vadd.f32 %v9842_v21, %v5522_v53  ;;  %v6819_v60 = vpop.f32.mrb[170].mxu1  ;;  %v10344_v53 = vld [vmem:[#allocation30_spill] sm:$0xff] }
 0xd0e   :  { %v5525_v43 = vpop.f32.mrb[171].mxu1  ;;  %v5534_v29 = vadd.f32 %v6819_v60, %v9842_v21 }
 0xd0f   :  { %5681 = vxpose.xlu1.b32.start [1/16] (narrow) %v5523_v12, 32  ;;  %5657 = vxpose.xlu0.b32.cont [9/16] (narrow) %v5491_v45, 32  ;;  %v5526_v36 = vadd.f32 %v9842_v21, %v5525_v43 }
 0xd13   :  { %5682 = vxpose.xlu1.b32.cont [2/16] (narrow) %v5526_v36, 32  ;;  %v6822_v24 = vpop.f32.mrb[172].mxu1  ;;  %5658 = vxpose.xlu0.b32.cont [10/16] (narrow) %v5494_v20, 32  ;;  %v10345_v20 = vld [vmem:[#allocation15_spill] sm:$0xff] }
 0xd14   :  { %v5538_v41 = vpop.f32.mrb[173].mxu1  ;;  %v5547_v55 = vadd.f32 %v6822_v24, %v9842_v21 }
 0xd15   :  { %v6823_v33 = vpop.f32.mrb[174].mxu1  ;;  %v5539_v23 = vadd.f32 %v9842_v21, %v5538_v41 }
 0xd16   :  { %v5541_v34 = vpop.f32.mrb[175].mxu1  ;;  %v5550_v32 = vadd.f32 %v6823_v33, %v9842_v21 }
 0xd17   :  { %5683 = vxpose.xlu1.b32.cont [3/16] (narrow) %v5531_v37, 32  ;;  %5659 = vxpose.xlu0.b32.cont [11/16] (narrow) %v5499_v7, 32  ;;  %v5542_v61 = vadd.f32 %v9842_v21, %v5541_v34  ;;  %v10346_v37 = vld [vmem:[#allocation16_spill] sm:$0xff] }
 0xd1b   :  { %5684 = vxpose.xlu1.b32.cont [4/16] (narrow) %v5534_v29, 32  ;;  %v6826_v59 = vpop.f32.mrb[176].mxu1  ;;  %5660 = vxpose.xlu0.b32.cont [12/16] (narrow) %v5502_v2, 32  ;;  %v10347_v29 = vld [vmem:[#allocation19_spill] sm:$0xff] }
 0xd1c   :  { %v5554_v25 = vpop.f32.mrb[177].mxu1  ;;  %v5563_v11 = vadd.f32 %v6826_v59, %v9842_v21 }
 0xd1d   :  { %v6827_v3 = vpop.f32.mrb[178].mxu1  ;;  %v5555_v14 = vadd.f32 %v9842_v21, %v5554_v25  ;;  %v10348_v25 = vld [vmem:[#allocation20_spill] sm:$0xff] }
 0xd1e   :  { %v5557_v48 = vpop.f32.mrb[179].mxu1  ;;  %v5566_v1 = vadd.f32 %v6827_v3, %v9842_v21 }
 0xd1f   :  { %5685 = vxpose.xlu1.b32.cont [5/16] (narrow) %v5539_v23, 32  ;;  %5661 = vxpose.xlu0.b32.cont [13/16] (narrow) %v5507_v30, 32  ;;  %v5558_v40 = vadd.f32 %v9842_v21, %v5557_v48  ;;  %v10349_v30 = vld [vmem:[#allocation23_spill] sm:$0xff] }
 0xd23   :  { %5686 = vxpose.xlu1.b32.cont [6/16] (narrow) %v5542_v61, 32  ;;  %5662 = vxpose.xlu0.b32.cont [14/16] (narrow) %v5510_v47, 32  ;;  %v6830_v15 = vpop.f32.mrb[180].mxu1  ;;  %v10350_v47 = vld [vmem:[#allocation24_spill] sm:$0xff] }
 0xd24   :  { %v5570_v62 = vpop.f32.mrb[181].mxu1  ;;  %v5579_v58 = vadd.f32 %v6830_v15, %v9842_v21 }
 0xd25   :  { %v6831_v17 = vpop.f32.mrb[182].mxu1  ;;  %v5571_v19 = vadd.f32 %v9842_v21, %v5570_v62  ;;  %v10351_v62 = vld [vmem:[#allocation27_spill] sm:$0xff] }
 0xd26   :  { %v5573_v5 = vpop.f32.mrb[183].mxu1  ;;  %v5582_v45 = vadd.f32 %v6831_v17, %v9842_v21 }
 0xd27   :  { %5687 = vxpose.xlu1.b32.cont [7/16] (narrow) %v5547_v55, 32  ;;  %5663 = vxpose.xlu0.b32.cont [15/16] (narrow) %v5515_v27, 32  ;;  %v5574_v54 = vadd.f32 %v9842_v21, %v5573_v5  ;;  %v10352_v5 = vld [vmem:[#allocation28_spill] sm:$0xff] }
 0xd2b   :  { %5688 = vxpose.xlu1.b32.cont [8/16] (narrow) %v5550_v32, 32  ;;  %5664 = vxpose.xlu0.b32.end [16/16] (narrow) %v5518_v49, 32 }
 0xd2f   :  { %5689 = vxpose.xlu1.b32.cont [9/16] (narrow) %v5555_v14, 32  ;;  %v5601_v63 = vpop.trf.xlu0 }
 0xd30   :  { %v5713_v0 = vadd.f32 %v5601_v63, %v10337_v42 }
 0xd33   :  { %5690 = vxpose.xlu1.b32.cont [10/16] (narrow) %v5558_v40, 32  ;;  %v5602_v46 = vpop.trf.xlu0 }
 0xd34   :  { %v5715_v39 = vadd.f32 %v5602_v46, %v10339_v35 }
 0xd37   :  { %5691 = vxpose.xlu1.b32.cont [11/16] (narrow) %v5563_v11, 32  ;;  %v5633_v56 = vpop.trf.xlu1  ;;  %v5603_v22 = vpop.trf.xlu0 }
 0xd38   :  { %v5714_v50 = vadd.f32 %v5633_v56, %v10338_v44  ;;  %v5717_v52 = vadd.f32 %v5603_v22, %v10341_v10 }
 0xd3a   :  { %v5916_v13 = vpack.c.bf16 %v5714_v50, %v5713_v0 }
 0xd3b   :  { %5692 = vxpose.xlu1.b32.cont [12/16] (narrow) %v5566_v1, 32  ;;  %v5634_v26 = vpop.trf.xlu1  ;;  %v5604_v57 = vpop.trf.xlu0 }
 0xd3c   :  { %5777 = vst [vmem:[#allocation10] sm:$0xff] %v5916_v13  ;;  %v5716_v9 = vadd.f32 %v5634_v26, %v10340_v8  ;;  %v5719_v4 = vadd.f32 %v5604_v57, %v10343_v31 }
 0xd3e   :  { %v5917_v6 = vpack.c.bf16 %v5716_v9, %v5715_v39 }
 0xd3f   :  { %5693 = vxpose.xlu1.b32.cont [13/16] (narrow) %v5571_v19, 32  ;;  %v5635_v28 = vpop.trf.xlu1 }
 0xd40   :  { %5778 = vst [vmem:[#allocation10 + $0x8] sm:$0xff] %v5917_v6  ;;  %v5718_v16 = vadd.f32 %v5635_v28, %v10342_v51 }
 0xd42   :  { %v5918_v18 = vpack.c.bf16 %v5718_v16, %v5717_v52 }
 0xd43   :  { %5694 = vxpose.xlu1.b32.cont [14/16] (narrow) %v5574_v54, 32  ;;  %v5636_v38 = vpop.trf.xlu1 }
 0xd44   :  { %5779 = vst [vmem:[#allocation10 + $0x10] sm:$0xff] %v5918_v18  ;;  %v5720_v12 = vadd.f32 %v5636_v38, %v10344_v53 }
 0xd46   :  { %v5919_v60 = vpack.c.bf16 %v5720_v12, %v5719_v4 }
 0xd47   :  { %5695 = vxpose.xlu1.b32.cont [15/16] (narrow) %v5579_v58, 32 }
 0xd48   :  { %5780 = vst [vmem:[#allocation10 + $0x18] sm:$0xff] %v5919_v60 }
 0xd4b   :  { %5696 = vxpose.xlu1.b32.end [16/16] (narrow) %v5582_v45, 32 }
 0xd6f   :  { %v5665_v43 = vpop.trf.xlu0 }
 0xd70   :  { %v5721_v24 = vadd.f32 %v5665_v43, %v10345_v20 }
 0xd73   :  { %v5666_v36 = vpop.trf.xlu0 }
 0xd74   :  { %v5723_v2 = vadd.f32 %v5666_v36, %v10347_v29 }
 0xd77   :  { %v5667_v7 = vpop.trf.xlu0 }
 0xd78   :  { %v5725_v21 = vadd.f32 %v5667_v7, %v10349_v30 }
 0xd7b   :  { %v5668_v61 = vpop.trf.xlu0 }
 0xd7c   :  { %v5727_v27 = vadd.f32 %v5668_v61, %v10351_v62 }
 0xd8f   :  { %v5697_v41 = vpop.trf.xlu1 }
 0xd90   :  { %v5722_v33 = vadd.f32 %v5697_v41, %v10346_v37 }
 0xd92   :  { %v5920_v34 = vpack.c.bf16 %v5722_v33, %v5721_v24 }
 0xd93   :  { %v5698_v59 = vpop.trf.xlu1 }
 0xd94   :  { %5781 = vst [vmem:[#allocation10 + $0x20] sm:$0xff] %v5920_v34  ;;  %v5724_v23 = vadd.f32 %v5698_v59, %v10348_v25 }
 0xd96   :  { %v5921_v3 = vpack.c.bf16 %v5724_v23, %v5723_v2 }
 0xd97   :  { %v5699_v48 = vpop.trf.xlu1 }
 0xd98   :  { %5782 = vst [vmem:[#allocation10 + $0x28] sm:$0xff] %v5921_v3  ;;  %v5726_v15 = vadd.f32 %v5699_v48, %v10350_v47 }
 0xd9a   :  { %v5922_v55 = vpack.c.bf16 %v5726_v15, %v5725_v21 }
 0xd9b   :  { %v5700_v17 = vpop.trf.xlu1 }
 0xd9c   :  { %5783 = vst [vmem:[#allocation10 + $0x30] sm:$0xff] %v5922_v55  ;;  %v5728_v32 = vadd.f32 %v5700_v17, %v10352_v5 }
 0xd9e   :  { %v5923_v49 = vpack.c.bf16 %v5728_v32, %v5727_v27 }
 0xda0   :  { %5784 = vst [vmem:[#allocation10 + $0x38] sm:$0xff] %v5923_v49 }
 0xda1   :  { %7538 = shalt.err (!%p7535_p8)
}
 0xda2   :  { %s7539_s30 = scalar_lea.hbm %s9952_s9, 1024 }
 0xda3   :  { %p7540_p9 = scmp.ne.s32.totalorder %s9952_s9, %s7539_s30  ;;  %p7543_p10 = scmp.lt.u32.totalorder %s7539_s30, %s9952_s9 }
 0xda5   :  { %p7545_p11 = pnand %p7543_p10, %p7540_p9 }
 0xda7   :  { %7548 = shalt.err (!%p7545_p11)
}
 0xda8   :  { %5796 = dma.vmem_to_hbm [thread:$0]  %s5791_s12, 1024, %s9952_s9, [#allocation4], %s7559_s21, %s7559_s21, %s7560_s22  }
 0xda9   :  { %7555 = dma.done.wait [#allocation4], 1024  }
 0xdaa   :  { %7556 = vsyncadd [#allocation4], 4294966272 }
 0xdab   :  { %5800 = vsyncpa [#allocation3], 1 }
 0xdac   :  { %5801 = vsyncpa [#allocation6], 1 }
 0xdad   :  { %5802 = vsyncpa [#allocation9], 1 }
 0xdae   :  { %5803 = vsyncpa [#allocation4], 1 }

</bundles_post_ra>
